<compile_context>
chip_gen: v6e
topology: v6e:2x2x1
jax: 0.10.0
libtpu: 0.0.40
codegen_flags: <defaults>
</compile_context>

<pallas_src>
import functools

import jax
import jax.numpy as jnp
from jax import lax
from jax.experimental import pallas as pl
from jax.experimental.pallas import tpu as pltpu


def _round_up(x, m):
    return (x + m - 1) // m * m


def _pick_row_strip(H, W, Cp):
    """Largest divisor of H such that 3 accumulators + 1 input slab of shape
    (R, W+2, Cp) f32 stay comfortably inside the 64-vreg register file."""
    r_max = max(1, (8 * 1024) // ((W + 2) * Cp))   # ~8 vregs per array
    r = 1
    for cand in range(1, H + 1):
        if H % cand == 0 and cand <= r_max:
            r = cand
    return r


def _select_depth_tile(N, D, H, W, Cp, itemsize, d_tile):
    """Generation-aware depth tile and VMEM limit.

    Per grid step the pipeline double-buffers (Dt+2) input planes and Dt output
    planes; size Dt so this fits the chip's VMEM (v7x: 64 MiB, v5e/v6e: 128 MiB)
    while staying large enough to amortize the 2-plane halo re-read (1 + 2/Dt input
    inflation) and the ~0.35 us per-grid-step overhead.
    """
    try:
        kind = jax.devices()[0].device_kind.lower()
    except Exception:  # defensive: no devices visible at trace time
        kind = ""
    is_v7 = "v7" in kind
    phys_vmem = (64 if is_v7 else 128) * 1024 * 1024
    budget = int(phys_vmem * (0.70 if is_v7 else 0.80))

    # Per-plane VMEM footprints (sublane dim padded to a multiple of 8).
    in_plane = (H + 2) * _round_up(W + 2, 8) * Cp * itemsize
    out_plane = H * _round_up(W, 8) * Cp * itemsize

    if d_tile is None:
        dt_max = (budget // 2 - 2 * in_plane) // max(1, in_plane + out_plane)
        dt = int(max(2, min(dt_max, 16)))
    else:
        dt = max(2, int(d_tile))
    dt = min(dt, _round_up(D, 2))
    dt -= dt % 2            # even: the 2-plane depth halo is addressed as one block
    dt = max(2, dt)

    # v7x has two TensorCores; with a single batch prefer an even number of depth
    # tiles so the "parallel" grid splits evenly across the cores.
    if d_tile is None and is_v7 and N == 1:
        for cand in range(dt, max(2, dt // 2) - 1, -2):
            if (-(-D // cand)) % 2 == 0:
                dt = cand
                break

    need = 2 * ((dt + 2) * in_plane + dt * out_plane) + 64 * Cp * 4
    cap = (48 if is_v7 else 110) * 1024 * 1024
    vmem_limit = int(min(cap, max(32 * 1024 * 1024, int(1.5 * need))))
    return dt, vmem_limit


def _dwconv3d_kernel(x_ref, hi_ref, w_ref, b_ref, o_ref, *, H, W, Dt, R, D):
    # x_ref : (1, Dt, H+2, W+2, Cp)  halo-padded input planes [t*Dt, t*Dt + Dt)
    # hi_ref: (1, 2,  H+2, W+2, Cp)  halo-padded input planes [t*Dt + Dt, t*Dt + Dt + 2)
    # w_ref : (3, 3, 3, Cp)          per-channel depthwise filter taps (f32)
    # b_ref : (1, Cp)                per-channel bias (f32)
    # o_ref : (1, Dt, H, W, Cp)      output tile
    t = pl.program_id(1)
    Cp = o_ref.shape[-1]
    nR = H // R
    f32 = jnp.float32

    # Hoisted out of every loop: weight cast + 27 broadcast-ready (1,1,Cp) tap vectors,
    # bias folded into the kw=0 accumulator init, and a zero init for the other two.
    w = w_ref[...].astype(f32)                                   # (3, 3, 3, Cp)
    wt = [[[w[kd, kh, kw].reshape(1, 1, Cp) for kw in range(3)]
           for kh in range(3)] for kd in range(3)]
    bias_init = jnp.broadcast_to(b_ref[0, :].astype(f32), (R, W + 2, Cp))
    zero_init = jnp.zeros((R, W + 2, Cp), f32)

    # Number of real (non zero-padded) output depth planes in this tile.
    valid = jnp.minimum(Dt, D - t * Dt)

    def compute_plane(j_out, load_plane):
        """Compute output depth plane j_out; load_plane(kd, row) -> (R, W+2, Cp)."""

        def strip_body(r, carry):
            h0 = pl.multiple_of(r * R, R)
            # One accumulator per kw tap, over the padded width, kept vreg-resident;
            # every tap is a pure per-lane MAC (no per-tap sublane shift).  The width
            # shift is applied once at the end via three slices (XLU, free slot).
            acc0, acc1, acc2 = bias_init, zero_init, zero_init
            for kd in range(3):
                for kh in range(3):
                    slab = load_plane(kd, h0 + kh).astype(f32)   # (R, W+2, Cp)
                    acc0 = acc0 + slab * wt[kd][kh][0]
                    acc1 = acc1 + slab * wt[kd][kh][1]
                    acc2 = acc2 + slab * wt[kd][kh][2]
            out = acc0[:, 0:W, :] + acc1[:, 1:W + 1, :] + acc2[:, 2:W + 2, :]
            o_ref[0, j_out, pl.ds(h0, R), :, :] = out.astype(o_ref.dtype)
            return carry

        if nR == 1:
            strip_body(0, 0)
        else:
            lax.fori_loop(0, nR, strip_body, 0)

    # Bulk: output planes whose three depth taps all live in the main block.
    def bulk_body(j, carry):
        def load(kd, row):
            return x_ref[0, j + kd, pl.ds(row, R), :, :]
        compute_plane(j, load)
        return carry

    if Dt > 2:
        lax.fori_loop(0, jnp.minimum(Dt - 2, valid), bulk_body, 0)

    # Tail: last two planes of the tile; their upper taps cross into the halo block
    # (statically peeled since the ref choice per tap must be static).  Zero-padded
    # tail planes (beyond `valid`) are skipped entirely.
    for jj, srcs in ((Dt - 2, (None, None, 0)), (Dt - 1, (None, 0, 1))):
        @pl.when(jj < valid)
        def _(jj=jj, srcs=srcs):
            def load(kd, row, jj=jj, srcs=srcs):
                if srcs[kd] is None:
                    return x_ref[0, jj + kd, pl.ds(row, R), :, :]
                return hi_ref[0, srcs[kd], pl.ds(row, R), :, :]
            compute_plane(jj, load)


def dwconv3d(x_ncdhw, weight, bias, *, d_tile=None):
    """Depthwise Conv3d, kernel 3, stride 1, padding 1, groups=C, bias.

    x_ncdhw: (N, C, D, H, W)        (any float dtype; bf16 halves HBM traffic)
    weight:  (C, 1, 3, 3, 3)        (PyTorch Conv3d weight layout for groups=C)
    bias:    (C,)
    returns: (N, C, D, H, W) in x_ncdhw.dtype
    """
    N, C, D, H, W = x_ncdhw.shape
    Cp = _round_up(C, 128)                           # lane-dense channel axis
    itemsize = jnp.dtype(x_ncdhw.dtype).itemsize
    Dt, vmem_limit = _select_depth_tile(N, D, H, W, Cp, itemsize, d_tile)
    Dp = _round_up(D, Dt)
    nt = Dp // Dt
    half = Dt // 2
    R = _pick_row_strip(H, W, Cp)

    # NCDHW -> NDHWC, then ONE pad op: depth halo (1 each side) + tail to Dp,
    # H/W +1 halo, C -> Cp lane padding.
    x = jnp.transpose(x_ncdhw, (0, 2, 3, 4, 1))                       # (N, D, H, W, C)
    x = jnp.pad(x, ((0, 0), (1, Dp - D + 1), (1, 1), (1, 1), (0, Cp - C)))
    # x: (N, Dp + 2, H + 2, W + 2, Cp)

    # (C,1,3,3,3) -> (3,3,3,Cp) f32; padded channels get zero weights/bias.
    w = jnp.transpose(weight[:, 0, :, :, :], (1, 2, 3, 0)).astype(jnp.float32)
    w = jnp.pad(w, ((0, 0), (0, 0), (0, 0), (0, Cp - C)))
    b = jnp.pad(bias.astype(jnp.float32), (0, Cp - C)).reshape(1, Cp)

    kernel = functools.partial(_dwconv3d_kernel, H=H, W=W, Dt=Dt, R=R, D=D)

    out = pl.pallas_call(
        kernel,
        out_shape=jax.ShapeDtypeStruct((N, Dp, H, W, Cp), x_ncdhw.dtype),
        grid_spec=pltpu.PrefetchScalarGridSpec(
            num_scalar_prefetch=0,
            grid=(N, nt),
            in_specs=[
                # main window: padded depth planes [t*Dt, t*Dt + Dt)
                pl.BlockSpec((1, Dt, H + 2, W + 2, Cp),
                             lambda n, t: (n, t, 0, 0, 0)),
                # 2-plane top halo: padded depth planes [t*Dt + Dt, t*Dt + Dt + 2)
                # (block size 2 along depth, so block index = (t+1)*Dt/2; Dt is even)
                pl.BlockSpec((1, 2, H + 2, W + 2, Cp),
                             lambda n, t: (n, (t + 1) * half, 0, 0, 0)),
                pl.BlockSpec((3, 3, 3, Cp), lambda n, t: (0, 0, 0, 0)),
                pl.BlockSpec((1, Cp), lambda n, t: (0, 0)),
            ],
            out_specs=pl.BlockSpec((1, Dt, H, W, Cp), lambda n, t: (n, t, 0, 0, 0)),
        ),
        compiler_params=pltpu.CompilerParams(
            dimension_semantics=("parallel", "parallel"),
            vmem_limit_bytes=vmem_limit,
        ),
    )(x, x, w, b)

    # drop depth/channel padding, NDHWC -> NCDHW
    out = out[:, :D, :, :, :C]
    return jnp.transpose(out, (0, 4, 1, 2, 3))


def _reference(x_ncdhw, weight, bias):
    C = x_ncdhw.shape[1]
    y = jax.lax.conv_general_dilated(
        x_ncdhw, weight,
        window_strides=(1, 1, 1),
        padding=((1, 1), (1, 1), (1, 1)),
        dimension_numbers=("NCDHW", "OIDHW", "NCDHW"),
        feature_group_count=C,
    )
    return y + bias.reshape(1, C, 1, 1, 1)


if __name__ == "__main__":
    key = jax.random.PRNGKey(0)

    configs = [
        # (N, C,   D, H, W, d_tile, dtype)
        (2, 4,   6, 8, 8, 4,    jnp.float32),   # Cp 4->128, 2 depth tiles, padded tail
        (1, 128, 4, 4, 8, None, jnp.float32),   # lane-native C, auto depth tile
        (1, 256, 5, 6, 7, None, jnp.bfloat16),  # bf16 storage, odd D/H/W
    ]
    for idx, (N, C, D, H, W, d_tile, dtype) in enumerate(configs):
        key, k_x, k_w, k_b = jax.random.split(key, 4)
        x = jax.random.normal(k_x, (N, C, D, H, W), dtype=jnp.float32)
        # deterministic parameter init (PyTorch Conv3d weight shape: (C, 1, 3, 3, 3))
        weight = jax.random.normal(k_w, (C, 1, 3, 3, 3), dtype=jnp.float32) * 0.1
        bias = jax.random.normal(k_b, (C,), dtype=jnp.float32) * 0.1

        x_in = x.astype(dtype)
        out = dwconv3d(x_in, weight, bias, d_tile=d_tile)
        out = jax.block_until_ready(out)
        assert out.shape == (N, C, D, H, W)
        assert out.dtype == dtype

        ref = _reference(x_in.astype(jnp.float32), weight, bias)
        if dtype == jnp.float32:
            assert jnp.allclose(out, ref, rtol=1e-4, atol=1e-5), (
                f"mismatch vs reference (config {idx})")
        else:
            assert jnp.allclose(out.astype(jnp.float32), ref, rtol=2e-2, atol=2e-2), (
                f"mismatch vs reference (config {idx})")

    print("KERNEL_OK")
</pallas_src>

<mosaic_0001>
module attributes {stable_mosaic.version = 11 : i64} {
  func.func @_dwconv3d_kernel(%arg0: i32, %arg1: i32, %arg2: memref<1x4x10x10x128xf32, #tpu.memory_space<vmem>>, %arg3: memref<1x2x10x10x128xf32, #tpu.memory_space<vmem>>, %arg4: memref<3x3x3x128xf32, #tpu.memory_space<vmem>>, %arg5: memref<1x128xf32, #tpu.memory_space<vmem>>, %arg6: memref<1x4x8x8x128xf32, #tpu.memory_space<vmem>>) attributes {dimension_semantics = [#tpu.dimension_semantics<parallel>, #tpu.dimension_semantics<parallel>], iteration_bounds = array<i64: 2, 2>, scalar_prefetch = 0 : i64, scratch_operands = 0 : i64, tpu.core_type = #tpu.core_type<tc>, window_params = [{transform_indices = @transform_0, window_bounds = array<i64: 1, 4, 10, 10, 128>}, {transform_indices = @transform_1, window_bounds = array<i64: 1, 2, 10, 10, 128>}, {pipeline_mode = #tpu.pipeline_mode<synchronous>, transform_indices = @transform_2, window_bounds = array<i64: 3, 3, 3, 128>}, {pipeline_mode = #tpu.pipeline_mode<synchronous>, transform_indices = @transform_3, window_bounds = array<i64: 1, 128>}, {transform_indices = @transform_4, window_bounds = array<i64: 1, 4, 8, 8, 128>}]} {
    %c0 = arith.constant 0 : index
    %c0_0 = arith.constant 0 : index
    %c0_1 = arith.constant 0 : index
    %c0_2 = arith.constant 0 : index
    %0 = vector.load %arg4[%c0, %c0_0, %c0_1, %c0_2] : memref<3x3x3x128xf32, #tpu.memory_space<vmem>>, vector<3x3x3x128xf32>
    %1 = vector.extract_strided_slice %0 {offsets = [0, 0, 0, 0], sizes = [1, 1, 1, 128], strides = [1, 1, 1, 1]} : vector<3x3x3x128xf32> to vector<1x1x1x128xf32>
    %2 = vector.shape_cast %1 : vector<1x1x1x128xf32> to vector<128xf32>
    %3 = vector.shape_cast %2 : vector<128xf32> to vector<1x1x128xf32>
    %4 = vector.extract_strided_slice %0 {offsets = [0, 0, 1, 0], sizes = [1, 1, 1, 128], strides = [1, 1, 1, 1]} : vector<3x3x3x128xf32> to vector<1x1x1x128xf32>
    %5 = vector.shape_cast %4 : vector<1x1x1x128xf32> to vector<128xf32>
    %6 = vector.shape_cast %5 : vector<128xf32> to vector<1x1x128xf32>
    %7 = vector.extract_strided_slice %0 {offsets = [0, 0, 2, 0], sizes = [1, 1, 1, 128], strides = [1, 1, 1, 1]} : vector<3x3x3x128xf32> to vector<1x1x1x128xf32>
    %8 = vector.shape_cast %7 : vector<1x1x1x128xf32> to vector<128xf32>
    %9 = vector.shape_cast %8 : vector<128xf32> to vector<1x1x128xf32>
    %10 = vector.extract_strided_slice %0 {offsets = [0, 1, 0, 0], sizes = [1, 1, 1, 128], strides = [1, 1, 1, 1]} : vector<3x3x3x128xf32> to vector<1x1x1x128xf32>
    %11 = vector.shape_cast %10 : vector<1x1x1x128xf32> to vector<128xf32>
    %12 = vector.shape_cast %11 : vector<128xf32> to vector<1x1x128xf32>
    %13 = vector.extract_strided_slice %0 {offsets = [0, 1, 1, 0], sizes = [1, 1, 1, 128], strides = [1, 1, 1, 1]} : vector<3x3x3x128xf32> to vector<1x1x1x128xf32>
    %14 = vector.shape_cast %13 : vector<1x1x1x128xf32> to vector<128xf32>
    %15 = vector.shape_cast %14 : vector<128xf32> to vector<1x1x128xf32>
    %16 = vector.extract_strided_slice %0 {offsets = [0, 1, 2, 0], sizes = [1, 1, 1, 128], strides = [1, 1, 1, 1]} : vector<3x3x3x128xf32> to vector<1x1x1x128xf32>
    %17 = vector.shape_cast %16 : vector<1x1x1x128xf32> to vector<128xf32>
    %18 = vector.shape_cast %17 : vector<128xf32> to vector<1x1x128xf32>
    %19 = vector.extract_strided_slice %0 {offsets = [0, 2, 0, 0], sizes = [1, 1, 1, 128], strides = [1, 1, 1, 1]} : vector<3x3x3x128xf32> to vector<1x1x1x128xf32>
    %20 = vector.shape_cast %19 : vector<1x1x1x128xf32> to vector<128xf32>
    %21 = vector.shape_cast %20 : vector<128xf32> to vector<1x1x128xf32>
    %22 = vector.extract_strided_slice %0 {offsets = [0, 2, 1, 0], sizes = [1, 1, 1, 128], strides = [1, 1, 1, 1]} : vector<3x3x3x128xf32> to vector<1x1x1x128xf32>
    %23 = vector.shape_cast %22 : vector<1x1x1x128xf32> to vector<128xf32>
    %24 = vector.shape_cast %23 : vector<128xf32> to vector<1x1x128xf32>
    %25 = vector.extract_strided_slice %0 {offsets = [0, 2, 2, 0], sizes = [1, 1, 1, 128], strides = [1, 1, 1, 1]} : vector<3x3x3x128xf32> to vector<1x1x1x128xf32>
    %26 = vector.shape_cast %25 : vector<1x1x1x128xf32> to vector<128xf32>
    %27 = vector.shape_cast %26 : vector<128xf32> to vector<1x1x128xf32>
    %28 = vector.extract_strided_slice %0 {offsets = [1, 0, 0, 0], sizes = [1, 1, 1, 128], strides = [1, 1, 1, 1]} : vector<3x3x3x128xf32> to vector<1x1x1x128xf32>
    %29 = vector.shape_cast %28 : vector<1x1x1x128xf32> to vector<128xf32>
    %30 = vector.shape_cast %29 : vector<128xf32> to vector<1x1x128xf32>
    %31 = vector.extract_strided_slice %0 {offsets = [1, 0, 1, 0], sizes = [1, 1, 1, 128], strides = [1, 1, 1, 1]} : vector<3x3x3x128xf32> to vector<1x1x1x128xf32>
    %32 = vector.shape_cast %31 : vector<1x1x1x128xf32> to vector<128xf32>
    %33 = vector.shape_cast %32 : vector<128xf32> to vector<1x1x128xf32>
    %34 = vector.extract_strided_slice %0 {offsets = [1, 0, 2, 0], sizes = [1, 1, 1, 128], strides = [1, 1, 1, 1]} : vector<3x3x3x128xf32> to vector<1x1x1x128xf32>
    %35 = vector.shape_cast %34 : vector<1x1x1x128xf32> to vector<128xf32>
    %36 = vector.shape_cast %35 : vector<128xf32> to vector<1x1x128xf32>
    %37 = vector.extract_strided_slice %0 {offsets = [1, 1, 0, 0], sizes = [1, 1, 1, 128], strides = [1, 1, 1, 1]} : vector<3x3x3x128xf32> to vector<1x1x1x128xf32>
    %38 = vector.shape_cast %37 : vector<1x1x1x128xf32> to vector<128xf32>
    %39 = vector.shape_cast %38 : vector<128xf32> to vector<1x1x128xf32>
    %40 = vector.extract_strided_slice %0 {offsets = [1, 1, 1, 0], sizes = [1, 1, 1, 128], strides = [1, 1, 1, 1]} : vector<3x3x3x128xf32> to vector<1x1x1x128xf32>
    %41 = vector.shape_cast %40 : vector<1x1x1x128xf32> to vector<128xf32>
    %42 = vector.shape_cast %41 : vector<128xf32> to vector<1x1x128xf32>
    %43 = vector.extract_strided_slice %0 {offsets = [1, 1, 2, 0], sizes = [1, 1, 1, 128], strides = [1, 1, 1, 1]} : vector<3x3x3x128xf32> to vector<1x1x1x128xf32>
    %44 = vector.shape_cast %43 : vector<1x1x1x128xf32> to vector<128xf32>
    %45 = vector.shape_cast %44 : vector<128xf32> to vector<1x1x128xf32>
    %46 = vector.extract_strided_slice %0 {offsets = [1, 2, 0, 0], sizes = [1, 1, 1, 128], strides = [1, 1, 1, 1]} : vector<3x3x3x128xf32> to vector<1x1x1x128xf32>
    %47 = vector.shape_cast %46 : vector<1x1x1x128xf32> to vector<128xf32>
    %48 = vector.shape_cast %47 : vector<128xf32> to vector<1x1x128xf32>
    %49 = vector.extract_strided_slice %0 {offsets = [1, 2, 1, 0], sizes = [1, 1, 1, 128], strides = [1, 1, 1, 1]} : vector<3x3x3x128xf32> to vector<1x1x1x128xf32>
    %50 = vector.shape_cast %49 : vector<1x1x1x128xf32> to vector<128xf32>
    %51 = vector.shape_cast %50 : vector<128xf32> to vector<1x1x128xf32>
    %52 = vector.extract_strided_slice %0 {offsets = [1, 2, 2, 0], sizes = [1, 1, 1, 128], strides = [1, 1, 1, 1]} : vector<3x3x3x128xf32> to vector<1x1x1x128xf32>
    %53 = vector.shape_cast %52 : vector<1x1x1x128xf32> to vector<128xf32>
    %54 = vector.shape_cast %53 : vector<128xf32> to vector<1x1x128xf32>
    %55 = vector.extract_strided_slice %0 {offsets = [2, 0, 0, 0], sizes = [1, 1, 1, 128], strides = [1, 1, 1, 1]} : vector<3x3x3x128xf32> to vector<1x1x1x128xf32>
    %56 = vector.shape_cast %55 : vector<1x1x1x128xf32> to vector<128xf32>
    %57 = vector.shape_cast %56 : vector<128xf32> to vector<1x1x128xf32>
    %58 = vector.extract_strided_slice %0 {offsets = [2, 0, 1, 0], sizes = [1, 1, 1, 128], strides = [1, 1, 1, 1]} : vector<3x3x3x128xf32> to vector<1x1x1x128xf32>
    %59 = vector.shape_cast %58 : vector<1x1x1x128xf32> to vector<128xf32>
    %60 = vector.shape_cast %59 : vector<128xf32> to vector<1x1x128xf32>
    %61 = vector.extract_strided_slice %0 {offsets = [2, 0, 2, 0], sizes = [1, 1, 1, 128], strides = [1, 1, 1, 1]} : vector<3x3x3x128xf32> to vector<1x1x1x128xf32>
    %62 = vector.shape_cast %61 : vector<1x1x1x128xf32> to vector<128xf32>
    %63 = vector.shape_cast %62 : vector<128xf32> to vector<1x1x128xf32>
    %64 = vector.extract_strided_slice %0 {offsets = [2, 1, 0, 0], sizes = [1, 1, 1, 128], strides = [1, 1, 1, 1]} : vector<3x3x3x128xf32> to vector<1x1x1x128xf32>
    %65 = vector.shape_cast %64 : vector<1x1x1x128xf32> to vector<128xf32>
    %66 = vector.shape_cast %65 : vector<128xf32> to vector<1x1x128xf32>
    %67 = vector.extract_strided_slice %0 {offsets = [2, 1, 1, 0], sizes = [1, 1, 1, 128], strides = [1, 1, 1, 1]} : vector<3x3x3x128xf32> to vector<1x1x1x128xf32>
    %68 = vector.shape_cast %67 : vector<1x1x1x128xf32> to vector<128xf32>
    %69 = vector.shape_cast %68 : vector<128xf32> to vector<1x1x128xf32>
    %70 = vector.extract_strided_slice %0 {offsets = [2, 1, 2, 0], sizes = [1, 1, 1, 128], strides = [1, 1, 1, 1]} : vector<3x3x3x128xf32> to vector<1x1x1x128xf32>
    %71 = vector.shape_cast %70 : vector<1x1x1x128xf32> to vector<128xf32>
    %72 = vector.shape_cast %71 : vector<128xf32> to vector<1x1x128xf32>
    %73 = vector.extract_strided_slice %0 {offsets = [2, 2, 0, 0], sizes = [1, 1, 1, 128], strides = [1, 1, 1, 1]} : vector<3x3x3x128xf32> to vector<1x1x1x128xf32>
    %74 = vector.shape_cast %73 : vector<1x1x1x128xf32> to vector<128xf32>
    %75 = vector.shape_cast %74 : vector<128xf32> to vector<1x1x128xf32>
    %76 = vector.extract_strided_slice %0 {offsets = [2, 2, 1, 0], sizes = [1, 1, 1, 128], strides = [1, 1, 1, 1]} : vector<3x3x3x128xf32> to vector<1x1x1x128xf32>
    %77 = vector.shape_cast %76 : vector<1x1x1x128xf32> to vector<128xf32>
    %78 = vector.shape_cast %77 : vector<128xf32> to vector<1x1x128xf32>
    %79 = vector.extract_strided_slice %0 {offsets = [2, 2, 2, 0], sizes = [1, 1, 1, 128], strides = [1, 1, 1, 1]} : vector<3x3x3x128xf32> to vector<1x1x1x128xf32>
    %80 = vector.shape_cast %79 : vector<1x1x1x128xf32> to vector<128xf32>
    %81 = vector.shape_cast %80 : vector<128xf32> to vector<1x1x128xf32>
    %c0_3 = arith.constant 0 : index
    %c0_4 = arith.constant 0 : index
    %82 = vector.load %arg5[%c0_3, %c0_4] : memref<1x128xf32, #tpu.memory_space<vmem>>, vector<1x128xf32>
    %83 = vector.shape_cast %82 : vector<1x128xf32> to vector<128xf32>
    %84 = vector.shape_cast %83 : vector<128xf32> to vector<1x1x128xf32>
    %85 = vector.broadcast %84 : vector<1x1x128xf32> to vector<4x10x128xf32>
    %cst = arith.constant 0.000000e+00 : f32
    %86 = vector.broadcast %cst : f32 to vector<4x10x128xf32>
    %c4_i32 = arith.constant 4 : i32
    %87 = arith.muli %arg1, %c4_i32 : i32
    %c6_i32 = arith.constant 6 : i32
    %88 = arith.subi %c6_i32, %87 : i32
    %c4_i32_5 = arith.constant 4 : i32
    %89 = arith.minsi %c4_i32_5, %88 : i32
    %c2_i32 = arith.constant 2 : i32
    %90 = arith.minsi %c2_i32, %89 : i32
    %c0_i32 = arith.constant 0 : i32
    %c0_i32_6 = arith.constant 0 : i32
    %91 = arith.subi %90, %c0_i32_6 : i32
    %92 = arith.addi %c0_i32_6, %91 : i32
    %c1_i32 = arith.constant 1 : i32
    scf.for %arg7 = %c0_i32_6 to %92 step %c1_i32  : i32 {
      %c0_i32_10 = arith.constant 0 : i32
      %c0_i32_11 = arith.constant 0 : i32
      %c2_i32_12 = arith.constant 2 : i32
      %99 = arith.addi %c0_i32_11, %c2_i32_12 : i32
      %c1_i32_13 = arith.constant 1 : i32
      scf.for %arg8 = %c0_i32_11 to %99 step %c1_i32_13  : i32 {
        %c4_i32_15 = arith.constant 4 : i32
        %100 = arith.muli %arg8, %c4_i32_15 : i32
        %101 = tpu.assume_multiple %100, 4 : i32
        %c0_i32_16 = arith.constant 0 : i32
        %102 = arith.addi %101, %c0_i32_16 : i32
        %c0_i32_17 = arith.constant 0 : i32
        %103 = arith.addi %arg7, %c0_i32_17 : i32
        %c0_18 = arith.constant 0 : index
        %104 = arith.index_cast %103 : i32 to index
        %105 = arith.index_cast %102 : i32 to index
        %c0_19 = arith.constant 0 : index
        %c0_20 = arith.constant 0 : index
        %106 = vector.load %arg2[%c0_18, %104, %105, %c0_19, %c0_20] : memref<1x4x10x10x128xf32, #tpu.memory_space<vmem>>, vector<1x1x4x10x128xf32>
        %107 = vector.shape_cast %106 : vector<1x1x4x10x128xf32> to vector<4x10x128xf32>
        %108 = vector.broadcast %3 : vector<1x1x128xf32> to vector<4x10x128xf32>
        %109 = arith.mulf %107, %108 : vector<4x10x128xf32>
        %110 = arith.addf %85, %109 : vector<4x10x128xf32>
        %111 = vector.broadcast %6 : vector<1x1x128xf32> to vector<4x10x128xf32>
        %112 = arith.mulf %107, %111 : vector<4x10x128xf32>
        %113 = arith.addf %86, %112 : vector<4x10x128xf32>
        %114 = vector.broadcast %9 : vector<1x1x128xf32> to vector<4x10x128xf32>
        %115 = arith.mulf %107, %114 : vector<4x10x128xf32>
        %116 = arith.addf %86, %115 : vector<4x10x128xf32>
        %c1_i32_21 = arith.constant 1 : i32
        %117 = arith.addi %101, %c1_i32_21 : i32
        %c0_i32_22 = arith.constant 0 : i32
        %118 = arith.addi %arg7, %c0_i32_22 : i32
        %c0_23 = arith.constant 0 : index
        %119 = arith.index_cast %118 : i32 to index
        %120 = arith.index_cast %117 : i32 to index
        %c0_24 = arith.constant 0 : index
        %c0_25 = arith.constant 0 : index
        %121 = vector.load %arg2[%c0_23, %119, %120, %c0_24, %c0_25] : memref<1x4x10x10x128xf32, #tpu.memory_space<vmem>>, vector<1x1x4x10x128xf32>
        %122 = vector.shape_cast %121 : vector<1x1x4x10x128xf32> to vector<4x10x128xf32>
        %123 = vector.broadcast %12 : vector<1x1x128xf32> to vector<4x10x128xf32>
        %124 = arith.mulf %122, %123 : vector<4x10x128xf32>
        %125 = arith.addf %110, %124 : vector<4x10x128xf32>
        %126 = vector.broadcast %15 : vector<1x1x128xf32> to vector<4x10x128xf32>
        %127 = arith.mulf %122, %126 : vector<4x10x128xf32>
        %128 = arith.addf %113, %127 : vector<4x10x128xf32>
        %129 = vector.broadcast %18 : vector<1x1x128xf32> to vector<4x10x128xf32>
        %130 = arith.mulf %122, %129 : vector<4x10x128xf32>
        %131 = arith.addf %116, %130 : vector<4x10x128xf32>
        %c2_i32_26 = arith.constant 2 : i32
        %132 = arith.addi %101, %c2_i32_26 : i32
        %c0_i32_27 = arith.constant 0 : i32
        %133 = arith.addi %arg7, %c0_i32_27 : i32
        %c0_28 = arith.constant 0 : index
        %134 = arith.index_cast %133 : i32 to index
        %135 = arith.index_cast %132 : i32 to index
        %c0_29 = arith.constant 0 : index
        %c0_30 = arith.constant 0 : index
        %136 = vector.load %arg2[%c0_28, %134, %135, %c0_29, %c0_30] : memref<1x4x10x10x128xf32, #tpu.memory_space<vmem>>, vector<1x1x4x10x128xf32>
        %137 = vector.shape_cast %136 : vector<1x1x4x10x128xf32> to vector<4x10x128xf32>
        %138 = vector.broadcast %21 : vector<1x1x128xf32> to vector<4x10x128xf32>
        %139 = arith.mulf %137, %138 : vector<4x10x128xf32>
        %140 = arith.addf %125, %139 : vector<4x10x128xf32>
        %141 = vector.broadcast %24 : vector<1x1x128xf32> to vector<4x10x128xf32>
        %142 = arith.mulf %137, %141 : vector<4x10x128xf32>
        %143 = arith.addf %128, %142 : vector<4x10x128xf32>
        %144 = vector.broadcast %27 : vector<1x1x128xf32> to vector<4x10x128xf32>
        %145 = arith.mulf %137, %144 : vector<4x10x128xf32>
        %146 = arith.addf %131, %145 : vector<4x10x128xf32>
        %c0_i32_31 = arith.constant 0 : i32
        %147 = arith.addi %101, %c0_i32_31 : i32
        %c1_i32_32 = arith.constant 1 : i32
        %148 = arith.addi %arg7, %c1_i32_32 : i32
        %c0_33 = arith.constant 0 : index
        %149 = arith.index_cast %148 : i32 to index
        %150 = arith.index_cast %147 : i32 to index
        %c0_34 = arith.constant 0 : index
        %c0_35 = arith.constant 0 : index
        %151 = vector.load %arg2[%c0_33, %149, %150, %c0_34, %c0_35] : memref<1x4x10x10x128xf32, #tpu.memory_space<vmem>>, vector<1x1x4x10x128xf32>
        %152 = vector.shape_cast %151 : vector<1x1x4x10x128xf32> to vector<4x10x128xf32>
        %153 = vector.broadcast %30 : vector<1x1x128xf32> to vector<4x10x128xf32>
        %154 = arith.mulf %152, %153 : vector<4x10x128xf32>
        %155 = arith.addf %140, %154 : vector<4x10x128xf32>
        %156 = vector.broadcast %33 : vector<1x1x128xf32> to vector<4x10x128xf32>
        %157 = arith.mulf %152, %156 : vector<4x10x128xf32>
        %158 = arith.addf %143, %157 : vector<4x10x128xf32>
        %159 = vector.broadcast %36 : vector<1x1x128xf32> to vector<4x10x128xf32>
        %160 = arith.mulf %152, %159 : vector<4x10x128xf32>
        %161 = arith.addf %146, %160 : vector<4x10x128xf32>
        %c1_i32_36 = arith.constant 1 : i32
        %162 = arith.addi %101, %c1_i32_36 : i32
        %c1_i32_37 = arith.constant 1 : i32
        %163 = arith.addi %arg7, %c1_i32_37 : i32
        %c0_38 = arith.constant 0 : index
        %164 = arith.index_cast %163 : i32 to index
        %165 = arith.index_cast %162 : i32 to index
        %c0_39 = arith.constant 0 : index
        %c0_40 = arith.constant 0 : index
        %166 = vector.load %arg2[%c0_38, %164, %165, %c0_39, %c0_40] : memref<1x4x10x10x128xf32, #tpu.memory_space<vmem>>, vector<1x1x4x10x128xf32>
        %167 = vector.shape_cast %166 : vector<1x1x4x10x128xf32> to vector<4x10x128xf32>
        %168 = vector.broadcast %39 : vector<1x1x128xf32> to vector<4x10x128xf32>
        %169 = arith.mulf %167, %168 : vector<4x10x128xf32>
        %170 = arith.addf %155, %169 : vector<4x10x128xf32>
        %171 = vector.broadcast %42 : vector<1x1x128xf32> to vector<4x10x128xf32>
        %172 = arith.mulf %167, %171 : vector<4x10x128xf32>
        %173 = arith.addf %158, %172 : vector<4x10x128xf32>
        %174 = vector.broadcast %45 : vector<1x1x128xf32> to vector<4x10x128xf32>
        %175 = arith.mulf %167, %174 : vector<4x10x128xf32>
        %176 = arith.addf %161, %175 : vector<4x10x128xf32>
        %c2_i32_41 = arith.constant 2 : i32
        %177 = arith.addi %101, %c2_i32_41 : i32
        %c1_i32_42 = arith.constant 1 : i32
        %178 = arith.addi %arg7, %c1_i32_42 : i32
        %c0_43 = arith.constant 0 : index
        %179 = arith.index_cast %178 : i32 to index
        %180 = arith.index_cast %177 : i32 to index
        %c0_44 = arith.constant 0 : index
        %c0_45 = arith.constant 0 : index
        %181 = vector.load %arg2[%c0_43, %179, %180, %c0_44, %c0_45] : memref<1x4x10x10x128xf32, #tpu.memory_space<vmem>>, vector<1x1x4x10x128xf32>
        %182 = vector.shape_cast %181 : vector<1x1x4x10x128xf32> to vector<4x10x128xf32>
        %183 = vector.broadcast %48 : vector<1x1x128xf32> to vector<4x10x128xf32>
        %184 = arith.mulf %182, %183 : vector<4x10x128xf32>
        %185 = arith.addf %170, %184 : vector<4x10x128xf32>
        %186 = vector.broadcast %51 : vector<1x1x128xf32> to vector<4x10x128xf32>
        %187 = arith.mulf %182, %186 : vector<4x10x128xf32>
        %188 = arith.addf %173, %187 : vector<4x10x128xf32>
        %189 = vector.broadcast %54 : vector<1x1x128xf32> to vector<4x10x128xf32>
        %190 = arith.mulf %182, %189 : vector<4x10x128xf32>
        %191 = arith.addf %176, %190 : vector<4x10x128xf32>
        %c0_i32_46 = arith.constant 0 : i32
        %192 = arith.addi %101, %c0_i32_46 : i32
        %c2_i32_47 = arith.constant 2 : i32
        %193 = arith.addi %arg7, %c2_i32_47 : i32
        %c0_48 = arith.constant 0 : index
        %194 = arith.index_cast %193 : i32 to index
        %195 = arith.index_cast %192 : i32 to index
        %c0_49 = arith.constant 0 : index
        %c0_50 = arith.constant 0 : index
        %196 = vector.load %arg2[%c0_48, %194, %195, %c0_49, %c0_50] : memref<1x4x10x10x128xf32, #tpu.memory_space<vmem>>, vector<1x1x4x10x128xf32>
        %197 = vector.shape_cast %196 : vector<1x1x4x10x128xf32> to vector<4x10x128xf32>
        %198 = vector.broadcast %57 : vector<1x1x128xf32> to vector<4x10x128xf32>
        %199 = arith.mulf %197, %198 : vector<4x10x128xf32>
        %200 = arith.addf %185, %199 : vector<4x10x128xf32>
        %201 = vector.broadcast %60 : vector<1x1x128xf32> to vector<4x10x128xf32>
        %202 = arith.mulf %197, %201 : vector<4x10x128xf32>
        %203 = arith.addf %188, %202 : vector<4x10x128xf32>
        %204 = vector.broadcast %63 : vector<1x1x128xf32> to vector<4x10x128xf32>
        %205 = arith.mulf %197, %204 : vector<4x10x128xf32>
        %206 = arith.addf %191, %205 : vector<4x10x128xf32>
        %c1_i32_51 = arith.constant 1 : i32
        %207 = arith.addi %101, %c1_i32_51 : i32
        %c2_i32_52 = arith.constant 2 : i32
        %208 = arith.addi %arg7, %c2_i32_52 : i32
        %c0_53 = arith.constant 0 : index
        %209 = arith.index_cast %208 : i32 to index
        %210 = arith.index_cast %207 : i32 to index
        %c0_54 = arith.constant 0 : index
        %c0_55 = arith.constant 0 : index
        %211 = vector.load %arg2[%c0_53, %209, %210, %c0_54, %c0_55] : memref<1x4x10x10x128xf32, #tpu.memory_space<vmem>>, vector<1x1x4x10x128xf32>
        %212 = vector.shape_cast %211 : vector<1x1x4x10x128xf32> to vector<4x10x128xf32>
        %213 = vector.broadcast %66 : vector<1x1x128xf32> to vector<4x10x128xf32>
        %214 = arith.mulf %212, %213 : vector<4x10x128xf32>
        %215 = arith.addf %200, %214 : vector<4x10x128xf32>
        %216 = vector.broadcast %69 : vector<1x1x128xf32> to vector<4x10x128xf32>
        %217 = arith.mulf %212, %216 : vector<4x10x128xf32>
        %218 = arith.addf %203, %217 : vector<4x10x128xf32>
        %219 = vector.broadcast %72 : vector<1x1x128xf32> to vector<4x10x128xf32>
        %220 = arith.mulf %212, %219 : vector<4x10x128xf32>
        %221 = arith.addf %206, %220 : vector<4x10x128xf32>
        %c2_i32_56 = arith.constant 2 : i32
        %222 = arith.addi %101, %c2_i32_56 : i32
        %c2_i32_57 = arith.constant 2 : i32
        %223 = arith.addi %arg7, %c2_i32_57 : i32
        %c0_58 = arith.constant 0 : index
        %224 = arith.index_cast %223 : i32 to index
        %225 = arith.index_cast %222 : i32 to index
        %c0_59 = arith.constant 0 : index
        %c0_60 = arith.constant 0 : index
        %226 = vector.load %arg2[%c0_58, %224, %225, %c0_59, %c0_60] : memref<1x4x10x10x128xf32, #tpu.memory_space<vmem>>, vector<1x1x4x10x128xf32>
        %227 = vector.shape_cast %226 : vector<1x1x4x10x128xf32> to vector<4x10x128xf32>
        %228 = vector.broadcast %75 : vector<1x1x128xf32> to vector<4x10x128xf32>
        %229 = arith.mulf %227, %228 : vector<4x10x128xf32>
        %230 = arith.addf %215, %229 : vector<4x10x128xf32>
        %231 = vector.broadcast %78 : vector<1x1x128xf32> to vector<4x10x128xf32>
        %232 = arith.mulf %227, %231 : vector<4x10x128xf32>
        %233 = arith.addf %218, %232 : vector<4x10x128xf32>
        %234 = vector.broadcast %81 : vector<1x1x128xf32> to vector<4x10x128xf32>
        %235 = arith.mulf %227, %234 : vector<4x10x128xf32>
        %236 = arith.addf %221, %235 : vector<4x10x128xf32>
        %237 = vector.extract_strided_slice %230 {offsets = [0, 0, 0], sizes = [4, 8, 128], strides = [1, 1, 1]} : vector<4x10x128xf32> to vector<4x8x128xf32>
        %238 = vector.extract_strided_slice %233 {offsets = [0, 1, 0], sizes = [4, 8, 128], strides = [1, 1, 1]} : vector<4x10x128xf32> to vector<4x8x128xf32>
        %239 = arith.addf %237, %238 : vector<4x8x128xf32>
        %240 = vector.extract_strided_slice %236 {offsets = [0, 2, 0], sizes = [4, 8, 128], strides = [1, 1, 1]} : vector<4x10x128xf32> to vector<4x8x128xf32>
        %241 = arith.addf %239, %240 : vector<4x8x128xf32>
        %c0_61 = arith.constant 0 : index
        %242 = arith.index_cast %arg7 : i32 to index
        %243 = arith.index_cast %101 : i32 to index
        %c0_62 = arith.constant 0 : index
        %c0_63 = arith.constant 0 : index
        %244 = vector.load %arg6[%c0_61, %242, %243, %c0_62, %c0_63] : memref<1x4x8x8x128xf32, #tpu.memory_space<vmem>>, vector<1x1x4x8x128xf32>
        %245 = vector.shape_cast %244 : vector<1x1x4x8x128xf32> to vector<4x8x128xf32>
        %246 = vector.shape_cast %241 : vector<4x8x128xf32> to vector<1x1x4x8x128xf32>
        tpu.vector_store %arg6[%c0_61, %242, %243, %c0_62, %c0_63], %246 {strides = array<i32>} : memref<1x4x8x8x128xf32, #tpu.memory_space<vmem>>, vector<1x1x4x8x128xf32>,
      }
      %c2_i32_14 = arith.constant 2 : i32
    }
    %c2_i32_7 = arith.constant 2 : i32
    %93 = arith.cmpi sgt, %89, %c2_i32_7 : i32
    %94 = arith.extui %93 : i1 to i32
    %c0_i32_8 = arith.constant 0 : i32
    %95 = arith.cmpi ne, %94, %c0_i32_8 : i32
    scf.if %95 {
      %c0_i32_10 = arith.constant 0 : i32
      %c2_i32_11 = arith.constant 2 : i32
      %99 = arith.addi %c0_i32_10, %c2_i32_11 : i32
      %c1_i32_12 = arith.constant 1 : i32
      scf.for %arg7 = %c0_i32_10 to %99 step %c1_i32_12  : i32 {
        %c4_i32_14 = arith.constant 4 : i32
        %100 = arith.muli %arg7, %c4_i32_14 : i32
        %101 = tpu.assume_multiple %100, 4 : i32
        %c0_i32_15 = arith.constant 0 : i32
        %102 = arith.addi %101, %c0_i32_15 : i32
        %c0_16 = arith.constant 0 : index
        %c2 = arith.constant 2 : index
        %103 = arith.index_cast %102 : i32 to index
        %c0_17 = arith.constant 0 : index
        %c0_18 = arith.constant 0 : index
        %104 = vector.load %arg2[%c0_16, %c2, %103, %c0_17, %c0_18] : memref<1x4x10x10x128xf32, #tpu.memory_space<vmem>>, vector<1x1x4x10x128xf32>
        %105 = vector.shape_cast %104 : vector<1x1x4x10x128xf32> to vector<4x10x128xf32>
        %106 = vector.broadcast %3 : vector<1x1x128xf32> to vector<4x10x128xf32>
        %107 = arith.mulf %105, %106 : vector<4x10x128xf32>
        %108 = arith.addf %85, %107 : vector<4x10x128xf32>
        %109 = vector.broadcast %6 : vector<1x1x128xf32> to vector<4x10x128xf32>
        %110 = arith.mulf %105, %109 : vector<4x10x128xf32>
        %111 = arith.addf %86, %110 : vector<4x10x128xf32>
        %112 = vector.broadcast %9 : vector<1x1x128xf32> to vector<4x10x128xf32>
        %113 = arith.mulf %105, %112 : vector<4x10x128xf32>
        %114 = arith.addf %86, %113 : vector<4x10x128xf32>
        %c1_i32_19 = arith.constant 1 : i32
        %115 = arith.addi %101, %c1_i32_19 : i32
        %c0_20 = arith.constant 0 : index
        %c2_21 = arith.constant 2 : index
        %116 = arith.index_cast %115 : i32 to index
        %c0_22 = arith.constant 0 : index
        %c0_23 = arith.constant 0 : index
        %117 = vector.load %arg2[%c0_20, %c2_21, %116, %c0_22, %c0_23] : memref<1x4x10x10x128xf32, #tpu.memory_space<vmem>>, vector<1x1x4x10x128xf32>
        %118 = vector.shape_cast %117 : vector<1x1x4x10x128xf32> to vector<4x10x128xf32>
        %119 = vector.broadcast %12 : vector<1x1x128xf32> to vector<4x10x128xf32>
        %120 = arith.mulf %118, %119 : vector<4x10x128xf32>
        %121 = arith.addf %108, %120 : vector<4x10x128xf32>
        %122 = vector.broadcast %15 : vector<1x1x128xf32> to vector<4x10x128xf32>
        %123 = arith.mulf %118, %122 : vector<4x10x128xf32>
        %124 = arith.addf %111, %123 : vector<4x10x128xf32>
        %125 = vector.broadcast %18 : vector<1x1x128xf32> to vector<4x10x128xf32>
        %126 = arith.mulf %118, %125 : vector<4x10x128xf32>
        %127 = arith.addf %114, %126 : vector<4x10x128xf32>
        %c2_i32_24 = arith.constant 2 : i32
        %128 = arith.addi %101, %c2_i32_24 : i32
        %c0_25 = arith.constant 0 : index
        %c2_26 = arith.constant 2 : index
        %129 = arith.index_cast %128 : i32 to index
        %c0_27 = arith.constant 0 : index
        %c0_28 = arith.constant 0 : index
        %130 = vector.load %arg2[%c0_25, %c2_26, %129, %c0_27, %c0_28] : memref<1x4x10x10x128xf32, #tpu.memory_space<vmem>>, vector<1x1x4x10x128xf32>
        %131 = vector.shape_cast %130 : vector<1x1x4x10x128xf32> to vector<4x10x128xf32>
        %132 = vector.broadcast %21 : vector<1x1x128xf32> to vector<4x10x128xf32>
        %133 = arith.mulf %131, %132 : vector<4x10x128xf32>
        %134 = arith.addf %121, %133 : vector<4x10x128xf32>
        %135 = vector.broadcast %24 : vector<1x1x128xf32> to vector<4x10x128xf32>
        %136 = arith.mulf %131, %135 : vector<4x10x128xf32>
        %137 = arith.addf %124, %136 : vector<4x10x128xf32>
        %138 = vector.broadcast %27 : vector<1x1x128xf32> to vector<4x10x128xf32>
        %139 = arith.mulf %131, %138 : vector<4x10x128xf32>
        %140 = arith.addf %127, %139 : vector<4x10x128xf32>
        %c0_i32_29 = arith.constant 0 : i32
        %141 = arith.addi %101, %c0_i32_29 : i32
        %c0_30 = arith.constant 0 : index
        %c3 = arith.constant 3 : index
        %142 = arith.index_cast %141 : i32 to index
        %c0_31 = arith.constant 0 : index
        %c0_32 = arith.constant 0 : index
        %143 = vector.load %arg2[%c0_30, %c3, %142, %c0_31, %c0_32] : memref<1x4x10x10x128xf32, #tpu.memory_space<vmem>>, vector<1x1x4x10x128xf32>
        %144 = vector.shape_cast %143 : vector<1x1x4x10x128xf32> to vector<4x10x128xf32>
        %145 = vector.broadcast %30 : vector<1x1x128xf32> to vector<4x10x128xf32>
        %146 = arith.mulf %144, %145 : vector<4x10x128xf32>
        %147 = arith.addf %134, %146 : vector<4x10x128xf32>
        %148 = vector.broadcast %33 : vector<1x1x128xf32> to vector<4x10x128xf32>
        %149 = arith.mulf %144, %148 : vector<4x10x128xf32>
        %150 = arith.addf %137, %149 : vector<4x10x128xf32>
        %151 = vector.broadcast %36 : vector<1x1x128xf32> to vector<4x10x128xf32>
        %152 = arith.mulf %144, %151 : vector<4x10x128xf32>
        %153 = arith.addf %140, %152 : vector<4x10x128xf32>
        %c1_i32_33 = arith.constant 1 : i32
        %154 = arith.addi %101, %c1_i32_33 : i32
        %c0_34 = arith.constant 0 : index
        %c3_35 = arith.constant 3 : index
        %155 = arith.index_cast %154 : i32 to index
        %c0_36 = arith.constant 0 : index
        %c0_37 = arith.constant 0 : index
        %156 = vector.load %arg2[%c0_34, %c3_35, %155, %c0_36, %c0_37] : memref<1x4x10x10x128xf32, #tpu.memory_space<vmem>>, vector<1x1x4x10x128xf32>
        %157 = vector.shape_cast %156 : vector<1x1x4x10x128xf32> to vector<4x10x128xf32>
        %158 = vector.broadcast %39 : vector<1x1x128xf32> to vector<4x10x128xf32>
        %159 = arith.mulf %157, %158 : vector<4x10x128xf32>
        %160 = arith.addf %147, %159 : vector<4x10x128xf32>
        %161 = vector.broadcast %42 : vector<1x1x128xf32> to vector<4x10x128xf32>
        %162 = arith.mulf %157, %161 : vector<4x10x128xf32>
        %163 = arith.addf %150, %162 : vector<4x10x128xf32>
        %164 = vector.broadcast %45 : vector<1x1x128xf32> to vector<4x10x128xf32>
        %165 = arith.mulf %157, %164 : vector<4x10x128xf32>
        %166 = arith.addf %153, %165 : vector<4x10x128xf32>
        %c2_i32_38 = arith.constant 2 : i32
        %167 = arith.addi %101, %c2_i32_38 : i32
        %c0_39 = arith.constant 0 : index
        %c3_40 = arith.constant 3 : index
        %168 = arith.index_cast %167 : i32 to index
        %c0_41 = arith.constant 0 : index
        %c0_42 = arith.constant 0 : index
        %169 = vector.load %arg2[%c0_39, %c3_40, %168, %c0_41, %c0_42] : memref<1x4x10x10x128xf32, #tpu.memory_space<vmem>>, vector<1x1x4x10x128xf32>
        %170 = vector.shape_cast %169 : vector<1x1x4x10x128xf32> to vector<4x10x128xf32>
        %171 = vector.broadcast %48 : vector<1x1x128xf32> to vector<4x10x128xf32>
        %172 = arith.mulf %170, %171 : vector<4x10x128xf32>
        %173 = arith.addf %160, %172 : vector<4x10x128xf32>
        %174 = vector.broadcast %51 : vector<1x1x128xf32> to vector<4x10x128xf32>
        %175 = arith.mulf %170, %174 : vector<4x10x128xf32>
        %176 = arith.addf %163, %175 : vector<4x10x128xf32>
        %177 = vector.broadcast %54 : vector<1x1x128xf32> to vector<4x10x128xf32>
        %178 = arith.mulf %170, %177 : vector<4x10x128xf32>
        %179 = arith.addf %166, %178 : vector<4x10x128xf32>
        %c0_i32_43 = arith.constant 0 : i32
        %180 = arith.addi %101, %c0_i32_43 : i32
        %c0_44 = arith.constant 0 : index
        %c0_45 = arith.constant 0 : index
        %181 = arith.index_cast %180 : i32 to index
        %c0_46 = arith.constant 0 : index
        %c0_47 = arith.constant 0 : index
        %182 = vector.load %arg3[%c0_44, %c0_45, %181, %c0_46, %c0_47] : memref<1x2x10x10x128xf32, #tpu.memory_space<vmem>>, vector<1x1x4x10x128xf32>
        %183 = vector.shape_cast %182 : vector<1x1x4x10x128xf32> to vector<4x10x128xf32>
        %184 = vector.broadcast %57 : vector<1x1x128xf32> to vector<4x10x128xf32>
        %185 = arith.mulf %183, %184 : vector<4x10x128xf32>
        %186 = arith.addf %173, %185 : vector<4x10x128xf32>
        %187 = vector.broadcast %60 : vector<1x1x128xf32> to vector<4x10x128xf32>
        %188 = arith.mulf %183, %187 : vector<4x10x128xf32>
        %189 = arith.addf %176, %188 : vector<4x10x128xf32>
        %190 = vector.broadcast %63 : vector<1x1x128xf32> to vector<4x10x128xf32>
        %191 = arith.mulf %183, %190 : vector<4x10x128xf32>
        %192 = arith.addf %179, %191 : vector<4x10x128xf32>
        %c1_i32_48 = arith.constant 1 : i32
        %193 = arith.addi %101, %c1_i32_48 : i32
        %c0_49 = arith.constant 0 : index
        %c0_50 = arith.constant 0 : index
        %194 = arith.index_cast %193 : i32 to index
        %c0_51 = arith.constant 0 : index
        %c0_52 = arith.constant 0 : index
        %195 = vector.load %arg3[%c0_49, %c0_50, %194, %c0_51, %c0_52] : memref<1x2x10x10x128xf32, #tpu.memory_space<vmem>>, vector<1x1x4x10x128xf32>
        %196 = vector.shape_cast %195 : vector<1x1x4x10x128xf32> to vector<4x10x128xf32>
        %197 = vector.broadcast %66 : vector<1x1x128xf32> to vector<4x10x128xf32>
        %198 = arith.mulf %196, %197 : vector<4x10x128xf32>
        %199 = arith.addf %186, %198 : vector<4x10x128xf32>
        %200 = vector.broadcast %69 : vector<1x1x128xf32> to vector<4x10x128xf32>
        %201 = arith.mulf %196, %200 : vector<4x10x128xf32>
        %202 = arith.addf %189, %201 : vector<4x10x128xf32>
        %203 = vector.broadcast %72 : vector<1x1x128xf32> to vector<4x10x128xf32>
        %204 = arith.mulf %196, %203 : vector<4x10x128xf32>
        %205 = arith.addf %192, %204 : vector<4x10x128xf32>
        %c2_i32_53 = arith.constant 2 : i32
        %206 = arith.addi %101, %c2_i32_53 : i32
        %c0_54 = arith.constant 0 : index
        %c0_55 = arith.constant 0 : index
        %207 = arith.index_cast %206 : i32 to index
        %c0_56 = arith.constant 0 : index
        %c0_57 = arith.constant 0 : index
        %208 = vector.load %arg3[%c0_54, %c0_55, %207, %c0_56, %c0_57] : memref<1x2x10x10x128xf32, #tpu.memory_space<vmem>>, vector<1x1x4x10x128xf32>
        %209 = vector.shape_cast %208 : vector<1x1x4x10x128xf32> to vector<4x10x128xf32>
        %210 = vector.broadcast %75 : vector<1x1x128xf32> to vector<4x10x128xf32>
        %211 = arith.mulf %209, %210 : vector<4x10x128xf32>
        %212 = arith.addf %199, %211 : vector<4x10x128xf32>
        %213 = vector.broadcast %78 : vector<1x1x128xf32> to vector<4x10x128xf32>
        %214 = arith.mulf %209, %213 : vector<4x10x128xf32>
        %215 = arith.addf %202, %214 : vector<4x10x128xf32>
        %216 = vector.broadcast %81 : vector<1x1x128xf32> to vector<4x10x128xf32>
        %217 = arith.mulf %209, %216 : vector<4x10x128xf32>
        %218 = arith.addf %205, %217 : vector<4x10x128xf32>
        %219 = vector.extract_strided_slice %212 {offsets = [0, 0, 0], sizes = [4, 8, 128], strides = [1, 1, 1]} : vector<4x10x128xf32> to vector<4x8x128xf32>
        %220 = vector.extract_strided_slice %215 {offsets = [0, 1, 0], sizes = [4, 8, 128], strides = [1, 1, 1]} : vector<4x10x128xf32> to vector<4x8x128xf32>
        %221 = arith.addf %219, %220 : vector<4x8x128xf32>
        %222 = vector.extract_strided_slice %218 {offsets = [0, 2, 0], sizes = [4, 8, 128], strides = [1, 1, 1]} : vector<4x10x128xf32> to vector<4x8x128xf32>
        %223 = arith.addf %221, %222 : vector<4x8x128xf32>
        %c0_58 = arith.constant 0 : index
        %c2_59 = arith.constant 2 : index
        %224 = arith.index_cast %101 : i32 to index
        %c0_60 = arith.constant 0 : index
        %c0_61 = arith.constant 0 : index
        %225 = vector.load %arg6[%c0_58, %c2_59, %224, %c0_60, %c0_61] : memref<1x4x8x8x128xf32, #tpu.memory_space<vmem>>, vector<1x1x4x8x128xf32>
        %226 = vector.shape_cast %225 : vector<1x1x4x8x128xf32> to vector<4x8x128xf32>
        %227 = vector.shape_cast %223 : vector<4x8x128xf32> to vector<1x1x4x8x128xf32>
        tpu.vector_store %arg6[%c0_58, %c2_59, %224, %c0_60, %c0_61], %227 {strides = array<i32>} : memref<1x4x8x8x128xf32, #tpu.memory_space<vmem>>, vector<1x1x4x8x128xf32>,
      }
      %c2_i32_13 = arith.constant 2 : i32
    } else {
    }
    %c3_i32 = arith.constant 3 : i32
    %96 = arith.cmpi sgt, %89, %c3_i32 : i32
    %97 = arith.extui %96 : i1 to i32
    %c0_i32_9 = arith.constant 0 : i32
    %98 = arith.cmpi ne, %97, %c0_i32_9 : i32
    scf.if %98 {
      %c0_i32_10 = arith.constant 0 : i32
      %c2_i32_11 = arith.constant 2 : i32
      %99 = arith.addi %c0_i32_10, %c2_i32_11 : i32
      %c1_i32_12 = arith.constant 1 : i32
      scf.for %arg7 = %c0_i32_10 to %99 step %c1_i32_12  : i32 {
        %c4_i32_14 = arith.constant 4 : i32
        %100 = arith.muli %arg7, %c4_i32_14 : i32
        %101 = tpu.assume_multiple %100, 4 : i32
        %c0_i32_15 = arith.constant 0 : i32
        %102 = arith.addi %101, %c0_i32_15 : i32
        %c0_16 = arith.constant 0 : index
        %c3 = arith.constant 3 : index
        %103 = arith.index_cast %102 : i32 to index
        %c0_17 = arith.constant 0 : index
        %c0_18 = arith.constant 0 : index
        %104 = vector.load %arg2[%c0_16, %c3, %103, %c0_17, %c0_18] : memref<1x4x10x10x128xf32, #tpu.memory_space<vmem>>, vector<1x1x4x10x128xf32>
        %105 = vector.shape_cast %104 : vector<1x1x4x10x128xf32> to vector<4x10x128xf32>
        %106 = vector.broadcast %3 : vector<1x1x128xf32> to vector<4x10x128xf32>
        %107 = arith.mulf %105, %106 : vector<4x10x128xf32>
        %108 = arith.addf %85, %107 : vector<4x10x128xf32>
        %109 = vector.broadcast %6 : vector<1x1x128xf32> to vector<4x10x128xf32>
        %110 = arith.mulf %105, %109 : vector<4x10x128xf32>
        %111 = arith.addf %86, %110 : vector<4x10x128xf32>
        %112 = vector.broadcast %9 : vector<1x1x128xf32> to vector<4x10x128xf32>
        %113 = arith.mulf %105, %112 : vector<4x10x128xf32>
        %114 = arith.addf %86, %113 : vector<4x10x128xf32>
        %c1_i32_19 = arith.constant 1 : i32
        %115 = arith.addi %101, %c1_i32_19 : i32
        %c0_20 = arith.constant 0 : index
        %c3_21 = arith.constant 3 : index
        %116 = arith.index_cast %115 : i32 to index
        %c0_22 = arith.constant 0 : index
        %c0_23 = arith.constant 0 : index
        %117 = vector.load %arg2[%c0_20, %c3_21, %116, %c0_22, %c0_23] : memref<1x4x10x10x128xf32, #tpu.memory_space<vmem>>, vector<1x1x4x10x128xf32>
        %118 = vector.shape_cast %117 : vector<1x1x4x10x128xf32> to vector<4x10x128xf32>
        %119 = vector.broadcast %12 : vector<1x1x128xf32> to vector<4x10x128xf32>
        %120 = arith.mulf %118, %119 : vector<4x10x128xf32>
        %121 = arith.addf %108, %120 : vector<4x10x128xf32>
        %122 = vector.broadcast %15 : vector<1x1x128xf32> to vector<4x10x128xf32>
        %123 = arith.mulf %118, %122 : vector<4x10x128xf32>
        %124 = arith.addf %111, %123 : vector<4x10x128xf32>
        %125 = vector.broadcast %18 : vector<1x1x128xf32> to vector<4x10x128xf32>
        %126 = arith.mulf %118, %125 : vector<4x10x128xf32>
        %127 = arith.addf %114, %126 : vector<4x10x128xf32>
        %c2_i32_24 = arith.constant 2 : i32
        %128 = arith.addi %101, %c2_i32_24 : i32
        %c0_25 = arith.constant 0 : index
        %c3_26 = arith.constant 3 : index
        %129 = arith.index_cast %128 : i32 to index
        %c0_27 = arith.constant 0 : index
        %c0_28 = arith.constant 0 : index
        %130 = vector.load %arg2[%c0_25, %c3_26, %129, %c0_27, %c0_28] : memref<1x4x10x10x128xf32, #tpu.memory_space<vmem>>, vector<1x1x4x10x128xf32>
        %131 = vector.shape_cast %130 : vector<1x1x4x10x128xf32> to vector<4x10x128xf32>
        %132 = vector.broadcast %21 : vector<1x1x128xf32> to vector<4x10x128xf32>
        %133 = arith.mulf %131, %132 : vector<4x10x128xf32>
        %134 = arith.addf %121, %133 : vector<4x10x128xf32>
        %135 = vector.broadcast %24 : vector<1x1x128xf32> to vector<4x10x128xf32>
        %136 = arith.mulf %131, %135 : vector<4x10x128xf32>
        %137 = arith.addf %124, %136 : vector<4x10x128xf32>
        %138 = vector.broadcast %27 : vector<1x1x128xf32> to vector<4x10x128xf32>
        %139 = arith.mulf %131, %138 : vector<4x10x128xf32>
        %140 = arith.addf %127, %139 : vector<4x10x128xf32>
        %c0_i32_29 = arith.constant 0 : i32
        %141 = arith.addi %101, %c0_i32_29 : i32
        %c0_30 = arith.constant 0 : index
        %c0_31 = arith.constant 0 : index
        %142 = arith.index_cast %141 : i32 to index
        %c0_32 = arith.constant 0 : index
        %c0_33 = arith.constant 0 : index
        %143 = vector.load %arg3[%c0_30, %c0_31, %142, %c0_32, %c0_33] : memref<1x2x10x10x128xf32, #tpu.memory_space<vmem>>, vector<1x1x4x10x128xf32>
        %144 = vector.shape_cast %143 : vector<1x1x4x10x128xf32> to vector<4x10x128xf32>
        %145 = vector.broadcast %30 : vector<1x1x128xf32> to vector<4x10x128xf32>
        %146 = arith.mulf %144, %145 : vector<4x10x128xf32>
        %147 = arith.addf %134, %146 : vector<4x10x128xf32>
        %148 = vector.broadcast %33 : vector<1x1x128xf32> to vector<4x10x128xf32>
        %149 = arith.mulf %144, %148 : vector<4x10x128xf32>
        %150 = arith.addf %137, %149 : vector<4x10x128xf32>
        %151 = vector.broadcast %36 : vector<1x1x128xf32> to vector<4x10x128xf32>
        %152 = arith.mulf %144, %151 : vector<4x10x128xf32>
        %153 = arith.addf %140, %152 : vector<4x10x128xf32>
        %c1_i32_34 = arith.constant 1 : i32
        %154 = arith.addi %101, %c1_i32_34 : i32
        %c0_35 = arith.constant 0 : index
        %c0_36 = arith.constant 0 : index
        %155 = arith.index_cast %154 : i32 to index
        %c0_37 = arith.constant 0 : index
        %c0_38 = arith.constant 0 : index
        %156 = vector.load %arg3[%c0_35, %c0_36, %155, %c0_37, %c0_38] : memref<1x2x10x10x128xf32, #tpu.memory_space<vmem>>, vector<1x1x4x10x128xf32>
        %157 = vector.shape_cast %156 : vector<1x1x4x10x128xf32> to vector<4x10x128xf32>
        %158 = vector.broadcast %39 : vector<1x1x128xf32> to vector<4x10x128xf32>
        %159 = arith.mulf %157, %158 : vector<4x10x128xf32>
        %160 = arith.addf %147, %159 : vector<4x10x128xf32>
        %161 = vector.broadcast %42 : vector<1x1x128xf32> to vector<4x10x128xf32>
        %162 = arith.mulf %157, %161 : vector<4x10x128xf32>
        %163 = arith.addf %150, %162 : vector<4x10x128xf32>
        %164 = vector.broadcast %45 : vector<1x1x128xf32> to vector<4x10x128xf32>
        %165 = arith.mulf %157, %164 : vector<4x10x128xf32>
        %166 = arith.addf %153, %165 : vector<4x10x128xf32>
        %c2_i32_39 = arith.constant 2 : i32
        %167 = arith.addi %101, %c2_i32_39 : i32
        %c0_40 = arith.constant 0 : index
        %c0_41 = arith.constant 0 : index
        %168 = arith.index_cast %167 : i32 to index
        %c0_42 = arith.constant 0 : index
        %c0_43 = arith.constant 0 : index
        %169 = vector.load %arg3[%c0_40, %c0_41, %168, %c0_42, %c0_43] : memref<1x2x10x10x128xf32, #tpu.memory_space<vmem>>, vector<1x1x4x10x128xf32>
        %170 = vector.shape_cast %169 : vector<1x1x4x10x128xf32> to vector<4x10x128xf32>
        %171 = vector.broadcast %48 : vector<1x1x128xf32> to vector<4x10x128xf32>
        %172 = arith.mulf %170, %171 : vector<4x10x128xf32>
        %173 = arith.addf %160, %172 : vector<4x10x128xf32>
        %174 = vector.broadcast %51 : vector<1x1x128xf32> to vector<4x10x128xf32>
        %175 = arith.mulf %170, %174 : vector<4x10x128xf32>
        %176 = arith.addf %163, %175 : vector<4x10x128xf32>
        %177 = vector.broadcast %54 : vector<1x1x128xf32> to vector<4x10x128xf32>
        %178 = arith.mulf %170, %177 : vector<4x10x128xf32>
        %179 = arith.addf %166, %178 : vector<4x10x128xf32>
        %c0_i32_44 = arith.constant 0 : i32
        %180 = arith.addi %101, %c0_i32_44 : i32
        %c0_45 = arith.constant 0 : index
        %c1 = arith.constant 1 : index
        %181 = arith.index_cast %180 : i32 to index
        %c0_46 = arith.constant 0 : index
        %c0_47 = arith.constant 0 : index
        %182 = vector.load %arg3[%c0_45, %c1, %181, %c0_46, %c0_47] : memref<1x2x10x10x128xf32, #tpu.memory_space<vmem>>, vector<1x1x4x10x128xf32>
        %183 = vector.shape_cast %182 : vector<1x1x4x10x128xf32> to vector<4x10x128xf32>
        %184 = vector.broadcast %57 : vector<1x1x128xf32> to vector<4x10x128xf32>
        %185 = arith.mulf %183, %184 : vector<4x10x128xf32>
        %186 = arith.addf %173, %185 : vector<4x10x128xf32>
        %187 = vector.broadcast %60 : vector<1x1x128xf32> to vector<4x10x128xf32>
        %188 = arith.mulf %183, %187 : vector<4x10x128xf32>
        %189 = arith.addf %176, %188 : vector<4x10x128xf32>
        %190 = vector.broadcast %63 : vector<1x1x128xf32> to vector<4x10x128xf32>
        %191 = arith.mulf %183, %190 : vector<4x10x128xf32>
        %192 = arith.addf %179, %191 : vector<4x10x128xf32>
        %c1_i32_48 = arith.constant 1 : i32
        %193 = arith.addi %101, %c1_i32_48 : i32
        %c0_49 = arith.constant 0 : index
        %c1_50 = arith.constant 1 : index
        %194 = arith.index_cast %193 : i32 to index
        %c0_51 = arith.constant 0 : index
        %c0_52 = arith.constant 0 : index
        %195 = vector.load %arg3[%c0_49, %c1_50, %194, %c0_51, %c0_52] : memref<1x2x10x10x128xf32, #tpu.memory_space<vmem>>, vector<1x1x4x10x128xf32>
        %196 = vector.shape_cast %195 : vector<1x1x4x10x128xf32> to vector<4x10x128xf32>
        %197 = vector.broadcast %66 : vector<1x1x128xf32> to vector<4x10x128xf32>
        %198 = arith.mulf %196, %197 : vector<4x10x128xf32>
        %199 = arith.addf %186, %198 : vector<4x10x128xf32>
        %200 = vector.broadcast %69 : vector<1x1x128xf32> to vector<4x10x128xf32>
        %201 = arith.mulf %196, %200 : vector<4x10x128xf32>
        %202 = arith.addf %189, %201 : vector<4x10x128xf32>
        %203 = vector.broadcast %72 : vector<1x1x128xf32> to vector<4x10x128xf32>
        %204 = arith.mulf %196, %203 : vector<4x10x128xf32>
        %205 = arith.addf %192, %204 : vector<4x10x128xf32>
        %c2_i32_53 = arith.constant 2 : i32
        %206 = arith.addi %101, %c2_i32_53 : i32
        %c0_54 = arith.constant 0 : index
        %c1_55 = arith.constant 1 : index
        %207 = arith.index_cast %206 : i32 to index
        %c0_56 = arith.constant 0 : index
        %c0_57 = arith.constant 0 : index
        %208 = vector.load %arg3[%c0_54, %c1_55, %207, %c0_56, %c0_57] : memref<1x2x10x10x128xf32, #tpu.memory_space<vmem>>, vector<1x1x4x10x128xf32>
        %209 = vector.shape_cast %208 : vector<1x1x4x10x128xf32> to vector<4x10x128xf32>
        %210 = vector.broadcast %75 : vector<1x1x128xf32> to vector<4x10x128xf32>
        %211 = arith.mulf %209, %210 : vector<4x10x128xf32>
        %212 = arith.addf %199, %211 : vector<4x10x128xf32>
        %213 = vector.broadcast %78 : vector<1x1x128xf32> to vector<4x10x128xf32>
        %214 = arith.mulf %209, %213 : vector<4x10x128xf32>
        %215 = arith.addf %202, %214 : vector<4x10x128xf32>
        %216 = vector.broadcast %81 : vector<1x1x128xf32> to vector<4x10x128xf32>
        %217 = arith.mulf %209, %216 : vector<4x10x128xf32>
        %218 = arith.addf %205, %217 : vector<4x10x128xf32>
        %219 = vector.extract_strided_slice %212 {offsets = [0, 0, 0], sizes = [4, 8, 128], strides = [1, 1, 1]} : vector<4x10x128xf32> to vector<4x8x128xf32>
        %220 = vector.extract_strided_slice %215 {offsets = [0, 1, 0], sizes = [4, 8, 128], strides = [1, 1, 1]} : vector<4x10x128xf32> to vector<4x8x128xf32>
        %221 = arith.addf %219, %220 : vector<4x8x128xf32>
        %222 = vector.extract_strided_slice %218 {offsets = [0, 2, 0], sizes = [4, 8, 128], strides = [1, 1, 1]} : vector<4x10x128xf32> to vector<4x8x128xf32>
        %223 = arith.addf %221, %222 : vector<4x8x128xf32>
        %c0_58 = arith.constant 0 : index
        %c3_59 = arith.constant 3 : index
        %224 = arith.index_cast %101 : i32 to index
        %c0_60 = arith.constant 0 : index
        %c0_61 = arith.constant 0 : index
        %225 = vector.load %arg6[%c0_58, %c3_59, %224, %c0_60, %c0_61] : memref<1x4x8x8x128xf32, #tpu.memory_space<vmem>>, vector<1x1x4x8x128xf32>
        %226 = vector.shape_cast %225 : vector<1x1x4x8x128xf32> to vector<4x8x128xf32>
        %227 = vector.shape_cast %223 : vector<4x8x128xf32> to vector<1x1x4x8x128xf32>
        tpu.vector_store %arg6[%c0_58, %c3_59, %224, %c0_60, %c0_61], %227 {strides = array<i32>} : memref<1x4x8x8x128xf32, #tpu.memory_space<vmem>>, vector<1x1x4x8x128xf32>,
      }
      %c2_i32_13 = arith.constant 2 : i32
    } else {
    }
    return
  }
  func.func @transform_0(%arg0: i32, %arg1: i32) -> (i32, i32, i32, i32, i32) {
    %c0_i32 = arith.constant 0 : i32
    %c0_i32_0 = arith.constant 0 : i32
    %c0_i32_1 = arith.constant 0 : i32
    %c0_i32_2 = arith.constant 0 : i32
    return %arg0, %arg1, %c0_i32, %c0_i32_0, %c0_i32_1 : i32, i32, i32, i32, i32
  }
  func.func @transform_1(%arg0: i32, %arg1: i32) -> (i32, i32, i32, i32, i32) {
    %c1_i32 = arith.constant 1 : i32
    %0 = arith.addi %arg1, %c1_i32 : i32
    %c2_i32 = arith.constant 2 : i32
    %1 = arith.muli %0, %c2_i32 : i32
    %c0_i32 = arith.constant 0 : i32
    %c0_i32_0 = arith.constant 0 : i32
    %c0_i32_1 = arith.constant 0 : i32
    %c0_i32_2 = arith.constant 0 : i32
    return %arg0, %1, %c0_i32, %c0_i32_0, %c0_i32_1 : i32, i32, i32, i32, i32
  }
  func.func @transform_2(%arg0: i32, %arg1: i32) -> (i32, i32, i32, i32) {
    %c0_i32 = arith.constant 0 : i32
    %c0_i32_0 = arith.constant 0 : i32
    %c0_i32_1 = arith.constant 0 : i32
    %c0_i32_2 = arith.constant 0 : i32
    %c0_i32_3 = arith.constant 0 : i32
    return %c0_i32, %c0_i32_0, %c0_i32_1, %c0_i32_2 : i32, i32, i32, i32
  }
  func.func @transform_3(%arg0: i32, %arg1: i32) -> (i32, i32) {
    %c0_i32 = arith.constant 0 : i32
    %c0_i32_0 = arith.constant 0 : i32
    %c0_i32_1 = arith.constant 0 : i32
    return %c0_i32, %c0_i32_0 : i32, i32
  }
  func.func @transform_4(%arg0: i32, %arg1: i32) -> (i32, i32, i32, i32, i32) {
    %c0_i32 = arith.constant 0 : i32
    %c0_i32_0 = arith.constant 0 : i32
    %c0_i32_1 = arith.constant 0 : i32
    %c0_i32_2 = arith.constant 0 : i32
    return %arg0, %arg1, %c0_i32, %c0_i32_0, %c0_i32_1 : i32, i32, i32, i32, i32
  }
}

</mosaic_0001>

<bundles_post_ra>
// kernel: tpu_custom_call.1
= control target key start
LH: loop header
LB: loop body
LE: loop exit
PB: predicated region body
PF: predicated region fallthrough
CT: control target
= control target key end

     0   :  { %s4366_s0 = inlined_call_operand.vmem [shape: f32[2,10,10,10,128], index: 0, kind: input, shape index: {}]   ;;  %s4367_s1 = inlined_call_operand.vmem [shape: f32[2,10,10,10,128], index: 1, kind: input, shape index: {}]   ;;  %s4368_s2 = inlined_call_operand.vmem [shape: f32[3,3,3,128], index: 2, kind: input, shape index: {}]   ;;  %s4369_s3 = inlined_call_operand.vmem [shape: f32[1,128], index: 3, kind: input, shape index: {}]   ;;  %s4370_s4 = inlined_call_operand.hbm [shape: f32[2,8,8,8,128], index: 4, kind: output, shape index: {}]  }
   0x1   :  { %4398 = sst [smem:[#allocation15_spill]] %s4368_s2 }
   0x2   :  { %4399 = sst [smem:[#allocation16_spill]] %s4369_s3 }
   0x3   :  { %9 = vsyncpa [#allocation3], 0 }
   0x4   :  { %11 = vsyncpa [#allocation3 + $0x1], 0  ;;  %s3103_s15 = smov 0   ;;  %s3105_s16 = smov 0  }
   0x5   :  { %s3107_s17 = smov 0   ;;  %s3109_s18 = smov 0  }
   0x6   :  { %s3111_s19 = smov 0   ;;  %s3113_s20 = smov 0  }
   0x7   :  { %s3115_s21 = smov 0   ;;  %s3117_s22 = smov 0  }
   0x8 LB: > { %s2521_s23 = sadd.s32 4294967295, %s3057_s22   ;;  %s2522_s24 = sadd.s32 4294967294, %s3057_s22   ;;  %s3057_s22 = sphi %s3117_s22, %s17_s22   ;;  %s3053_s21 = sphi %s3115_s21, %s4447_s21   ;;  %s3049_s20 = sphi %s3113_s20, %s4446_s20   ;;  %s3045_s19 = sphi %s3111_s19, %s4445_s19   ;;  %s3041_s18 = sphi %s3109_s18, %s4444_s18   ;;  %s3037_s17 = sphi %s3107_s17, %s4443_s17   ;;  %s3033_s16 = sphi %s3105_s16, %s4442_s16   ;;  %s3029_s15 = sphi %s3103_s15, %s4441_s15  }
   0x9   : > { %s26_s25 = sadd.s32 1, %s3049_s20  ;;  %s29_s26 = sadd.s32 1, %s3053_s21 }
   0xa   : > { %p27_p0 = scmp.ge.s32.totalorder %s26_s25, 2  ;;  %p150_p1 = scmp.ne.s32.totalorder %s3037_s17, %s3033_s16 }
   0xb   : > { %p151_p2 = scmp.eq.s32.totalorder %s2521_s23, 3  ;;  %p156_p5 = scmp.ne.s32.totalorder %s3033_s16, %s3029_s15 }
   0xc   : > { %s4449_s25 = smov (%p27_p0, %s26_s25), 0  ;;  %s4451_s26 = smov (!%p27_p0, %s29_s26), %s3053_s21 }
   0xd   : > { %4400 = sst [smem:[#allocation5_spill]] %s4449_s25  ;;  %s136_s27 = ssub.s32 %s3049_s20, %s4449_s25 }
   0xe   : > { %p3154_p3 = por %p151_p2, %p150_p1  ;;  %p31_p4 = scmp.ge.s32.totalorder %s4451_s26, 2 }
   0xf   : > { %p157_p6 = scmp.eq.s32.totalorder %s2522_s24, 3  ;;  %p2527_p7 = scmp.ge.s32.totalorder %s3057_s22, 1 }
  0x10   : > { %s4453_s26 = smov (%p31_p4, %s4451_s26), 0  ;;  %p225_p9 = scmp.lt.s32.totalorder %s3057_s22, 5 }
  0x11   : > { %4402 = sst [smem:[#allocation6_spill]] %s4453_s26  ;;  %p3163_p8 = por %p157_p6, %p156_p5 }
  0x12   : > { %s135_s30 = ssub.s32 %s3053_s21, %s4453_s26  ;;  %s140_s5 = sadd.s32 1, %s3037_s17 }
  0x13   : > { %s137_s6 = sor.u32 %s136_s27, %s135_s30  ;;  %p226_p10 = pnand %p2527_p7, %p225_p9 }
  0x14   : > { %p138_p11 = scmp.eq.s32.totalorder %s137_s6, 0 }
  0x15   : > { %229 = sbr.rel (%p226_p10) target bundleno = 430 (0x1ae), region = 36 }
  0x16   : > { %s3172_s7 = scalar_select %p138_p11, %s3037_s17, %s140_s5  }
  0x1a   : > { %s4371_s8 = sand.u32 1, %s3033_s16   ;;  %s2529_s9 = sshll.u32 %s3041_s18, 2 }
  0x1b   : > { %s4404_s2 = sld [smem:[#allocation15_spill]]  ;;  %s3188_s14 = sshll.u32 %s4371_s8, 8 }
  0x1c   : > { %p281_p12 = scmp.lt.s32.totalorder %s3045_s19, 1  ;;  %p283_p13 = scmp.lt.s32.totalorder %s2529_s9, 9 }
  0x1d   : > { %s4412_s3 = sld [smem:[#allocation16_spill]]  ;;  %s2840_s13 = sadd.s32 4, %s2529_s9 }
  0x1e   : > { %s282_s12 = scalar_select %p281_p12, %s3045_s19, 1 }
  0x1f   : > { %s284_s30 = scalar_select %p283_p13, %s2529_s9, 9 }
  0x20   : > { %s2842_s8 = smul.u32 200, %s282_s12  ;;  %p302_p0 = scmp.lt.s32.totalorder %s2840_s13, 9 }
  0x21   : > { %v3179_v0 = vld [vmem:[%s4404_s2] sm:$0x7]  ;;  %v3184_v1 = vld [vmem:[%s4404_s2 + $0x4] sm:$0x7]  ;;  %v3194_v2 = vld [vmem:[%s4404_s2 + $0x8] sm:$0x7] }
  0x22   : > { %4405 = vst [vmem:[#allocation7_spill] sm:$0xff] %v3179_v0  ;;  %4406 = vst [vmem:[#allocation8_spill] sm:$0xff] %v3184_v1  ;;  %v3199_v3 = vld [vmem:[%s4404_s2 + $0xc] sm:$0x7]  ;;  %v3204_v4 = vld [vmem:[%s4404_s2 + $0x10] sm:$0x7] }
  0x23   : > { %4407 = vst [vmem:[#allocation9_spill] sm:$0xff] %v3199_v3  ;;  %4408 = vst [vmem:[#allocation10_spill] sm:$0xff] %v3204_v4  ;;  %v3209_v5 = vld [vmem:[%s4404_s2 + $0x14] sm:$0x7]  ;;  %v3215_v6 = vld [vmem:[%s4404_s2 + $0x18] sm:$0x7] }
  0x24   : > { %4409 = vst [vmem:[#allocation11_spill] sm:$0xff] %v3215_v6  ;;  %v3220_v7 = vld [vmem:[%s4404_s2 + $0x1c] sm:$0x7]  ;;  %v3225_v8 = vld [vmem:[%s4404_s2 + $0x20] sm:$0x7]  ;;  %s2841_s23 = smul.u32 20, %s284_s30 }
  0x25   : > { %4410 = vst [vmem:[#allocation12_spill] sm:$0xff] %v3220_v7  ;;  %4411 = vst [vmem:[#allocation13_spill] sm:$0xff] %v3225_v8  ;;  %v3230_v9 = vld [vmem:[%s4412_s3] ss:$0 sm:$0xff]  ;;  %s3232_s26 = ssub.s32 6, %s2529_s9  ;;  %s4455_s13 = smov (!%p302_p0, %s2840_s13), 9 }
  0x26   : > { %4413 = vst [vmem:[#allocation14_spill] sm:$0xff] %v3230_v9  ;;  %s287_s24 = sadd.s32 %s2842_s8, %s2841_s23  ;;  %p331_p1 = scmp.lt.s32.totalorder %s3232_s26, 4 }
  0x27   : > { %s2530_s27 = sshll.u32 %s287_s24, 3  ;;  %p2536_p2 = scmp.lt.s32.totalorder %s3232_s26, 2 }
  0x28   : > { %s3238_s2 = scalar_lea.vmem %s4366_s0, %s2530_s27  ;;  %s2843_s10 = smul.u32 20, %s4455_s13 }
  0x29   : > { %s332_s12 = scalar_select %p331_p1, %s3232_s26, 4 }
  0x2a   : > { %s306_s30 = sadd.s32 %s2843_s10, %s2842_s8  ;;  %s3250_s23 = scalar_lea.vmem [#allocation2], %s3188_s14 }
  0x2b   : > { %s4457_s12 = smov (!%p2536_p2, %s332_s12), 2  ;;  %s2533_s9 = sshll.u32 %s306_s30, 3 }
  0x2c   : > { %s3247_s25 = scalar_lea.vmem %s4367_s1, %s2533_s9  ;;  %p2539_p4 = scmp.le.s32.totalorder %s4457_s12, 0 }
  0x2d   : > { %s3253_s24 = smov (!%p2539_p4), 0  }
  0x2e   : > { %2470 = sbr.rel (%p2539_p4) target bundleno = 168 (0xa8), region = 145 }
  0x33 LB: >> { %s3258_s13 = smov 0   ;;  %s3061_s24 = sphi %s3253_s24, %s338_s24  }
  0x34 LB: >>> { %v4414_v3 = vld [vmem:[#allocation9_spill] sm:$0xff]  ;;  %v4415_v4 = vld [vmem:[#allocation10_spill] sm:$0xff]  ;;  %v4416_v0 = vld [vmem:[#allocation7_spill] sm:$0xff]  ;;  %s349_s3 = smul.u32 160, %s3061_s24  ;;  %v360_v10 = vlaneseq  ;;  %s2814_s8 = sshll.u32 %s3065_s13, 6  ;;  %vm924_vm0 = vcmask 1046528   ;;  %s3065_s13 = sphi %s3258_s13, %s346_s13  }
  0x35   : >>> { %v4417_v1 = vld [vmem:[#allocation8_spill] sm:$0xff]  ;;  %v4418_v9 = vld [vmem:[#allocation14_spill] sm:$0xff]  ;;  %vm953_vm1 = vcmask 1045504   ;;  %s2821_s5 = sshll.u32 %s3065_s13, 5  ;;  %s2621_s6 = sshll.u32 %s3061_s24, 6 }
  0x36   : >>> { %v361_v11 = vshrl.u32 %v360_v10, 7  ;;  %s350_s14 = sadd.s32 %s2814_s8, %s349_s3  ;;  %s976_s10 = sadd.s32 %s2821_s5, %s2621_s6 }
  0x37   : >>> { %s3266_s27 = scalar_lea.vmem %s3238_s2, %s350_s14  ;;  %s977_s30 = scalar_lea.vmem %s3250_s23, %s976_s10 [#allocation2] }
  0x38   : >>> { %v3268_v12 = vsub.s32 0, %v361_v11  ;;  %v3270_v13 = vsub.s32 1, %v361_v11  ;;  %v3272_v14 = vsub.s32 2, %v361_v11  ;;  %v352_v15 = vld [vmem:[%s3266_s27] sm:$0xff]  ;;  %v3276_v16 = vld [vmem:[%s3266_s27 + $0x10] sm:$0xff]  ;;  %s346_s13 = sadd.s32 1, %s3065_s13  }
  0x39   : >>> { %v353_v17 = vld [vmem:[%s3266_s27 + $0x8] sm:$0x3]  ;;  %v3280_v18 = vld [vmem:[%s3266_s27 + $0x20] sm:$0xff]  ;;  %v355_v22 = vld [vmem:[%s3266_s27 + $0x18] sm:$0x3]  ;;  %p343_p5 = scmp.ge.s32.totalorder %s346_s13, 2  }
  0x3a   : >>> { %v363_v19 = vrot.slane %v4416_v0, %v3268_v12  ;;  %v375_v20 = vrot.slane %v4416_v0, %v3270_v13  ;;  %v395_v21 = vrot.slane %v4416_v0, %v3272_v14  ;;  %v3290_v23 = vld [vmem:[%s3266_s27 + $0x30] sm:$0xff]  ;;  %v427_v24 = vrot.slane %v4417_v1, %v3268_v12  ;;  %v357_v28 = vld [vmem:[%s3266_s27 + $0x28] sm:$0x3]  ;;  %v359_v33 = vld [vmem:[%s3266_s27 + $0x38] sm:$0x3]  ;;  %s338_s24 = sadd.s32 (%p343_p5), 1, %s3061_s24  }
  0x3b   : >>> { %v439_v25 = vrot.slane %v4417_v1, %v3270_v13  ;;  %v3298_v26 = vrot.slane %v4417_v1, %v3272_v14  ;;  %v3302_v27 = vrot.slane %v3194_v2, %v3268_v12  ;;  %v3312_v37 = vrot.slane %v3194_v2, %v3270_v13  ;;  %v2545_v50 = vld [vmem:[%s3266_s27 + $0x18] sm:$0x3]  ;;  %v2547_v51 = vld [vmem:[%s3266_s27 + $0x28] sm:$0x3]  ;;  %v3326_v56 = vld [vmem:[%s3266_s27 + $0x40] sm:$0xff]  ;;  %p337_p6 = scmp.ge.s32.totalorder (%p343_p5), %s338_s24, %s4457_s12 }
  0x3c   : >>> { %v364_v29 = vmul.f32 %v363_v19, %v352_v15  ;;  %v365_v30 = vmul.f32 %v363_v19, %v3276_v16  ;;  %v366_v31 = vmul.f32 %v363_v19, %v3280_v18  ;;  %v367_v32 = vmul.f32 %v363_v19, %v3290_v23  ;;  %v2549_v57 = vld [vmem:[%s3266_s27 + $0x38] sm:$0x3]  ;;  %v2551_v58 = vld [vmem:[%s3266_s27 + $0x48] sm:$0x3] }
  0x3d   : >>> { %v376_v34 = vmul.f32 %v375_v20, %v352_v15  ;;  %v377_v35 = vmul.f32 %v375_v20, %v353_v17  ;;  %v378_v36 = vmul.f32 %v375_v20, %v3276_v16  ;;  %v379_v41 = vmul.f32 %v375_v20, %v355_v22 }
  0x3e   : >>> { %v368_v38 = vadd.f32 %v4418_v9, %v364_v29  ;;  %v369_v39 = vadd.f32 %v4418_v9, %v365_v30  ;;  %v370_v40 = vadd.f32 %v4418_v9, %v366_v31  ;;  %v371_v42 = vadd.f32 %v4418_v9, %v367_v32 }
  0x3f   : >>> { %v380_v43 = vmul.f32 %v375_v20, %v3280_v18  ;;  %v381_v44 = vmul.f32 %v375_v20, %v357_v28  ;;  %v382_v45 = vmul.f32 %v375_v20, %v3290_v23  ;;  %v383_v46 = vmul.f32 %v375_v20, %v359_v33 }
  0x40   : >>> { %v396_v47 = vmul.f32 %v395_v21, %v352_v15  ;;  %v397_v48 = vmul.f32 %v395_v21, %v353_v17  ;;  %v398_v49 = vmul.f32 %v395_v21, %v3276_v16  ;;  %v399_v52 = vmul.f32 %v395_v21, %v355_v22 }
  0x41   : >>> { %v400_v53 = vmul.f32 %v395_v21, %v3280_v18  ;;  %v401_v54 = vmul.f32 %v395_v21, %v357_v28  ;;  %v402_v55 = vmul.f32 %v395_v21, %v3290_v23  ;;  %v428_v59 = vmul.f32 %v427_v24, %v3276_v16 }
  0x42   : >>> { %v429_v60 = vmul.f32 %v427_v24, %v3280_v18  ;;  %v430_v61 = vmul.f32 %v427_v24, %v3290_v23  ;;  %v431_v62 = vmul.f32 %v3326_v56, %v427_v24  ;;  %v440_v63 = vmul.f32 %v439_v25, %v3276_v16 }
  0x43   : >>> { %v441_v10 = vmul.f32 %v2545_v50, %v439_v25  ;;  %v442_v11 = vmul.f32 %v439_v25, %v3280_v18  ;;  %v443_v15 = vmul.f32 %v2547_v51, %v439_v25  ;;  %v403_v17 = vmul.f32 %v395_v21, %v359_v33 }
  0x44   : >>> { %v432_v19 = vadd.f32 %v428_v59, %v368_v38  ;;  %v433_v20 = vadd.f32 %v429_v60, %v369_v39  ;;  %v434_v22 = vadd.f32 %v430_v61, %v370_v40  ;;  %v444_v28 = vmul.f32 %v439_v25, %v3290_v23  ;;  %v2560_v59 = vld [vmem:[%s3266_s27 + $0x50] sm:$0xff]  ;;  %v2559_v60 = vld [vmem:[%s3266_s27 + $0x48] sm:$0x3]  ;;  %v2561_v61 = vld [vmem:[%s3266_s27 + $0x58] sm:$0x3] }
  0x45   : >>> { %v445_v29 = vmul.f32 %v2549_v57, %v439_v25  ;;  %v446_v30 = vmul.f32 %v3326_v56, %v439_v25  ;;  %v447_v31 = vmul.f32 %v2551_v58, %v439_v25  ;;  %v435_v32 = vadd.f32 %v431_v62, %v371_v42 }
  0x46   : >>> { %v448_v9 = vadd.f32 %v440_v63, %v376_v34  ;;  %v449_v1 = vadd.f32 %v441_v10, %v377_v35  ;;  %v450_v24 = vadd.f32 %v442_v11, %v378_v36  ;;  %v451_v0 = vadd.f32 %v443_v15, %v379_v41 }
  0x47   : >>> { %v452_v8 = vadd.f32 %v444_v28, %v380_v43  ;;  %v453_v7 = vadd.f32 %v445_v29, %v381_v44  ;;  %v454_v6 = vadd.f32 %v446_v30, %v382_v45  ;;  %v460_v21 = vmul.f32 %v3298_v26, %v3276_v16  ;;  %v2555_v43 = vld [vmem:[%s3266_s27 + $0x28] sm:$0x3]  ;;  %v2557_v44 = vld [vmem:[%s3266_s27 + $0x38] sm:$0x3] }
  0x48   : >>> { %v461_v33 = vmul.f32 %v2545_v50, %v3298_v26  ;;  %v462_v38 = vmul.f32 %v3298_v26, %v3280_v18  ;;  %v463_v25 = vmul.f32 %v2547_v51, %v3298_v26  ;;  %v455_v34 = vadd.f32 %v447_v31, %v383_v46 }
  0x49   : >>> { %v464_v35 = vmul.f32 %v3298_v26, %v3290_v23  ;;  %v465_v36 = vmul.f32 %v2549_v57, %v3298_v26  ;;  %v466_v39 = vmul.f32 %v3326_v56, %v3298_v26  ;;  %v467_v16 = vmul.f32 %v2551_v58, %v3298_v26 }
  0x4a   : >>> { %v468_v40 = vadd.f32 %v460_v21, %v396_v47  ;;  %v469_v41 = vadd.f32 %v461_v33, %v397_v48  ;;  %v470_v42 = vadd.f32 %v462_v38, %v398_v49  ;;  %v471_v45 = vadd.f32 %v463_v25, %v399_v52 }
  0x4b   : >>> { %v472_v50 = vadd.f32 %v464_v35, %v400_v53  ;;  %v473_v51 = vadd.f32 %v465_v36, %v401_v54  ;;  %v474_v46 = vadd.f32 %v466_v39, %v402_v55  ;;  %v492_v57 = vmul.f32 %v3302_v27, %v3280_v18  ;;  %v2563_v36 = vld [vmem:[%s3266_s27 + $0xa0] sm:$0xff] }
  0x4c   : >>> { %v493_v62 = vmul.f32 %v3302_v27, %v3290_v23  ;;  %v494_v26 = vmul.f32 %v3326_v56, %v3302_v27  ;;  %v495_v47 = vmul.f32 %v2560_v59, %v3302_v27  ;;  %v504_v48 = vmul.f32 %v3312_v37, %v3280_v18 }
  0x4d   : >>> { %v505_v49 = vmul.f32 %v2555_v43, %v3312_v37  ;;  %v506_v52 = vmul.f32 %v3312_v37, %v3290_v23  ;;  %v507_v53 = vmul.f32 %v2557_v44, %v3312_v37  ;;  %v475_v54 = vadd.f32 %v467_v16, %v403_v17 }
  0x4e   : >>> { %v496_v55 = vadd.f32 %v492_v57, %v432_v19  ;;  %v497_v58 = vadd.f32 %v493_v62, %v433_v20  ;;  %v498_v63 = vadd.f32 %v494_v26, %v434_v22  ;;  %v508_v10 = vmul.f32 %v3326_v56, %v3312_v37  ;;  %v2564_v62 = vld [vmem:[%s3266_s27 + $0xa8] sm:$0x3] }
  0x4f   : >>> { %v509_v11 = vmul.f32 %v2559_v60, %v3312_v37  ;;  %v510_v27 = vmul.f32 %v2560_v59, %v3312_v37  ;;  %v511_v15 = vmul.f32 %v2561_v61, %v3312_v37  ;;  %v499_v28 = vadd.f32 %v495_v47, %v435_v32 }
  0x50   : >>> { %v512_v29 = vadd.f32 %v504_v48, %v448_v9  ;;  %v513_v30 = vadd.f32 %v505_v49, %v449_v1  ;;  %v514_v31 = vadd.f32 %v506_v52, %v450_v24  ;;  %v515_v21 = vadd.f32 %v507_v53, %v451_v0  ;;  %v3410_v48 = vld [vmem:[%s3266_s27 + $0xd0] sm:$0xff]  ;;  %v2568_v49 = vld [vmem:[%s3266_s27 + $0xc8] sm:$0x3]  ;;  %v2570_v52 = vld [vmem:[%s3266_s27 + $0xd8] sm:$0x3] }
  0x51   : >>> { %v516_v33 = vadd.f32 %v508_v10, %v452_v8  ;;  %v517_v38 = vadd.f32 %v509_v11, %v453_v7  ;;  %v518_v17 = vadd.f32 %v510_v27, %v454_v6  ;;  %v519_v19 = vadd.f32 %v511_v15, %v455_v34 }
  0x52   : >>> { %v523_v20 = vrot.slane %v3194_v2, %v3272_v14  ;;  %v555_v22 = vrot.slane %v4414_v3, %v3268_v12  ;;  %v567_v25 = vrot.slane %v4414_v3, %v3270_v13  ;;  %v587_v9 = vrot.slane %v4414_v3, %v3272_v14 }
  0x53   : >>> { %v3383_v0 = vrot.slane %v4415_v4, %v3268_v12  ;;  %v3387_v1 = vrot.slane %v4415_v4, %v3270_v13  ;;  %v3391_v6 = vrot.slane %v4415_v4, %v3272_v14  ;;  %v3399_v39 = vrot.slane %v3209_v5, %v3268_v12 }
  0x54   : >>> { %v524_v7 = vmul.f32 %v523_v20, %v3280_v18  ;;  %v525_v8 = vmul.f32 %v2555_v43, %v523_v20  ;;  %v526_v37 = vmul.f32 %v523_v20, %v3290_v23  ;;  %v527_v32 = vmul.f32 %v2557_v44, %v523_v20  ;;  %v3403_v23 = vld [vmem:[%s3266_s27 + $0xb0] sm:$0xff]  ;;  %v2566_v44 = vld [vmem:[%s3266_s27 + $0xb8] sm:$0x3] }
  0x55   : >>> { %v528_v24 = vmul.f32 %v3326_v56, %v523_v20  ;;  %v529_v34 = vmul.f32 %v2559_v60, %v523_v20  ;;  %v530_v35 = vmul.f32 %v2560_v59, %v523_v20  ;;  %v531_v16 = vmul.f32 %v2561_v61, %v523_v20  ;;  %v3407_v59 = vld [vmem:[%s3266_s27 + $0xc0] sm:$0xff] }
  0x56   : >>> { %v532_v57 = vadd.f32 %v524_v7, %v468_v40  ;;  %v533_v18 = vadd.f32 %v525_v8, %v469_v41  ;;  %v534_v43 = vadd.f32 %v526_v37, %v470_v42  ;;  %v535_v56 = vadd.f32 %v527_v32, %v471_v45 }
  0x57   : >>> { %v536_v26 = vadd.f32 %v528_v24, %v472_v50  ;;  %v537_v60 = vadd.f32 %v529_v34, %v473_v51  ;;  %v538_v47 = vadd.f32 %v530_v35, %v474_v46  ;;  %v556_v53 = vmul.f32 %v2563_v36, %v555_v22 }
  0x58   : >>> { %v557_v61 = vmul.f32 %v3403_v23, %v555_v22  ;;  %v558_v40 = vmul.f32 %v3407_v59, %v555_v22  ;;  %v559_v41 = vmul.f32 %v3410_v48, %v555_v22  ;;  %v568_v42 = vmul.f32 %v2563_v36, %v567_v25 }
  0x59   : >>> { %v569_v10 = vmul.f32 %v2564_v62, %v567_v25  ;;  %v570_v45 = vmul.f32 %v3403_v23, %v567_v25  ;;  %v571_v50 = vmul.f32 %v2566_v44, %v567_v25  ;;  %v539_v51 = vadd.f32 %v531_v16, %v475_v54 }
  0x5a   : >>> { %v560_v46 = vadd.f32 %v556_v53, %v496_v55  ;;  %v561_v11 = vadd.f32 %v557_v61, %v497_v58  ;;  %v562_v27 = vadd.f32 %v558_v40, %v498_v63  ;;  %v572_v15 = vmul.f32 %v3407_v59, %v567_v25  ;;  %v3426_v40 = vld [vmem:[%s3266_s27 + $0xe0] sm:$0xff] }
  0x5b   : >>> { %v573_v20 = vmul.f32 %v2568_v49, %v567_v25  ;;  %v574_v7 = vmul.f32 %v3410_v48, %v567_v25  ;;  %v575_v8 = vmul.f32 %v2570_v52, %v567_v25  ;;  %v563_v37 = vadd.f32 %v559_v41, %v499_v28 }
  0x5c   : >>> { %v576_v32 = vadd.f32 %v568_v42, %v512_v29  ;;  %v577_v24 = vadd.f32 %v569_v10, %v513_v30  ;;  %v578_v34 = vadd.f32 %v570_v45, %v514_v31  ;;  %v579_v22 = vadd.f32 %v571_v50, %v515_v21 }
  0x5d   : >>> { %v580_v35 = vadd.f32 %v572_v15, %v516_v33  ;;  %v581_v4 = vadd.f32 %v573_v20, %v517_v38  ;;  %v582_v3 = vadd.f32 %v574_v7, %v518_v17  ;;  %v588_v54 = vmul.f32 %v2563_v36, %v587_v9  ;;  %v2574_v38 = vld [vmem:[%s3266_s27 + $0xb8] sm:$0x3]  ;;  %v2576_v17 = vld [vmem:[%s3266_s27 + $0xc8] sm:$0x3] }
  0x5e   : >>> { %v589_v55 = vmul.f32 %v2564_v62, %v587_v9  ;;  %v590_v58 = vmul.f32 %v3403_v23, %v587_v9  ;;  %v591_v63 = vmul.f32 %v2566_v44, %v587_v9  ;;  %v583_v16 = vadd.f32 %v575_v8, %v519_v19  ;;  %v2578_v44 = vld [vmem:[%s3266_s27 + $0xd8] sm:$0x3] }
  0x5f   : >>> { %v592_v25 = vmul.f32 %v3407_v59, %v587_v9  ;;  %v593_v28 = vmul.f32 %v2568_v49, %v587_v9  ;;  %v594_v29 = vmul.f32 %v3410_v48, %v587_v9  ;;  %v595_v30 = vmul.f32 %v2570_v52, %v587_v9 }
  0x60   : >>> { %v596_v31 = vadd.f32 %v588_v54, %v532_v57  ;;  %v597_v21 = vadd.f32 %v589_v55, %v533_v18  ;;  %v598_v33 = vadd.f32 %v590_v58, %v534_v43  ;;  %v599_v36 = vadd.f32 %v591_v63, %v535_v56  ;;  %v2580_v18 = vld [vmem:[%s3266_s27 + $0xe8] sm:$0x3] }
  0x61   : >>> { %v600_v62 = vadd.f32 %v592_v25, %v536_v26  ;;  %v601_v53 = vadd.f32 %v593_v28, %v537_v60  ;;  %v602_v61 = vadd.f32 %v594_v29, %v538_v47  ;;  %v618_v19 = vmul.f32 %v3403_v23, %v3383_v0 }
  0x62   : >>> { %v619_v49 = vmul.f32 %v3407_v59, %v3383_v0  ;;  %v620_v9 = vmul.f32 %v3410_v48, %v3383_v0  ;;  %v621_v57 = vmul.f32 %v3426_v40, %v3383_v0  ;;  %v630_v43 = vmul.f32 %v3403_v23, %v3387_v1 }
  0x63   : >>> { %v631_v56 = vmul.f32 %v2574_v38, %v3387_v1  ;;  %v632_v26 = vmul.f32 %v3407_v59, %v3387_v1  ;;  %v633_v60 = vmul.f32 %v2576_v17, %v3387_v1  ;;  %v603_v47 = vadd.f32 %v595_v30, %v539_v51  ;;  %v2584_v30 = vld [vmem:[%s3266_s27 + $0xc8] sm:$0x3] }
  0x64   : >>> { %v622_v52 = vadd.f32 %v618_v19, %v560_v46  ;;  %v623_v41 = vadd.f32 %v619_v49, %v561_v11  ;;  %v624_v42 = vadd.f32 %v620_v9, %v562_v27  ;;  %v625_v10 = vadd.f32 %v621_v57, %v563_v37 }
  0x65   : >>> { %v634_v45 = vmul.f32 %v3410_v48, %v3387_v1  ;;  %v635_v0 = vmul.f32 %v2578_v44, %v3387_v1  ;;  %v636_v50 = vmul.f32 %v3426_v40, %v3387_v1  ;;  %v637_v15 = vmul.f32 %v2580_v18, %v3387_v1 }
  0x66   : >>> { %v638_v20 = vadd.f32 %v630_v43, %v576_v32  ;;  %v639_v7 = vadd.f32 %v631_v56, %v577_v24  ;;  %v640_v8 = vadd.f32 %v632_v26, %v578_v34  ;;  %v641_v54 = vadd.f32 %v633_v60, %v579_v22 }
  0x67   : >>> { %v642_v55 = vadd.f32 %v634_v45, %v580_v35  ;;  %v643_v51 = vadd.f32 %v635_v0, %v581_v4  ;;  %v644_v46 = vadd.f32 %v636_v50, %v582_v3  ;;  %v650_v11 = vmul.f32 %v3403_v23, %v3391_v6 }
  0x68   : >>> { %v651_v27 = vmul.f32 %v2574_v38, %v3391_v6  ;;  %v652_v37 = vmul.f32 %v3407_v59, %v3391_v6  ;;  %v653_v58 = vmul.f32 %v2576_v17, %v3391_v6  ;;  %v654_v1 = vmul.f32 %v3410_v48, %v3391_v6  ;;  %v2586_v38 = vld [vmem:[%s3266_s27 + $0xd8] sm:$0x3]  ;;  %v2589_v17 = vld [vmem:[%s3266_s27 + $0xf0] sm:$0xff] }
  0x69   : >>> { %v655_v32 = vmul.f32 %v2578_v44, %v3391_v6  ;;  %v656_v3 = vmul.f32 %v3426_v40, %v3391_v6  ;;  %v657_v4 = vmul.f32 %v2580_v18, %v3391_v6  ;;  %v645_v23 = vadd.f32 %v637_v15, %v583_v16 }
  0x6a   : >>> { %v658_v24 = vadd.f32 %v650_v11, %v596_v31  ;;  %v659_v34 = vadd.f32 %v651_v27, %v597_v21  ;;  %v660_v22 = vadd.f32 %v652_v37, %v598_v33  ;;  %v661_v35 = vadd.f32 %v653_v58, %v599_v36  ;;  %v2588_v31 = vld [vmem:[%s3266_s27 + $0xe8] sm:$0x3]  ;;  %v2590_v21 = vld [vmem:[%s3266_s27 + $0xf8] sm:$0x3] }
  0x6b   : >>> { %v662_v63 = vadd.f32 %v654_v1, %v600_v62  ;;  %v663_v25 = vadd.f32 %v655_v32, %v601_v53  ;;  %v664_v28 = vadd.f32 %v656_v3, %v602_v61  ;;  %v3462_v29 = vadd.f32 %v657_v4, %v603_v47  ;;  %v4419_v53 = vld [vmem:[#allocation11_spill] sm:$0xff]  ;;  %v2593_v4 = vld [vmem:[%s3266_s27 + $0x148] sm:$0x3] }
  0x6c   : >>> { %v680_v44 = vmul.f32 %v3407_v59, %v3399_v39  ;;  %v681_v6 = vmul.f32 %v3410_v48, %v3399_v39  ;;  %v682_v16 = vmul.f32 %v3426_v40, %v3399_v39  ;;  %v683_v33 = vmul.f32 %v2589_v17, %v3399_v39 }
  0x6d   : >>> { %v691_v36 = vrot.slane %v3209_v5, %v3270_v13  ;;  %v711_v62 = vrot.slane %v3209_v5, %v3272_v14  ;;  %v743_v61 = vrot.slane %v4419_v53, %v3268_v12  ;;  %v755_v57 = vrot.slane %v4419_v53, %v3270_v13 }
  0x6e   : >>> { %v684_v19 = vadd.f32 %v680_v44, %v622_v52  ;;  %v685_v49 = vadd.f32 %v681_v6, %v623_v41  ;;  %v686_v9 = vadd.f32 %v682_v16, %v624_v42  ;;  %v687_v0 = vadd.f32 %v683_v33, %v625_v10  ;;  %v3497_v6 = vld [vmem:[%s3266_s27 + $0x160] sm:$0xff]  ;;  %v2597_v16 = vld [vmem:[%s3266_s27 + $0x168] sm:$0x3] }
  0x6f   : >>> { %v692_v18 = vmul.f32 %v3407_v59, %v691_v36  ;;  %v693_v43 = vmul.f32 %v2584_v30, %v691_v36  ;;  %v694_v39 = vmul.f32 %v3410_v48, %v691_v36  ;;  %v695_v56 = vmul.f32 %v2586_v38, %v691_v36 }
  0x70   : >>> { %v696_v26 = vmul.f32 %v3426_v40, %v691_v36  ;;  %v697_v60 = vmul.f32 %v2588_v31, %v691_v36  ;;  %v698_v47 = vmul.f32 %v2589_v17, %v691_v36  ;;  %v699_v45 = vmul.f32 %v2590_v21, %v691_v36 }
  0x71   : >>> { %v700_v50 = vadd.f32 %v692_v18, %v638_v20  ;;  %v701_v52 = vadd.f32 %v693_v43, %v639_v7  ;;  %v702_v41 = vadd.f32 %v694_v39, %v640_v8  ;;  %v703_v42 = vadd.f32 %v695_v56, %v641_v54  ;;  %v2592_v8 = vld [vmem:[%s3266_s27 + $0x140] sm:$0xff] }
  0x72   : >>> { %v704_v15 = vadd.f32 %v696_v26, %v642_v55  ;;  %v705_v11 = vadd.f32 %v697_v60, %v643_v51  ;;  %v706_v27 = vadd.f32 %v698_v47, %v644_v46  ;;  %v712_v37 = vmul.f32 %v3407_v59, %v711_v62  ;;  %v3493_v59 = vld [vmem:[%s3266_s27 + $0x150] sm:$0xff] }
  0x73   : >>> { %v713_v58 = vmul.f32 %v2584_v30, %v711_v62  ;;  %v714_v1 = vmul.f32 %v3410_v48, %v711_v62  ;;  %v715_v32 = vmul.f32 %v2586_v38, %v711_v62  ;;  %v707_v3 = vadd.f32 %v699_v45, %v645_v23  ;;  %v2595_v30 = vld [vmem:[%s3266_s27 + $0x158] sm:$0x3] }
  0x74   : >>> { %v716_v10 = vmul.f32 %v3426_v40, %v711_v62  ;;  %v717_v20 = vmul.f32 %v2588_v31, %v711_v62  ;;  %v718_v7 = vmul.f32 %v2589_v17, %v711_v62  ;;  %v719_v54 = vmul.f32 %v2590_v21, %v711_v62  ;;  %v3500_v40 = vld [vmem:[%s3266_s27 + $0x170] sm:$0xff]  ;;  %v2599_v17 = vld [vmem:[%s3266_s27 + $0x178] sm:$0x3] }
  0x75   : >>> { %v720_v55 = vadd.f32 %v712_v37, %v658_v24  ;;  %v721_v51 = vadd.f32 %v713_v58, %v659_v34  ;;  %v722_v46 = vadd.f32 %v714_v1, %v660_v22  ;;  %v723_v48 = vadd.f32 %v715_v32, %v661_v35 }
  0x76   : >>> { %v724_v38 = vadd.f32 %v716_v10, %v662_v63  ;;  %v725_v23 = vadd.f32 %v717_v20, %v663_v25  ;;  %v726_v44 = vadd.f32 %v718_v7, %v664_v28  ;;  %v744_v31 = vmul.f32 %v2592_v8, %v743_v61 }
  0x77   : >>> { %v745_v21 = vmul.f32 %v3493_v59, %v743_v61  ;;  %v746_v24 = vmul.f32 %v3497_v6, %v743_v61  ;;  %v747_v34 = vmul.f32 %v3500_v40, %v743_v61  ;;  %v756_v22 = vmul.f32 %v2592_v8, %v755_v57 }
  0x78   : >>> { %v757_v33 = vmul.f32 %v2593_v4, %v755_v57  ;;  %v758_v35 = vmul.f32 %v3493_v59, %v755_v57  ;;  %v759_v63 = vmul.f32 %v2595_v30, %v755_v57  ;;  %v727_v25 = vadd.f32 %v719_v54, %v3462_v29 }
  0x79   : >>> { %v748_v28 = vadd.f32 %v744_v31, %v684_v19  ;;  %v749_v36 = vadd.f32 %v745_v21, %v685_v49  ;;  %v750_v62 = vadd.f32 %v746_v24, %v686_v9  ;;  %v760_v18 = vmul.f32 %v3497_v6, %v755_v57  ;;  %v4420_v19 = vld [vmem:[#allocation12_spill] sm:$0xff] }
  0x7a   : >>> { %v761_v43 = vmul.f32 %v2597_v16, %v755_v57  ;;  %v762_v39 = vmul.f32 %v3500_v40, %v755_v57  ;;  %v763_v56 = vmul.f32 %v2599_v17, %v755_v57  ;;  %v751_v26 = vadd.f32 %v747_v34, %v687_v0  ;;  %v4421_v0 = vld [vmem:[#allocation13_spill] sm:$0xff]  ;;  %v2605_v31 = vld [vmem:[%s3266_s27 + $0x168] sm:$0x3]  ;;  %v3537_v34 = vld [vmem:[%s3266_s27 + $0x180] sm:$0xff] }
  0x7b   : >>> { %v764_v60 = vadd.f32 %v756_v22, %v700_v50  ;;  %v765_v47 = vadd.f32 %v757_v33, %v701_v52  ;;  %v766_v61 = vadd.f32 %v758_v35, %v702_v41  ;;  %v767_v45 = vadd.f32 %v759_v63, %v703_v42  ;;  %v2609_v22 = vld [vmem:[%s3266_s27 + $0x188] sm:$0x3] }
  0x7c   : >>> { %v768_v37 = vadd.f32 %v760_v18, %v704_v15  ;;  %v769_v58 = vadd.f32 %v761_v43, %v705_v11  ;;  %v770_v1 = vadd.f32 %v762_v39, %v706_v27  ;;  %v771_v32 = vadd.f32 %v763_v56, %v707_v3 }
  0x7d   : >>> { %v775_v29 = vrot.slane %v4419_v53, %v3272_v14  ;;  %v805_v49 = vrot.slane %v4420_v19, %v3268_v12  ;;  %v817_v9 = vrot.slane %v4420_v19, %v3270_v13  ;;  %v837_v57 = vrot.slane %v4420_v19, %v3272_v14 }
  0x7e   : >>> { %v3521_v50 = vrot.slane %v4421_v0, %v3268_v12  ;;  %v3525_v52 = vrot.slane %v4421_v0, %v3270_v13  ;;  %v3529_v53 = vrot.slane %v4421_v0, %v3272_v14  ;;  %v2603_v14 = vld [vmem:[%s3266_s27 + $0x158] sm:$0x3] }
  0x7f   : >>> { %v776_v41 = vmul.f32 %v2592_v8, %v775_v29  ;;  %v777_v42 = vmul.f32 %v2593_v4, %v775_v29  ;;  %v778_v15 = vmul.f32 %v3493_v59, %v775_v29  ;;  %v779_v11 = vmul.f32 %v2595_v30, %v775_v29  ;;  %v2607_v30 = vld [vmem:[%s3266_s27 + $0x178] sm:$0x3] }
  0x80   : >>> { %v780_v27 = vmul.f32 %v3497_v6, %v775_v29  ;;  %v781_v12 = vmul.f32 %v2597_v16, %v775_v29  ;;  %v782_v3 = vmul.f32 %v3500_v40, %v775_v29  ;;  %v783_v10 = vmul.f32 %v2599_v17, %v775_v29 }
  0x81   : >>> { %v784_v13 = vadd.f32 %v776_v41, %v720_v55  ;;  %v785_v20 = vadd.f32 %v777_v42, %v721_v51  ;;  %v786_v7 = vadd.f32 %v778_v15, %v722_v46  ;;  %v787_v54 = vadd.f32 %v779_v11, %v723_v48  ;;  %v2615_v11 = vld [vmem:[%s3266_s27 + $0x178] sm:$0x3] }
  0x82   : >>> { %v788_v8 = vadd.f32 %v780_v27, %v724_v38  ;;  %v789_v4 = vadd.f32 %v781_v12, %v725_v23  ;;  %v790_v21 = vadd.f32 %v782_v3, %v726_v44  ;;  %v791_v24 = vadd.f32 %v783_v10, %v727_v25  ;;  %v2618_v10 = vld [vmem:[%s3266_s27 + $0x190] sm:$0xff] }
  0x83   : >>> { %v806_v33 = vmul.f32 %v3493_v59, %v805_v49  ;;  %v807_v16 = vmul.f32 %v3497_v6, %v805_v49  ;;  %v808_v17 = vmul.f32 %v3500_v40, %v805_v49  ;;  %v809_v55 = vmul.f32 %v3537_v34, %v805_v49 }
  0x84   : >>> { %v818_v51 = vmul.f32 %v3493_v59, %v817_v9  ;;  %v819_v46 = vmul.f32 %v2603_v14, %v817_v9  ;;  %v820_v48 = vmul.f32 %v3497_v6, %v817_v9  ;;  %v821_v38 = vmul.f32 %v2605_v31, %v817_v9 }
  0x85   : >>> { %v810_v23 = vadd.f32 %v806_v33, %v748_v28  ;;  %v811_v44 = vadd.f32 %v807_v16, %v749_v36  ;;  %v812_v35 = vadd.f32 %v808_v17, %v750_v62  ;;  %v813_v63 = vadd.f32 %v809_v55, %v751_v26 }
  0x86   : >>> { %v822_v25 = vmul.f32 %v3500_v40, %v817_v9  ;;  %v823_v18 = vmul.f32 %v2607_v30, %v817_v9  ;;  %v824_v43 = vmul.f32 %v3537_v34, %v817_v9  ;;  %v825_v39 = vmul.f32 %v2609_v22, %v817_v9 }
  0x87   : >>> { %v826_v56 = vadd.f32 %v818_v51, %v764_v60  ;;  %v827_v29 = vadd.f32 %v819_v46, %v765_v47  ;;  %v828_v19 = vadd.f32 %v820_v48, %v766_v61  ;;  %v829_v49 = vadd.f32 %v821_v38, %v767_v45 }
  0x88   : >>> { %v830_v0 = vadd.f32 %v822_v25, %v768_v37  ;;  %v831_v41 = vadd.f32 %v823_v18, %v769_v58  ;;  %v832_v42 = vadd.f32 %v824_v43, %v770_v1  ;;  %v833_v15 = vadd.f32 %v825_v39, %v771_v32  ;;  %v2613_v32 = vld [vmem:[%s3266_s27 + $0x168] sm:$0x3] }
  0x89   : >>> { %v838_v28 = vmul.f32 %v3493_v59, %v837_v57  ;;  %v839_v36 = vmul.f32 %v2603_v14, %v837_v57  ;;  %v840_v62 = vmul.f32 %v3497_v6, %v837_v57  ;;  %v841_v26 = vmul.f32 %v2605_v31, %v837_v57  ;;  %v2617_v14 = vld [vmem:[%s3266_s27 + $0x188] sm:$0x3]  ;;  %v2619_v31 = vld [vmem:[%s3266_s27 + $0x198] sm:$0x3] }
  0x8a   : >>> { %v842_v9 = vmul.f32 %v3500_v40, %v837_v57  ;;  %v843_v60 = vmul.f32 %v2607_v30, %v837_v57  ;;  %v844_v47 = vmul.f32 %v3537_v34, %v837_v57  ;;  %v845_v61 = vmul.f32 %v2609_v22, %v837_v57 }
  0x8b   : >>> { %v846_v45 = vadd.f32 %v838_v28, %v784_v13  ;;  %v847_v37 = vadd.f32 %v839_v36, %v785_v20  ;;  %v848_v58 = vadd.f32 %v840_v62, %v786_v7  ;;  %v849_v1 = vadd.f32 %v841_v26, %v787_v54 }
  0x8c   : >>> { %v850_v59 = vadd.f32 %v842_v9, %v788_v8  ;;  %v851_v27 = vadd.f32 %v843_v60, %v789_v4  ;;  %v852_v12 = vadd.f32 %v844_v47, %v790_v21  ;;  %v853_v3 = vadd.f32 %v845_v61, %v791_v24 }
  0x8d   : >>> { %v868_v33 = vmul.f32 %v3497_v6, %v3521_v50  ;;  %v869_v30 = vmul.f32 %v3500_v40, %v3521_v50  ;;  %v870_v57 = vmul.f32 %v3537_v34, %v3521_v50  ;;  %v871_v13 = vmul.f32 %v2618_v10, %v3521_v50 }
  0x8e   : >>> { %v880_v20 = vmul.f32 %v3497_v6, %v3525_v52  ;;  %v881_v7 = vmul.f32 %v2613_v32, %v3525_v52  ;;  %v882_v54 = vmul.f32 %v3500_v40, %v3525_v52  ;;  %v883_v8 = vmul.f32 %v2615_v11, %v3525_v52 }
  0x8f   : >>> { %v872_v4 = vadd.f32 %v868_v33, %v810_v23  ;;  %v873_v21 = vadd.f32 %v869_v30, %v811_v44  ;;  %v874_v24 = vadd.f32 %v870_v57, %v812_v35  ;;  %v875_v22 = vadd.f32 %v871_v13, %v813_v63 }
  0x90   : >>> { %v884_v16 = vmul.f32 %v3537_v34, %v3525_v52  ;;  %v885_v50 = vmul.f32 %v2617_v14, %v3525_v52  ;;  %v886_v17 = vmul.f32 %v2618_v10, %v3525_v52  ;;  %v887_v55 = vmul.f32 %v2619_v31, %v3525_v52 }
  0x91   : >>> { %v888_v51 = vadd.f32 %v880_v20, %v826_v56  ;;  %v889_v46 = vadd.f32 %v881_v7, %v827_v29  ;;  %v890_v48 = vadd.f32 %v882_v54, %v828_v19  ;;  %v891_v38 = vadd.f32 %v883_v8, %v829_v49 }
  0x92   : >>> { %v892_v25 = vadd.f32 %v884_v16, %v830_v0  ;;  %v893_v18 = vadd.f32 %v885_v50, %v831_v41  ;;  %v894_v23 = vadd.f32 %v886_v17, %v832_v42  ;;  %v895_v44 = vadd.f32 %v887_v55, %v833_v15 }
  0x93   : >>> { %v900_v35 = vmul.f32 %v3497_v6, %v3529_v53  ;;  %v901_v63 = vmul.f32 %v2613_v32, %v3529_v53  ;;  %v902_v43 = vmul.f32 %v3500_v40, %v3529_v53  ;;  %v903_v52 = vmul.f32 %v2615_v11, %v3529_v53 }
  0x94   : >>> { %v904_v39 = vmul.f32 %v3537_v34, %v3529_v53  ;;  %v905_v56 = vmul.f32 %v2617_v14, %v3529_v53  ;;  %v906_v29 = vmul.f32 %v2618_v10, %v3529_v53  ;;  %v907_v19 = vmul.f32 %v2619_v31, %v3529_v53 }
  0x95   : >>> { %v908_v49 = vadd.f32 %v900_v35, %v846_v45  ;;  %v909_v6 = vadd.f32 %v901_v63, %v847_v37  ;;  %v910_v0 = vadd.f32 %v902_v43, %v848_v58  ;;  %v911_v41 = vadd.f32 %v903_v52, %v849_v1 }
  0x96   : >>> { %v912_v42 = vadd.f32 %v904_v39, %v850_v59  ;;  %v913_v15 = vadd.f32 %v905_v56, %v851_v27  ;;  %v914_v28 = vadd.f32 %v906_v29, %v852_v12  ;;  %v915_v36 = vadd.f32 %v907_v19, %v853_v3 }
  0x97   : >>> { %v925_v40 = vrot.slane %v888_v51, 1  ;;  %v926_v62 = vrot.slane %v889_v46, 1  ;;  %v928_v26 = vrot.slane %v890_v48, 1  ;;  %v929_v34 = vrot.slane %v891_v38, 1 }
  0x98   : >>> { %v931_v9 = vrot.slane %v892_v25, 1  ;;  %v932_v60 = vrot.slane %v893_v18, 1  ;;  %v934_v47 = vrot.slane %v894_v23, 1  ;;  %v935_v61 = vrot.slane %v895_v44, 1 }
  0x99   : >>> { %v927_v53 = vsel %vm924_vm0, %v925_v40, %v926_v62  ;;  %v930_v45 = vsel %vm924_vm0, %v928_v26, %v929_v34  ;;  %v954_v37 = vrot.slane %v908_v49, 2  ;;  %v955_v58 = vrot.slane %v909_v6, 2 }
  0x9a   : >>> { %v933_v1 = vsel %vm924_vm0, %v931_v9, %v932_v60  ;;  %v936_v32 = vsel %vm924_vm0, %v934_v47, %v935_v61  ;;  %v941_v11 = vadd.f32 %v927_v53, %v872_v4  ;;  %v942_v59 = vadd.f32 %v930_v45, %v873_v21 }
  0x9b   : >>> { %v943_v27 = vadd.f32 %v933_v1, %v874_v24  ;;  %v944_v12 = vadd.f32 %v936_v32, %v875_v22  ;;  %v956_v3 = vsel %vm953_vm1, %v954_v37, %v955_v58  ;;  %v957_v10 = vrot.slane %v910_v0, 2 }
  0x9c   : >>> { %v958_v14 = vrot.slane %v911_v41, 2  ;;  %v960_v31 = vrot.slane %v912_v42, 2  ;;  %v961_v33 = vrot.slane %v913_v15, 2  ;;  %v963_v30 = vrot.slane %v914_v28, 2 }
  0x9d   : >>> { %v964_v57 = vrot.slane %v915_v36, 2  ;;  %v970_v13 = vadd.f32 %v956_v3, %v941_v11 }
  0x9e   : >>> { %v959_v20 = vsel %vm953_vm1, %v957_v10, %v958_v14  ;;  %v962_v7 = vsel %vm953_vm1, %v960_v31, %v961_v33  ;;  %345 = sbr.rel (!%p343_p5) target bundleno = 52 (0x34), region = 140 }
  0x9f   : >>> { %v965_v54 = vsel %vm953_vm1, %v963_v30, %v964_v57  ;;  %v971_v8 = vadd.f32 %v959_v20, %v942_v59  ;;  %v972_v4 = vadd.f32 %v962_v7, %v943_v27  ;;  %978 = vst [vmem:[%s977_s30] sm:$0xff] %v970_v13 }
  0xa0   : >>> { %v973_v21 = vadd.f32 %v965_v54, %v944_v12 }
  0xa1   : >>> { %979 = vst [vmem:[%s977_s30 + $0x8] sm:$0xff] %v971_v8  ;;  %980 = vst [vmem:[%s977_s30 + $0x10] sm:$0xff] %v972_v4 }
  0xa2   : >>> { %981 = vst [vmem:[%s977_s30 + $0x18] sm:$0xff] %v973_v21 }
  0xa3   : > { %340 = sbr.rel (!%p337_p6) target bundleno = 51 (0x33), region = 151 }
  0xa8 PF: > { %p2622_p7 = scmp.gt.s32.totalorder %s3232_s26, 2 }
  0xa9   : > { %s3606_s9 = smov (%p2622_p7), 0  }
  0xaa   : > { %985 = sbr.rel (!%p2622_p7) target bundleno = 286 (0x11e), region = 54 }
  0xaf LB: >> { %v1004_v24 = vlaneseq  ;;  %s2823_s11 = sshll.u32 %s3069_s9, 6  ;;  %v4422_v25 = vld [vmem:[#allocation7_spill] sm:$0xff]  ;;  %v4423_v44 = vld [vmem:[#allocation8_spill] sm:$0xff]  ;;  %v4424_v40 = vld [vmem:[#allocation14_spill] sm:$0xff]  ;;  %vm1561_vm2 = vcmask 1046528   ;;  %vm1590_vm3 = vcmask 1045504   ;;  %s3069_s9 = sphi %s3606_s9, %s991_s9  }
  0xb0   : >> { %s3615_s24 = scalar_lea.vmem %s3238_s2, %s2823_s11  ;;  %s3839_s12 = scalar_lea.vmem %s3247_s25, %s2823_s11 }
  0xb1   : >> { %v1005_v22 = vshrl.u32 %v1004_v24, 7  ;;  %v2629_v17 = vld [vmem:[%s3615_s24 + $0x140] sm:$0xff]  ;;  %v3623_v55 = vld [vmem:[%s3615_s24 + $0x150] sm:$0xff]  ;;  %v2630_v48 = vld [vmem:[%s3615_s24 + $0x148] sm:$0x3]  ;;  %s2706_s13 = sshll.u32 %s3069_s9, 5 }
  0xb2   : >> { %v3626_v51 = vld [vmem:[%s3615_s24 + $0x160] sm:$0xff]  ;;  %v3632_v38 = vld [vmem:[%s3615_s24 + $0x170] sm:$0xff]  ;;  %v2632_v63 = vld [vmem:[%s3615_s24 + $0x158] sm:$0x3]  ;;  %s2415_s3 = scalar_lea.vmem %s3250_s23, %s2706_s13 [#allocation2]  ;;  %s991_s9 = sadd.s32 1, %s3069_s9  }
  0xb3   : >> { %v3617_v16 = vsub.s32 0, %v1005_v22  ;;  %v3619_v50 = vsub.s32 1, %v1005_v22  ;;  %v3628_v46 = vsub.s32 2, %v1005_v22  ;;  %v2634_v29 = vld [vmem:[%s3615_s24 + $0x168] sm:$0x3]  ;;  %v3675_v10 = vld [vmem:[%s3615_s24 + $0x180] sm:$0xff] }
  0xb4   : >> { %v2636_v41 = vld [vmem:[%s3615_s24 + $0x178] sm:$0x3]  ;;  %v2642_v11 = vld [vmem:[%s3615_s24 + $0x168] sm:$0x3]  ;;  %p988_p9 = scmp.ge.s32.totalorder %s991_s9, 2  }
  0xb5   : >> { %v1007_v18 = vrot.slane %v4422_v25, %v3617_v16  ;;  %v1019_v23 = vrot.slane %v4422_v25, %v3619_v50  ;;  %v1071_v35 = vrot.slane %v4423_v44, %v3617_v16  ;;  %v1039_v43 = vrot.slane %v4422_v25, %v3628_v46  ;;  %v2640_v32 = vld [vmem:[%s3615_s24 + $0x158] sm:$0x3]  ;;  %v2646_v31 = vld [vmem:[%s3615_s24 + $0x188] sm:$0x3] }
  0xb6   : >> { %v1083_v52 = vrot.slane %v4423_v44, %v3619_v50  ;;  %v3647_v39 = vrot.slane %v4423_v44, %v3628_v46  ;;  %v3651_v56 = vrot.slane %v3194_v2, %v3617_v16  ;;  %v3661_v36 = vrot.slane %v3194_v2, %v3619_v50  ;;  %v2644_v14 = vld [vmem:[%s3615_s24 + $0x178] sm:$0x3] }
  0xb7   : >> { %v1008_v19 = vmul.f32 %v2629_v17, %v1007_v18  ;;  %v1009_v49 = vmul.f32 %v3623_v55, %v1007_v18  ;;  %v1010_v6 = vmul.f32 %v3626_v51, %v1007_v18  ;;  %v1011_v0 = vmul.f32 %v3632_v38, %v1007_v18 }
  0xb8   : >> { %v1020_v42 = vmul.f32 %v2629_v17, %v1019_v23  ;;  %v1021_v15 = vmul.f32 %v2630_v48, %v1019_v23  ;;  %v1022_v28 = vmul.f32 %v3623_v55, %v1019_v23  ;;  %v1023_v9 = vmul.f32 %v2632_v63, %v1019_v23 }
  0xb9   : >> { %v1012_v62 = vadd.f32 %v4424_v40, %v1008_v19  ;;  %v1013_v26 = vadd.f32 %v4424_v40, %v1009_v49  ;;  %v1014_v34 = vadd.f32 %v4424_v40, %v1010_v6  ;;  %v1015_v60 = vadd.f32 %v4424_v40, %v1011_v0 }
  0xba   : >> { %v1024_v47 = vmul.f32 %v3626_v51, %v1019_v23  ;;  %v1025_v61 = vmul.f32 %v2634_v29, %v1019_v23  ;;  %v1026_v53 = vmul.f32 %v3632_v38, %v1019_v23  ;;  %v1027_v45 = vmul.f32 %v2636_v41, %v1019_v23 }
  0xbb   : >> { %v1040_v37 = vmul.f32 %v2629_v17, %v1039_v43  ;;  %v1041_v58 = vmul.f32 %v2630_v48, %v1039_v43  ;;  %v1042_v1 = vmul.f32 %v3623_v55, %v1039_v43  ;;  %v1043_v59 = vmul.f32 %v2632_v63, %v1039_v43 }
  0xbc   : >> { %v1044_v27 = vmul.f32 %v3626_v51, %v1039_v43  ;;  %v1045_v12 = vmul.f32 %v2634_v29, %v1039_v43  ;;  %v1046_v3 = vmul.f32 %v3632_v38, %v1039_v43  ;;  %v1072_v33 = vmul.f32 %v3623_v55, %v1071_v35 }
  0xbd   : >> { %v1073_v30 = vmul.f32 %v3626_v51, %v1071_v35  ;;  %v1074_v57 = vmul.f32 %v3632_v38, %v1071_v35  ;;  %v1075_v13 = vmul.f32 %v3675_v10, %v1071_v35  ;;  %v1084_v20 = vmul.f32 %v3623_v55, %v1083_v52 }
  0xbe   : >> { %v1085_v7 = vmul.f32 %v2640_v32, %v1083_v52  ;;  %v1086_v54 = vmul.f32 %v3626_v51, %v1083_v52  ;;  %v1087_v8 = vmul.f32 %v2642_v11, %v1083_v52  ;;  %v1047_v4 = vmul.f32 %v2636_v41, %v1039_v43 }
  0xbf   : >> { %v1076_v21 = vadd.f32 %v1072_v33, %v1012_v62  ;;  %v1077_v24 = vadd.f32 %v1073_v30, %v1013_v26  ;;  %v1078_v22 = vadd.f32 %v1074_v57, %v1014_v34  ;;  %v1088_v17 = vmul.f32 %v3632_v38, %v1083_v52  ;;  %v2656_v33 = vld [vmem:[%s3615_s24 + $0x198] sm:$0x3] }
  0xc0   : >> { %v1089_v48 = vmul.f32 %v2644_v14, %v1083_v52  ;;  %v1090_v25 = vmul.f32 %v3675_v10, %v1083_v52  ;;  %v1091_v18 = vmul.f32 %v2646_v31, %v1083_v52  ;;  %v1079_v23 = vadd.f32 %v1075_v13, %v1015_v60  ;;  %v2652_v60 = vld [vmem:[%s3615_s24 + $0x178] sm:$0x3] }
  0xc1   : >> { %v1092_v44 = vadd.f32 %v1084_v20, %v1020_v42  ;;  %v1093_v63 = vadd.f32 %v1085_v7, %v1021_v15  ;;  %v1094_v35 = vadd.f32 %v1086_v54, %v1022_v28  ;;  %v1095_v29 = vadd.f32 %v1087_v8, %v1023_v9  ;;  %v2650_v9 = vld [vmem:[%s3615_s24 + $0x168] sm:$0x3] }
  0xc2   : >> { %v1096_v19 = vadd.f32 %v1088_v17, %v1024_v47  ;;  %v1097_v49 = vadd.f32 %v1089_v48, %v1025_v61  ;;  %v1098_v6 = vadd.f32 %v1090_v25, %v1026_v53  ;;  %v1104_v43 = vmul.f32 %v3623_v55, %v3647_v39 }
  0xc3   : >> { %v1105_v0 = vmul.f32 %v2640_v32, %v3647_v39  ;;  %v1106_v41 = vmul.f32 %v3626_v51, %v3647_v39  ;;  %v1107_v52 = vmul.f32 %v2642_v11, %v3647_v39  ;;  %v1099_v42 = vadd.f32 %v1091_v18, %v1027_v45  ;;  %v2655_v32 = vld [vmem:[%s3615_s24 + $0x190] sm:$0xff]  ;;  %v2654_v11 = vld [vmem:[%s3615_s24 + $0x188] sm:$0x3] }
  0xc4   : >> { %v1108_v15 = vmul.f32 %v3632_v38, %v3647_v39  ;;  %v1109_v28 = vmul.f32 %v2644_v14, %v3647_v39  ;;  %v1110_v40 = vmul.f32 %v3675_v10, %v3647_v39  ;;  %v1111_v55 = vmul.f32 %v2646_v31, %v3647_v39 }
  0xc5   : >> { %v1112_v62 = vadd.f32 %v1104_v43, %v1040_v37  ;;  %v1113_v26 = vadd.f32 %v1105_v0, %v1041_v58  ;;  %v1114_v34 = vadd.f32 %v1106_v41, %v1042_v1  ;;  %v1115_v47 = vadd.f32 %v1107_v52, %v1043_v59 }
  0xc6   : >> { %v1116_v61 = vadd.f32 %v1108_v15, %v1044_v27  ;;  %v1117_v53 = vadd.f32 %v1109_v28, %v1045_v12  ;;  %v1118_v45 = vadd.f32 %v1110_v40, %v1046_v3  ;;  %v1136_v14 = vmul.f32 %v3626_v51, %v3651_v56  ;;  %v2658_v28 = vld [vmem:[%s3615_s24 + $0x1e0] sm:$0xff] }
  0xc7   : >> { %v1137_v30 = vmul.f32 %v3632_v38, %v3651_v56  ;;  %v1138_v39 = vmul.f32 %v3675_v10, %v3651_v56  ;;  %v1139_v37 = vmul.f32 %v2655_v32, %v3651_v56  ;;  %v1148_v58 = vmul.f32 %v3626_v51, %v3661_v36 }
  0xc8   : >> { %v1149_v1 = vmul.f32 %v2650_v9, %v3661_v36  ;;  %v1150_v59 = vmul.f32 %v3632_v38, %v3661_v36  ;;  %v1151_v27 = vmul.f32 %v2652_v60, %v3661_v36  ;;  %v1119_v12 = vadd.f32 %v1111_v55, %v1047_v4 }
  0xc9   : >> { %v1140_v3 = vadd.f32 %v1136_v14, %v1076_v21  ;;  %v1141_v31 = vadd.f32 %v1137_v30, %v1077_v24  ;;  %v1142_v57 = vadd.f32 %v1138_v39, %v1078_v22  ;;  %v1152_v13 = vmul.f32 %v3675_v10, %v3661_v36  ;;  %v4425_v22 = vld [vmem:[#allocation9_spill] sm:$0xff]  ;;  %v2659_v30 = vld [vmem:[%s3615_s24 + $0x1e8] sm:$0x3] }
  0xca   : >> { %v1153_v20 = vmul.f32 %v2654_v11, %v3661_v36  ;;  %v1154_v56 = vmul.f32 %v2655_v32, %v3661_v36  ;;  %v1155_v7 = vmul.f32 %v2656_v33, %v3661_v36  ;;  %v1143_v54 = vadd.f32 %v1139_v37, %v1079_v23  ;;  %v4426_v23 = vld [vmem:[#allocation10_spill] sm:$0xff] }
  0xcb   : >> { %v1156_v8 = vadd.f32 %v1148_v58, %v1092_v44  ;;  %v1157_v17 = vadd.f32 %v1149_v1, %v1093_v63  ;;  %v1158_v48 = vadd.f32 %v1150_v59, %v1094_v35  ;;  %v1159_v25 = vadd.f32 %v1151_v27, %v1095_v29  ;;  %v3759_v58 = vld [vmem:[%s3615_s24 + $0x210] sm:$0xff]  ;;  %v2663_v1 = vld [vmem:[%s3615_s24 + $0x208] sm:$0x3]  ;;  %v2665_v59 = vld [vmem:[%s3615_s24 + $0x218] sm:$0x3] }
  0xcc   : >> { %v1160_v18 = vadd.f32 %v1152_v13, %v1096_v19  ;;  %v1161_v43 = vadd.f32 %v1153_v20, %v1097_v49  ;;  %v1162_v4 = vadd.f32 %v1154_v56, %v1098_v6  ;;  %v1163_v21 = vadd.f32 %v1155_v7, %v1099_v42 }
  0xcd   : >> { %v1167_v24 = vrot.slane %v3194_v2, %v3628_v46  ;;  %v1197_v0 = vrot.slane %v4425_v22, %v3617_v16  ;;  %v1209_v41 = vrot.slane %v4425_v22, %v3619_v50  ;;  %v1229_v36 = vrot.slane %v4425_v22, %v3628_v46 }
  0xce   : >> { %v3732_v44 = vrot.slane %v4426_v23, %v3617_v16  ;;  %v3736_v63 = vrot.slane %v4426_v23, %v3619_v50  ;;  %v3740_v35 = vrot.slane %v4426_v23, %v3628_v46  ;;  %v3748_v40 = vrot.slane %v3209_v5, %v3617_v16 }
  0xcf   : >> { %v1168_v29 = vmul.f32 %v3626_v51, %v1167_v24  ;;  %v1169_v19 = vmul.f32 %v2650_v9, %v1167_v24  ;;  %v1170_v49 = vmul.f32 %v3632_v38, %v1167_v24  ;;  %v1171_v6 = vmul.f32 %v2652_v60, %v1167_v24  ;;  %v3752_v38 = vld [vmem:[%s3615_s24 + $0x1f0] sm:$0xff]  ;;  %v2661_v60 = vld [vmem:[%s3615_s24 + $0x1f8] sm:$0x3] }
  0xd0   : >> { %v1172_v52 = vmul.f32 %v3675_v10, %v1167_v24  ;;  %v1173_v42 = vmul.f32 %v2654_v11, %v1167_v24  ;;  %v1174_v15 = vmul.f32 %v2655_v32, %v1167_v24  ;;  %v1175_v55 = vmul.f32 %v2656_v33, %v1167_v24  ;;  %v3756_v32 = vld [vmem:[%s3615_s24 + $0x200] sm:$0xff] }
  0xd1   : >> { %v1176_v14 = vadd.f32 %v1168_v29, %v1112_v62  ;;  %v1177_v51 = vadd.f32 %v1169_v19, %v1113_v26  ;;  %v1178_v9 = vadd.f32 %v1170_v49, %v1114_v34  ;;  %v1179_v10 = vadd.f32 %v1171_v6, %v1115_v47 }
  0xd2   : >> { %v1180_v39 = vadd.f32 %v1172_v52, %v1116_v61  ;;  %v1181_v11 = vadd.f32 %v1173_v42, %v1117_v53  ;;  %v1182_v37 = vadd.f32 %v1174_v15, %v1118_v45  ;;  %v1198_v27 = vmul.f32 %v2658_v28, %v1197_v0 }
  0xd3   : >> { %v1199_v33 = vmul.f32 %v3752_v38, %v1197_v0  ;;  %v1200_v62 = vmul.f32 %v3756_v32, %v1197_v0  ;;  %v1201_v26 = vmul.f32 %v3759_v58, %v1197_v0  ;;  %v1210_v34 = vmul.f32 %v2658_v28, %v1209_v41 }
  0xd4   : >> { %v1211_v13 = vmul.f32 %v2659_v30, %v1209_v41  ;;  %v1212_v47 = vmul.f32 %v3752_v38, %v1209_v41  ;;  %v1213_v61 = vmul.f32 %v2661_v60, %v1209_v41  ;;  %v1183_v53 = vadd.f32 %v1175_v55, %v1119_v12 }
  0xd5   : >> { %v1202_v45 = vadd.f32 %v1198_v27, %v1140_v3  ;;  %v1203_v20 = vadd.f32 %v1199_v33, %v1141_v31  ;;  %v1204_v56 = vadd.f32 %v1200_v62, %v1142_v57  ;;  %v1214_v7 = vmul.f32 %v3756_v32, %v1209_v41  ;;  %v3775_v62 = vld [vmem:[%s3615_s24 + $0x220] sm:$0xff] }
  0xd6   : >> { %v1215_v24 = vmul.f32 %v2663_v1, %v1209_v41  ;;  %v1216_v22 = vmul.f32 %v3759_v58, %v1209_v41  ;;  %v1217_v23 = vmul.f32 %v2665_v59, %v1209_v41  ;;  %v1205_v29 = vadd.f32 %v1201_v26, %v1143_v54 }
  0xd7   : >> { %v1218_v19 = vadd.f32 %v1210_v34, %v1156_v8  ;;  %v1219_v49 = vadd.f32 %v1211_v13, %v1157_v17  ;;  %v1220_v6 = vadd.f32 %v1212_v47, %v1158_v48  ;;  %v1221_v0 = vadd.f32 %v1213_v61, %v1159_v25 }
  0xd8   : >> { %v1222_v52 = vadd.f32 %v1214_v7, %v1160_v18  ;;  %v1223_v42 = vadd.f32 %v1215_v24, %v1161_v43  ;;  %v1224_v15 = vadd.f32 %v1216_v22, %v1162_v4  ;;  %v1230_v12 = vmul.f32 %v2658_v28, %v1229_v36  ;;  %v2669_v43 = vld [vmem:[%s3615_s24 + $0x1f8] sm:$0x3]  ;;  %v2671_v4 = vld [vmem:[%s3615_s24 + $0x208] sm:$0x3] }
  0xd9   : >> { %v1231_v3 = vmul.f32 %v2659_v30, %v1229_v36  ;;  %v1232_v31 = vmul.f32 %v3752_v38, %v1229_v36  ;;  %v1233_v57 = vmul.f32 %v2661_v60, %v1229_v36  ;;  %v1225_v55 = vadd.f32 %v1217_v23, %v1163_v21  ;;  %v2673_v60 = vld [vmem:[%s3615_s24 + $0x218] sm:$0x3] }
  0xda   : >> { %v1234_v41 = vmul.f32 %v3756_v32, %v1229_v36  ;;  %v1235_v54 = vmul.f32 %v2663_v1, %v1229_v36  ;;  %v1236_v8 = vmul.f32 %v3759_v58, %v1229_v36  ;;  %v1237_v17 = vmul.f32 %v2665_v59, %v1229_v36 }
  0xdb   : >> { %v1238_v48 = vadd.f32 %v1230_v12, %v1176_v14  ;;  %v1239_v25 = vadd.f32 %v1231_v3, %v1177_v51  ;;  %v1240_v18 = vadd.f32 %v1232_v31, %v1178_v9  ;;  %v1241_v28 = vadd.f32 %v1233_v57, %v1179_v10  ;;  %v2675_v51 = vld [vmem:[%s3615_s24 + $0x228] sm:$0x3] }
  0xdc   : >> { %v1242_v30 = vadd.f32 %v1234_v41, %v1180_v39  ;;  %v1243_v27 = vadd.f32 %v1235_v54, %v1181_v11  ;;  %v1244_v33 = vadd.f32 %v1236_v8, %v1182_v37  ;;  %v1260_v21 = vmul.f32 %v3752_v38, %v3732_v44 }
  0xdd   : >> { %v1261_v1 = vmul.f32 %v3756_v32, %v3732_v44  ;;  %v1262_v36 = vmul.f32 %v3759_v58, %v3732_v44  ;;  %v1263_v14 = vmul.f32 %v3775_v62, %v3732_v44  ;;  %v1272_v9 = vmul.f32 %v3752_v38, %v3736_v63 }
  0xde   : >> { %v1273_v10 = vmul.f32 %v2669_v43, %v3736_v63  ;;  %v1274_v39 = vmul.f32 %v3756_v32, %v3736_v63  ;;  %v1275_v11 = vmul.f32 %v2671_v4, %v3736_v63  ;;  %v1245_v37 = vadd.f32 %v1237_v17, %v1183_v53  ;;  %v2679_v17 = vld [vmem:[%s3615_s24 + $0x208] sm:$0x3] }
  0xdf   : >> { %v1264_v59 = vadd.f32 %v1260_v21, %v1202_v45  ;;  %v1265_v26 = vadd.f32 %v1261_v1, %v1203_v20  ;;  %v1266_v34 = vadd.f32 %v1262_v36, %v1204_v56  ;;  %v1267_v13 = vadd.f32 %v1263_v14, %v1205_v29 }
  0xe0   : >> { %v1276_v47 = vmul.f32 %v3759_v58, %v3736_v63  ;;  %v1277_v44 = vmul.f32 %v2673_v60, %v3736_v63  ;;  %v1278_v61 = vmul.f32 %v3775_v62, %v3736_v63  ;;  %v1279_v7 = vmul.f32 %v2675_v51, %v3736_v63 }
  0xe1   : >> { %v1280_v24 = vadd.f32 %v1272_v9, %v1218_v19  ;;  %v1281_v22 = vadd.f32 %v1273_v10, %v1219_v49  ;;  %v1282_v23 = vadd.f32 %v1274_v39, %v1220_v6  ;;  %v1283_v12 = vadd.f32 %v1275_v11, %v1221_v0 }
  0xe2   : >> { %v1284_v3 = vadd.f32 %v1276_v47, %v1222_v52  ;;  %v1285_v53 = vadd.f32 %v1277_v44, %v1223_v42  ;;  %v1286_v45 = vadd.f32 %v1278_v61, %v1224_v15  ;;  %v1292_v20 = vmul.f32 %v3752_v38, %v3740_v35 }
  0xe3   : >> { %v1293_v56 = vmul.f32 %v2669_v43, %v3740_v35  ;;  %v1294_v29 = vmul.f32 %v3756_v32, %v3740_v35  ;;  %v1295_v31 = vmul.f32 %v2671_v4, %v3740_v35  ;;  %v1296_v63 = vmul.f32 %v3759_v58, %v3740_v35  ;;  %v2681_v43 = vld [vmem:[%s3615_s24 + $0x218] sm:$0x3]  ;;  %v2684_v4 = vld [vmem:[%s3615_s24 + $0x230] sm:$0xff] }
  0xe4   : >> { %v1297_v19 = vmul.f32 %v2673_v60, %v3740_v35  ;;  %v1298_v49 = vmul.f32 %v3775_v62, %v3740_v35  ;;  %v1299_v38 = vmul.f32 %v2675_v51, %v3740_v35  ;;  %v1287_v6 = vadd.f32 %v1279_v7, %v1225_v55 }
  0xe5   : >> { %v1300_v0 = vadd.f32 %v1292_v20, %v1238_v48  ;;  %v1301_v52 = vadd.f32 %v1293_v56, %v1239_v25  ;;  %v1302_v42 = vadd.f32 %v1294_v29, %v1240_v18  ;;  %v1303_v15 = vadd.f32 %v1295_v31, %v1241_v28  ;;  %v2683_v48 = vld [vmem:[%s3615_s24 + $0x228] sm:$0x3]  ;;  %v2685_v25 = vld [vmem:[%s3615_s24 + $0x238] sm:$0x3] }
  0xe6   : >> { %v1304_v57 = vadd.f32 %v1296_v63, %v1242_v30  ;;  %v1305_v41 = vadd.f32 %v1297_v19, %v1243_v27  ;;  %v1306_v54 = vadd.f32 %v1298_v49, %v1244_v33  ;;  %v3811_v8 = vadd.f32 %v1299_v38, %v1245_v37  ;;  %v4427_v27 = vld [vmem:[#allocation11_spill] sm:$0xff]  ;;  %v1372_v38 = vld [vmem:[%s3839_s12 + $0x8] sm:$0x3] }
  0xe7   : >> { %v1322_v60 = vmul.f32 %v3756_v32, %v3748_v40  ;;  %v1323_v35 = vmul.f32 %v3759_v58, %v3748_v40  ;;  %v1324_v55 = vmul.f32 %v3775_v62, %v3748_v40  ;;  %v1325_v18 = vmul.f32 %v2684_v4, %v3748_v40 }
  0xe8   : >> { %v1333_v28 = vrot.slane %v3209_v5, %v3619_v50  ;;  %v1353_v30 = vrot.slane %v3209_v5, %v3628_v46  ;;  %v1382_v33 = vrot.slane %v4427_v27, %v3617_v16  ;;  %v1394_v14 = vrot.slane %v4427_v27, %v3619_v50 }
  0xe9   : >> { %v1326_v21 = vadd.f32 %v1322_v60, %v1264_v59  ;;  %v1327_v1 = vadd.f32 %v1323_v35, %v1265_v26  ;;  %v1328_v36 = vadd.f32 %v1324_v55, %v1266_v34  ;;  %v1329_v44 = vadd.f32 %v1325_v18, %v1267_v13  ;;  %v3851_v35 = vld [vmem:[%s3839_s12 + $0x20] sm:$0xff]  ;;  %v1376_v55 = vld [vmem:[%s3839_s12 + $0x28] sm:$0x3] }
  0xea   : >> { %v1334_v51 = vmul.f32 %v3756_v32, %v1333_v28  ;;  %v1335_v40 = vmul.f32 %v2679_v17, %v1333_v28  ;;  %v1336_v9 = vmul.f32 %v3759_v58, %v1333_v28  ;;  %v1337_v10 = vmul.f32 %v2681_v43, %v1333_v28 }
  0xeb   : >> { %v1338_v39 = vmul.f32 %v3775_v62, %v1333_v28  ;;  %v1339_v11 = vmul.f32 %v2683_v48, %v1333_v28  ;;  %v1340_v37 = vmul.f32 %v2684_v4, %v1333_v28  ;;  %v1341_v47 = vmul.f32 %v2685_v25, %v1333_v28 }
  0xec   : >> { %v1342_v59 = vadd.f32 %v1334_v51, %v1280_v24  ;;  %v1343_v61 = vadd.f32 %v1335_v40, %v1281_v22  ;;  %v1344_v7 = vadd.f32 %v1336_v9, %v1282_v23  ;;  %v1345_v26 = vadd.f32 %v1337_v10, %v1283_v12 }
  0xed   : >> { %v1346_v34 = vadd.f32 %v1338_v39, %v1284_v3  ;;  %v1347_v20 = vadd.f32 %v1339_v11, %v1285_v53  ;;  %v1348_v56 = vadd.f32 %v1340_v37, %v1286_v45  ;;  %v1354_v29 = vmul.f32 %v3756_v32, %v1353_v30  ;;  %v1371_v3 = vld [vmem:[%s3839_s12] sm:$0xff]  ;;  %v3847_v32 = vld [vmem:[%s3839_s12 + $0x10] sm:$0xff] }
  0xee   : >> { %v1355_v31 = vmul.f32 %v2679_v17, %v1353_v30  ;;  %v1356_v63 = vmul.f32 %v3759_v58, %v1353_v30  ;;  %v1357_v13 = vmul.f32 %v2681_v43, %v1353_v30  ;;  %v1349_v24 = vadd.f32 %v1341_v47, %v1287_v6  ;;  %v1374_v17 = vld [vmem:[%s3839_s12 + $0x18] sm:$0x3] }
  0xef   : >> { %v1358_v22 = vmul.f32 %v3775_v62, %v1353_v30  ;;  %v1359_v23 = vmul.f32 %v2683_v48, %v1353_v30  ;;  %v1360_v12 = vmul.f32 %v2684_v4, %v1353_v30  ;;  %v1361_v53 = vmul.f32 %v2685_v25, %v1353_v30  ;;  %v3854_v62 = vld [vmem:[%s3839_s12 + $0x30] sm:$0xff]  ;;  %v1378_v4 = vld [vmem:[%s3839_s12 + $0x38] sm:$0x3] }
  0xf0   : >> { %v1362_v19 = vadd.f32 %v1354_v29, %v1300_v0  ;;  %v1363_v45 = vadd.f32 %v1355_v31, %v1301_v52  ;;  %v1364_v49 = vadd.f32 %v1356_v63, %v1302_v42  ;;  %v1365_v58 = vadd.f32 %v1357_v13, %v1303_v15 }
  0xf1   : >> { %v1366_v43 = vadd.f32 %v1358_v22, %v1304_v57  ;;  %v1367_v6 = vadd.f32 %v1359_v23, %v1305_v41  ;;  %v1368_v60 = vadd.f32 %v1360_v12, %v1306_v54  ;;  %v1383_v48 = vmul.f32 %v1382_v33, %v1371_v3 }
  0xf2   : >> { %v1384_v25 = vmul.f32 %v1382_v33, %v3847_v32  ;;  %v1385_v0 = vmul.f32 %v1382_v33, %v3851_v35  ;;  %v1386_v52 = vmul.f32 %v1382_v33, %v3854_v62  ;;  %v1395_v42 = vmul.f32 %v1394_v14, %v1371_v3 }
  0xf3   : >> { %v1396_v18 = vmul.f32 %v1394_v14, %v1372_v38  ;;  %v1397_v15 = vmul.f32 %v1394_v14, %v3847_v32  ;;  %v1398_v57 = vmul.f32 %v1394_v14, %v1374_v17  ;;  %v1369_v41 = vadd.f32 %v1361_v53, %v3811_v8 }
  0xf4   : >> { %v1387_v54 = vadd.f32 %v1383_v48, %v1326_v21  ;;  %v1388_v28 = vadd.f32 %v1384_v25, %v1327_v1  ;;  %v1389_v30 = vadd.f32 %v1385_v0, %v1328_v36  ;;  %v1399_v51 = vmul.f32 %v1394_v14, %v3851_v35  ;;  %v4428_v21 = vld [vmem:[#allocation12_spill] sm:$0xff] }
  0xf5   : >> { %v1400_v40 = vmul.f32 %v1394_v14, %v1376_v55  ;;  %v1401_v9 = vmul.f32 %v1394_v14, %v3854_v62  ;;  %v1402_v10 = vmul.f32 %v1394_v14, %v1378_v4  ;;  %v1390_v39 = vadd.f32 %v1386_v52, %v1329_v44  ;;  %v4429_v44 = vld [vmem:[#allocation13_spill] sm:$0xff]  ;;  %v2691_v48 = vld [vmem:[%s3839_s12 + $0x28] sm:$0x3]  ;;  %v3891_v52 = vld [vmem:[%s3839_s12 + $0x40] sm:$0xff] }
  0xf6   : >> { %v1403_v11 = vadd.f32 %v1395_v42, %v1342_v59  ;;  %v1404_v37 = vadd.f32 %v1396_v18, %v1343_v61  ;;  %v1405_v33 = vadd.f32 %v1397_v15, %v1344_v7  ;;  %v1406_v47 = vadd.f32 %v1398_v57, %v1345_v26  ;;  %v2695_v42 = vld [vmem:[%s3839_s12 + $0x48] sm:$0x3] }
  0xf7   : >> { %v1407_v29 = vadd.f32 %v1399_v51, %v1346_v34  ;;  %v1408_v31 = vadd.f32 %v1400_v40, %v1347_v20  ;;  %v1409_v63 = vadd.f32 %v1401_v9, %v1348_v56  ;;  %v1410_v13 = vadd.f32 %v1402_v10, %v1349_v24 }
  0xf8   : >> { %v1414_v8 = vrot.slane %v4427_v27, %v3628_v46  ;;  %v1443_v1 = vrot.slane %v4428_v21, %v3617_v16  ;;  %v1455_v36 = vrot.slane %v4428_v21, %v3619_v50  ;;  %v1475_v14 = vrot.slane %v4428_v21, %v3628_v46 }
  0xf9   : >> { %v3875_v59 = vrot.slane %v4429_v44, %v3617_v16  ;;  %v3879_v61 = vrot.slane %v4429_v44, %v3619_v50  ;;  %v3883_v27 = vrot.slane %v4429_v44, %v3628_v46  ;;  %v2689_v46 = vld [vmem:[%s3839_s12 + $0x18] sm:$0x3] }
  0xfa   : >> { %v1415_v7 = vmul.f32 %v1414_v8, %v1371_v3  ;;  %v1416_v26 = vmul.f32 %v1414_v8, %v1372_v38  ;;  %v1417_v34 = vmul.f32 %v1414_v8, %v3847_v32  ;;  %v1418_v20 = vmul.f32 %v1414_v8, %v1374_v17  ;;  %v2693_v17 = vld [vmem:[%s3839_s12 + $0x38] sm:$0x3] }
  0xfb   : >> { %v1419_v56 = vmul.f32 %v1414_v8, %v3851_v35  ;;  %v1420_v16 = vmul.f32 %v1414_v8, %v1376_v55  ;;  %v1421_v24 = vmul.f32 %v1414_v8, %v3854_v62  ;;  %v1422_v22 = vmul.f32 %v1414_v8, %v1378_v4 }
  0xfc   : >> { %v1423_v50 = vadd.f32 %v1415_v7, %v1362_v19  ;;  %v1424_v23 = vadd.f32 %v1416_v26, %v1363_v45  ;;  %v1425_v12 = vadd.f32 %v1417_v34, %v1364_v49  ;;  %v1426_v53 = vadd.f32 %v1418_v20, %v1365_v58  ;;  %v2701_v20 = vld [vmem:[%s3839_s12 + $0x38] sm:$0x3] }
  0xfd   : >> { %v1427_v3 = vadd.f32 %v1419_v56, %v1366_v43  ;;  %v1428_v38 = vadd.f32 %v1420_v16, %v1367_v6  ;;  %v1429_v25 = vadd.f32 %v1421_v24, %v1368_v60  ;;  %v1430_v0 = vadd.f32 %v1422_v22, %v1369_v41  ;;  %v2704_v22 = vld [vmem:[%s3839_s12 + $0x50] sm:$0xff] }
  0xfe   : >> { %v1444_v18 = vmul.f32 %v1443_v1, %v3847_v32  ;;  %v1445_v55 = vmul.f32 %v1443_v1, %v3851_v35  ;;  %v1446_v4 = vmul.f32 %v1443_v1, %v3854_v62  ;;  %v1447_v19 = vmul.f32 %v3891_v52, %v1443_v1 }
  0xff   : >> { %v1456_v45 = vmul.f32 %v1455_v36, %v3847_v32  ;;  %v1457_v49 = vmul.f32 %v2689_v46, %v1455_v36  ;;  %v1458_v58 = vmul.f32 %v1455_v36, %v3851_v35  ;;  %v1459_v43 = vmul.f32 %v2691_v48, %v1455_v36 }
 0x100   : >> { %v1448_v6 = vadd.f32 %v1444_v18, %v1387_v54  ;;  %v1449_v60 = vadd.f32 %v1445_v55, %v1388_v28  ;;  %v1450_v15 = vadd.f32 %v1446_v4, %v1389_v30  ;;  %v1451_v57 = vadd.f32 %v1447_v19, %v1390_v39 }
 0x101   : >> { %v1460_v41 = vmul.f32 %v1455_v36, %v3854_v62  ;;  %v1461_v51 = vmul.f32 %v2693_v17, %v1455_v36  ;;  %v1462_v40 = vmul.f32 %v3891_v52, %v1455_v36  ;;  %v1463_v9 = vmul.f32 %v2695_v42, %v1455_v36 }
 0x102   : >> { %v1464_v10 = vadd.f32 %v1456_v45, %v1403_v11  ;;  %v1465_v8 = vadd.f32 %v1457_v49, %v1404_v37  ;;  %v1466_v21 = vadd.f32 %v1458_v58, %v1405_v33  ;;  %v1467_v1 = vadd.f32 %v1459_v43, %v1406_v47 }
 0x103   : >> { %v1468_v44 = vadd.f32 %v1460_v41, %v1407_v29  ;;  %v1469_v7 = vadd.f32 %v1461_v51, %v1408_v31  ;;  %v1470_v26 = vadd.f32 %v1462_v40, %v1409_v63  ;;  %v1471_v34 = vadd.f32 %v1463_v9, %v1410_v13  ;;  %v2699_v13 = vld [vmem:[%s3839_s12 + $0x28] sm:$0x3] }
 0x104   : >> { %v1476_v54 = vmul.f32 %v1475_v14, %v3847_v32  ;;  %v1477_v28 = vmul.f32 %v2689_v46, %v1475_v14  ;;  %v1478_v30 = vmul.f32 %v1475_v14, %v3851_v35  ;;  %v1479_v39 = vmul.f32 %v2691_v48, %v1475_v14  ;;  %v2703_v46 = vld [vmem:[%s3839_s12 + $0x48] sm:$0x3]  ;;  %v2705_v48 = vld [vmem:[%s3839_s12 + $0x58] sm:$0x3] }
 0x105   : >> { %v1480_v36 = vmul.f32 %v1475_v14, %v3854_v62  ;;  %v1481_v11 = vmul.f32 %v2693_v17, %v1475_v14  ;;  %v1482_v37 = vmul.f32 %v3891_v52, %v1475_v14  ;;  %v1483_v33 = vmul.f32 %v2695_v42, %v1475_v14 }
 0x106   : >> { %v1484_v47 = vadd.f32 %v1476_v54, %v1423_v50  ;;  %v1485_v29 = vadd.f32 %v1477_v28, %v1424_v23  ;;  %v1486_v31 = vadd.f32 %v1478_v30, %v1425_v12  ;;  %v1487_v63 = vadd.f32 %v1479_v39, %v1426_v53 }
 0x107   : >> { %v1488_v32 = vadd.f32 %v1480_v36, %v1427_v3  ;;  %v1489_v56 = vadd.f32 %v1481_v11, %v1428_v38  ;;  %v1490_v16 = vadd.f32 %v1482_v37, %v1429_v25  ;;  %v1491_v24 = vadd.f32 %v1483_v33, %v1430_v0 }
 0x108   : >> { %v1505_v18 = vmul.f32 %v3875_v59, %v3851_v35  ;;  %v1506_v17 = vmul.f32 %v3875_v59, %v3854_v62  ;;  %v1507_v14 = vmul.f32 %v3891_v52, %v3875_v59  ;;  %v1508_v50 = vmul.f32 %v2704_v22, %v3875_v59 }
 0x109   : >> { %v1517_v23 = vmul.f32 %v3879_v61, %v3851_v35  ;;  %v1518_v12 = vmul.f32 %v2699_v13, %v3879_v61  ;;  %v1519_v53 = vmul.f32 %v3879_v61, %v3854_v62  ;;  %v1520_v3 = vmul.f32 %v2701_v20, %v3879_v61 }
 0x10a   : >> { %v1509_v38 = vadd.f32 %v1505_v18, %v1448_v6  ;;  %v1510_v25 = vadd.f32 %v1506_v17, %v1449_v60  ;;  %v1511_v0 = vadd.f32 %v1507_v14, %v1450_v15  ;;  %v1512_v42 = vadd.f32 %v1508_v50, %v1451_v57 }
 0x10b   : >> { %v1521_v55 = vmul.f32 %v3891_v52, %v3879_v61  ;;  %v1522_v59 = vmul.f32 %v2703_v46, %v3879_v61  ;;  %v1523_v4 = vmul.f32 %v2704_v22, %v3879_v61  ;;  %v1524_v19 = vmul.f32 %v2705_v48, %v3879_v61 }
 0x10c   : >> { %v1525_v45 = vadd.f32 %v1517_v23, %v1464_v10  ;;  %v1526_v49 = vadd.f32 %v1518_v12, %v1465_v8  ;;  %v1527_v58 = vadd.f32 %v1519_v53, %v1466_v21  ;;  %v1528_v43 = vadd.f32 %v1520_v3, %v1467_v1 }
 0x10d   : >> { %v1529_v41 = vadd.f32 %v1521_v55, %v1468_v44  ;;  %v1530_v51 = vadd.f32 %v1522_v59, %v1469_v7  ;;  %v1531_v6 = vadd.f32 %v1523_v4, %v1470_v26  ;;  %v1532_v60 = vadd.f32 %v1524_v19, %v1471_v34 }
 0x10e   : >> { %v1537_v15 = vmul.f32 %v3883_v27, %v3851_v35  ;;  %v1538_v57 = vmul.f32 %v2699_v13, %v3883_v27  ;;  %v1539_v40 = vmul.f32 %v3883_v27, %v3854_v62  ;;  %v1540_v9 = vmul.f32 %v2701_v20, %v3883_v27 }
 0x10f   : >> { %v1541_v61 = vmul.f32 %v3891_v52, %v3883_v27  ;;  %v1542_v10 = vmul.f32 %v2703_v46, %v3883_v27  ;;  %v1543_v8 = vmul.f32 %v2704_v22, %v3883_v27  ;;  %v1544_v21 = vmul.f32 %v2705_v48, %v3883_v27 }
 0x110   : >> { %v1545_v1 = vadd.f32 %v1537_v15, %v1484_v47  ;;  %v1546_v44 = vadd.f32 %v1538_v57, %v1485_v29  ;;  %v1547_v7 = vadd.f32 %v1539_v40, %v1486_v31  ;;  %v1548_v35 = vadd.f32 %v1540_v9, %v1487_v63 }
 0x111   : >> { %v1549_v26 = vadd.f32 %v1541_v61, %v1488_v32  ;;  %v1550_v34 = vadd.f32 %v1542_v10, %v1489_v56  ;;  %v1551_v54 = vadd.f32 %v1543_v8, %v1490_v16  ;;  %v1552_v62 = vadd.f32 %v1544_v21, %v1491_v24 }
 0x112   : >> { %v1562_v28 = vrot.slane %v1525_v45, 1  ;;  %v1563_v30 = vrot.slane %v1526_v49, 1  ;;  %v1565_v39 = vrot.slane %v1527_v58, 1  ;;  %v1566_v36 = vrot.slane %v1528_v43, 1 }
 0x113   : >> { %v1568_v52 = vrot.slane %v1529_v41, 1  ;;  %v1569_v11 = vrot.slane %v1530_v51, 1  ;;  %v1571_v37 = vrot.slane %v1531_v6, 1  ;;  %v1572_v33 = vrot.slane %v1532_v60, 1 }
 0x114   : >> { %v1564_v13 = vsel %vm1561_vm2, %v1562_v28, %v1563_v30  ;;  %v1567_v27 = vsel %vm1561_vm2, %v1565_v39, %v1566_v36  ;;  %v1591_v47 = vrot.slane %v1545_v1, 2  ;;  %v1592_v29 = vrot.slane %v1546_v44, 2 }
 0x115   : >> { %v1570_v31 = vsel %vm1561_vm2, %v1568_v52, %v1569_v11  ;;  %v1573_v63 = vsel %vm1561_vm2, %v1571_v37, %v1572_v33  ;;  %v1578_v20 = vadd.f32 %v1564_v13, %v1509_v38  ;;  %v1579_v32 = vadd.f32 %v1567_v27, %v1510_v25 }
 0x116   : >> { %v1580_v56 = vadd.f32 %v1570_v31, %v1511_v0  ;;  %v1581_v16 = vadd.f32 %v1573_v63, %v1512_v42  ;;  %v1593_v24 = vsel %vm1590_vm3, %v1591_v47, %v1592_v29  ;;  %v1594_v22 = vrot.slane %v1547_v7, 2 }
 0x117   : >> { %v1595_v46 = vrot.slane %v1548_v35, 2  ;;  %v1597_v48 = vrot.slane %v1549_v26, 2  ;;  %v1598_v18 = vrot.slane %v1550_v34, 2  ;;  %v1600_v17 = vrot.slane %v1551_v54, 2 }
 0x118   : >> { %v1601_v14 = vrot.slane %v1552_v62, 2  ;;  %v1607_v50 = vadd.f32 %v1593_v24, %v1578_v20 }
 0x119   : >> { %v1596_v23 = vsel %vm1590_vm3, %v1594_v22, %v1595_v46  ;;  %v1599_v12 = vsel %vm1590_vm3, %v1597_v48, %v1598_v18  ;;  %990 = sbr.rel (!%p988_p9) target bundleno = 175 (0xaf), region = 162 }
 0x11a   : >> { %v1602_v53 = vsel %vm1590_vm3, %v1600_v17, %v1601_v14  ;;  %v1608_v3 = vadd.f32 %v1596_v23, %v1579_v32  ;;  %v1609_v38 = vadd.f32 %v1599_v12, %v1580_v56  ;;  %2707 = vst [vmem:[%s2415_s3 + $0x80] sm:$0xff] %v1607_v50 }
 0x11b   : >> { %v1610_v25 = vadd.f32 %v1602_v53, %v1581_v16 }
 0x11c   : >> { %2708 = vst [vmem:[%s2415_s3 + $0x88] sm:$0xff] %v1608_v3  ;;  %2709 = vst [vmem:[%s2415_s3 + $0x90] sm:$0xff] %v1609_v38 }
 0x11d   : >> { %2710 = vst [vmem:[%s2415_s3 + $0x98] sm:$0xff] %v1610_v25 }
 0x11e PF: > { %p2711_p10 = scmp.gt.s32.totalorder %s3232_s26, 3 }
 0x11f   : > { %s3955_s8 = smov (%p2711_p10), 0  }
 0x120   : > { %1621 = sbr.rel (!%p2711_p10) target bundleno = 404 (0x194), region = 65 }
 0x125 LB: >> { %v1640_v0 = vlaneseq  ;;  %s2831_s14 = sshll.u32 %s3073_s8, 6  ;;  %v4430_v41 = vld [vmem:[#allocation7_spill] sm:$0xff]  ;;  %v4431_v60 = vld [vmem:[#allocation8_spill] sm:$0xff]  ;;  %v4432_v28 = vld [vmem:[#allocation14_spill] sm:$0xff]  ;;  %vm2197_vm4 = vcmask 1046528   ;;  %vm2226_vm5 = vcmask 1045504   ;;  %s3073_s8 = sphi %s3955_s8, %s1627_s8  }
 0x126   : >> { %s3964_s27 = scalar_lea.vmem %s3238_s2, %s2831_s14  ;;  %s4076_s26 = scalar_lea.vmem %s3247_s25, %s2831_s14 }
 0x127   : >> { %v1641_v42 = vshrl.u32 %v1640_v0, 7  ;;  %v2718_v4 = vld [vmem:[%s3964_s27 + $0x1e0] sm:$0xff]  ;;  %v3972_v19 = vld [vmem:[%s3964_s27 + $0x1f0] sm:$0xff]  ;;  %v2719_v58 = vld [vmem:[%s3964_s27 + $0x1e8] sm:$0x3]  ;;  %s2795_s5 = sshll.u32 %s3073_s8, 5 }
 0x128   : >> { %v3975_v45 = vld [vmem:[%s3964_s27 + $0x200] sm:$0xff]  ;;  %v3981_v43 = vld [vmem:[%s3964_s27 + $0x210] sm:$0xff]  ;;  %v2721_v57 = vld [vmem:[%s3964_s27 + $0x1f8] sm:$0x3]  ;;  %s2450_s6 = scalar_lea.vmem %s3250_s23, %s2795_s5 [#allocation2]  ;;  %s1627_s8 = sadd.s32 1, %s3073_s8  }
 0x129   : >> { %v3966_v55 = vsub.s32 0, %v1641_v42  ;;  %v3968_v59 = vsub.s32 1, %v1641_v42  ;;  %v3977_v49 = vsub.s32 2, %v1641_v42  ;;  %v2723_v8 = vld [vmem:[%s3964_s27 + $0x208] sm:$0x3]  ;;  %v4024_v22 = vld [vmem:[%s3964_s27 + $0x220] sm:$0xff] }
 0x12a   : >> { %v2725_v35 = vld [vmem:[%s3964_s27 + $0x218] sm:$0x3]  ;;  %v2731_v20 = vld [vmem:[%s3964_s27 + $0x208] sm:$0x3]  ;;  %p1624_p11 = scmp.ge.s32.totalorder %s1627_s8, 2  }
 0x12b   : >> { %v1643_v51 = vrot.slane %v4430_v41, %v3966_v55  ;;  %v1655_v6 = vrot.slane %v4430_v41, %v3968_v59  ;;  %v1707_v15 = vrot.slane %v4431_v60, %v3966_v55  ;;  %v1675_v40 = vrot.slane %v4430_v41, %v3977_v49  ;;  %v2729_v63 = vld [vmem:[%s3964_s27 + $0x1f8] sm:$0x3]  ;;  %v2735_v48 = vld [vmem:[%s3964_s27 + $0x228] sm:$0x3] }
 0x12c   : >> { %v1719_v9 = vrot.slane %v4431_v60, %v3968_v59  ;;  %v3996_v61 = vrot.slane %v4431_v60, %v3977_v49  ;;  %v4000_v10 = vrot.slane %v3194_v2, %v3966_v55  ;;  %v4010_v62 = vrot.slane %v3194_v2, %v3968_v59  ;;  %v2733_v46 = vld [vmem:[%s3964_s27 + $0x218] sm:$0x3] }
 0x12d   : >> { %v1644_v21 = vmul.f32 %v2718_v4, %v1643_v51  ;;  %v1645_v1 = vmul.f32 %v3972_v19, %v1643_v51  ;;  %v1646_v44 = vmul.f32 %v3975_v45, %v1643_v51  ;;  %v1647_v7 = vmul.f32 %v3981_v43, %v1643_v51 }
 0x12e   : >> { %v1656_v26 = vmul.f32 %v2718_v4, %v1655_v6  ;;  %v1657_v34 = vmul.f32 %v2719_v58, %v1655_v6  ;;  %v1658_v54 = vmul.f32 %v3972_v19, %v1655_v6  ;;  %v1659_v52 = vmul.f32 %v2721_v57, %v1655_v6 }
 0x12f   : >> { %v1648_v30 = vadd.f32 %v4432_v28, %v1644_v21  ;;  %v1649_v39 = vadd.f32 %v4432_v28, %v1645_v1  ;;  %v1650_v36 = vadd.f32 %v4432_v28, %v1646_v44  ;;  %v1651_v11 = vadd.f32 %v4432_v28, %v1647_v7 }
 0x130   : >> { %v1660_v37 = vmul.f32 %v3975_v45, %v1655_v6  ;;  %v1661_v33 = vmul.f32 %v2723_v8, %v1655_v6  ;;  %v1662_v13 = vmul.f32 %v3981_v43, %v1655_v6  ;;  %v1663_v27 = vmul.f32 %v2725_v35, %v1655_v6 }
 0x131   : >> { %v1676_v47 = vmul.f32 %v2718_v4, %v1675_v40  ;;  %v1677_v29 = vmul.f32 %v2719_v58, %v1675_v40  ;;  %v1678_v31 = vmul.f32 %v3972_v19, %v1675_v40  ;;  %v1679_v32 = vmul.f32 %v2721_v57, %v1675_v40 }
 0x132   : >> { %v1680_v56 = vmul.f32 %v3975_v45, %v1675_v40  ;;  %v1681_v16 = vmul.f32 %v2723_v8, %v1675_v40  ;;  %v1682_v24 = vmul.f32 %v3981_v43, %v1675_v40  ;;  %v1708_v18 = vmul.f32 %v3972_v19, %v1707_v15 }
 0x133   : >> { %v1709_v17 = vmul.f32 %v3975_v45, %v1707_v15  ;;  %v1710_v14 = vmul.f32 %v3981_v43, %v1707_v15  ;;  %v1711_v50 = vmul.f32 %v4024_v22, %v1707_v15  ;;  %v1720_v23 = vmul.f32 %v3972_v19, %v1719_v9 }
 0x134   : >> { %v1721_v12 = vmul.f32 %v2729_v63, %v1719_v9  ;;  %v1722_v53 = vmul.f32 %v3975_v45, %v1719_v9  ;;  %v1723_v3 = vmul.f32 %v2731_v20, %v1719_v9  ;;  %v1683_v38 = vmul.f32 %v2725_v35, %v1675_v40 }
 0x135   : >> { %v1712_v25 = vadd.f32 %v1708_v18, %v1648_v30  ;;  %v1713_v0 = vadd.f32 %v1709_v17, %v1649_v39  ;;  %v1714_v42 = vadd.f32 %v1710_v14, %v1650_v36  ;;  %v1724_v4 = vmul.f32 %v3981_v43, %v1719_v9  ;;  %v2745_v18 = vld [vmem:[%s3964_s27 + $0x238] sm:$0x3] }
 0x136   : >> { %v1725_v58 = vmul.f32 %v2733_v46, %v1719_v9  ;;  %v1726_v41 = vmul.f32 %v4024_v22, %v1719_v9  ;;  %v1727_v51 = vmul.f32 %v2735_v48, %v1719_v9  ;;  %v1715_v6 = vadd.f32 %v1711_v50, %v1651_v11  ;;  %v2741_v11 = vld [vmem:[%s3964_s27 + $0x218] sm:$0x3] }
 0x137   : >> { %v1728_v60 = vadd.f32 %v1720_v23, %v1656_v26  ;;  %v1729_v57 = vadd.f32 %v1721_v12, %v1657_v34  ;;  %v1730_v15 = vadd.f32 %v1722_v53, %v1658_v54  ;;  %v1731_v8 = vadd.f32 %v1723_v3, %v1659_v52  ;;  %v2739_v52 = vld [vmem:[%s3964_s27 + $0x208] sm:$0x3] }
 0x138   : >> { %v1732_v21 = vadd.f32 %v1724_v4, %v1660_v37  ;;  %v1733_v1 = vadd.f32 %v1725_v58, %v1661_v33  ;;  %v1734_v44 = vadd.f32 %v1726_v41, %v1662_v13  ;;  %v1740_v40 = vmul.f32 %v3972_v19, %v3996_v61 }
 0x139   : >> { %v1741_v7 = vmul.f32 %v2729_v63, %v3996_v61  ;;  %v1742_v35 = vmul.f32 %v3975_v45, %v3996_v61  ;;  %v1743_v9 = vmul.f32 %v2731_v20, %v3996_v61  ;;  %v1735_v26 = vadd.f32 %v1727_v51, %v1663_v27  ;;  %v2744_v63 = vld [vmem:[%s3964_s27 + $0x230] sm:$0xff]  ;;  %v2743_v20 = vld [vmem:[%s3964_s27 + $0x228] sm:$0x3] }
 0x13a   : >> { %v1744_v34 = vmul.f32 %v3981_v43, %v3996_v61  ;;  %v1745_v54 = vmul.f32 %v2733_v46, %v3996_v61  ;;  %v1746_v28 = vmul.f32 %v4024_v22, %v3996_v61  ;;  %v1747_v19 = vmul.f32 %v2735_v48, %v3996_v61 }
 0x13b   : >> { %v1748_v30 = vadd.f32 %v1740_v40, %v1676_v47  ;;  %v1749_v39 = vadd.f32 %v1741_v7, %v1677_v29  ;;  %v1750_v36 = vadd.f32 %v1742_v35, %v1678_v31  ;;  %v1751_v37 = vadd.f32 %v1743_v9, %v1679_v32  ;;  %v4433_v40 = vld [vmem:[#allocation9_spill] sm:$0xff] }
 0x13c   : >> { %v1752_v33 = vadd.f32 %v1744_v34, %v1680_v56  ;;  %v1753_v13 = vadd.f32 %v1745_v54, %v1681_v16  ;;  %v1754_v27 = vadd.f32 %v1746_v28, %v1682_v24  ;;  %v1772_v46 = vmul.f32 %v3975_v45, %v4000_v10  ;;  %v1821_v54 = vld [vmem:[%s4076_s26] sm:$0xff] }
 0x13d   : >> { %v1773_v17 = vmul.f32 %v3981_v43, %v4000_v10  ;;  %v1774_v61 = vmul.f32 %v4024_v22, %v4000_v10  ;;  %v1775_v47 = vmul.f32 %v2744_v63, %v4000_v10  ;;  %v1784_v29 = vmul.f32 %v3975_v45, %v4010_v62 }
 0x13e   : >> { %v1785_v31 = vmul.f32 %v2739_v52, %v4010_v62  ;;  %v1786_v32 = vmul.f32 %v3981_v43, %v4010_v62  ;;  %v1787_v56 = vmul.f32 %v2741_v11, %v4010_v62  ;;  %v1755_v16 = vadd.f32 %v1747_v19, %v1683_v38 }
 0x13f   : >> { %v1776_v24 = vadd.f32 %v1772_v46, %v1712_v25  ;;  %v1777_v48 = vadd.f32 %v1773_v17, %v1713_v0  ;;  %v1778_v14 = vadd.f32 %v1774_v61, %v1714_v42  ;;  %v1788_v50 = vmul.f32 %v4024_v22, %v4010_v62  ;;  %v1822_v17 = vld [vmem:[%s4076_s26 + $0x8] sm:$0x3] }
 0x140   : >> { %v1789_v10 = vmul.f32 %v2743_v20, %v4010_v62  ;;  %v1790_v23 = vmul.f32 %v2744_v63, %v4010_v62  ;;  %v1791_v12 = vmul.f32 %v2745_v18, %v4010_v62  ;;  %v1779_v53 = vadd.f32 %v1775_v47, %v1715_v6 }
 0x141   : >> { %v1792_v3 = vadd.f32 %v1784_v29, %v1728_v60  ;;  %v1793_v4 = vadd.f32 %v1785_v31, %v1729_v57  ;;  %v1794_v58 = vadd.f32 %v1786_v32, %v1730_v15  ;;  %v1795_v41 = vadd.f32 %v1787_v56, %v1731_v8  ;;  %v4434_v60 = vld [vmem:[#allocation10_spill] sm:$0xff]  ;;  %v4113_v29 = vld [vmem:[%s4076_s26 + $0x30] sm:$0xff]  ;;  %v1826_v31 = vld [vmem:[%s4076_s26 + $0x28] sm:$0x3] }
 0x142   : >> { %v1796_v38 = vadd.f32 %v1788_v50, %v1732_v21  ;;  %v1797_v25 = vadd.f32 %v1789_v10, %v1733_v1  ;;  %v1798_v0 = vadd.f32 %v1790_v23, %v1734_v44  ;;  %v1799_v51 = vadd.f32 %v1791_v12, %v1735_v26  ;;  %v1828_v32 = vld [vmem:[%s4076_s26 + $0x38] sm:$0x3] }
 0x143   : >> { %v1803_v42 = vrot.slane %v3194_v2, %v3977_v49  ;;  %v1832_v7 = vrot.slane %v4433_v40, %v3966_v55  ;;  %v1844_v62 = vrot.slane %v4433_v40, %v3968_v59  ;;  %v1864_v6 = vrot.slane %v4433_v40, %v3977_v49 }
 0x144   : >> { %v4086_v57 = vrot.slane %v4434_v60, %v3966_v55  ;;  %v4090_v15 = vrot.slane %v4434_v60, %v3968_v59  ;;  %v4094_v8 = vrot.slane %v4434_v60, %v3977_v49  ;;  %v4102_v28 = vrot.slane %v3209_v5, %v3966_v55 }
 0x145   : >> { %v1804_v21 = vmul.f32 %v3975_v45, %v1803_v42  ;;  %v1805_v1 = vmul.f32 %v2739_v52, %v1803_v42  ;;  %v1806_v44 = vmul.f32 %v3981_v43, %v1803_v42  ;;  %v1807_v35 = vmul.f32 %v2741_v11, %v1803_v42  ;;  %v4106_v43 = vld [vmem:[%s4076_s26 + $0x10] sm:$0xff]  ;;  %v1824_v11 = vld [vmem:[%s4076_s26 + $0x18] sm:$0x3] }
 0x146   : >> { %v1808_v9 = vmul.f32 %v4024_v22, %v1803_v42  ;;  %v1809_v26 = vmul.f32 %v2743_v20, %v1803_v42  ;;  %v1810_v34 = vmul.f32 %v2744_v63, %v1803_v42  ;;  %v1811_v19 = vmul.f32 %v2745_v18, %v1803_v42  ;;  %v4110_v63 = vld [vmem:[%s4076_s26 + $0x20] sm:$0xff] }
 0x147   : >> { %v1812_v46 = vadd.f32 %v1804_v21, %v1748_v30  ;;  %v1813_v45 = vadd.f32 %v1805_v1, %v1749_v39  ;;  %v1814_v52 = vadd.f32 %v1806_v44, %v1750_v36  ;;  %v1815_v22 = vadd.f32 %v1807_v35, %v1751_v37 }
 0x148   : >> { %v1816_v61 = vadd.f32 %v1808_v9, %v1752_v33  ;;  %v1817_v20 = vadd.f32 %v1809_v26, %v1753_v13  ;;  %v1818_v47 = vadd.f32 %v1810_v34, %v1754_v27  ;;  %v1833_v56 = vmul.f32 %v1832_v7, %v1821_v54 }
 0x149   : >> { %v1834_v18 = vmul.f32 %v1832_v7, %v4106_v43  ;;  %v1835_v30 = vmul.f32 %v1832_v7, %v4110_v63  ;;  %v1836_v39 = vmul.f32 %v1832_v7, %v4113_v29  ;;  %v1845_v36 = vmul.f32 %v1844_v62, %v1821_v54 }
 0x14a   : >> { %v1846_v50 = vmul.f32 %v1844_v62, %v1822_v17  ;;  %v1847_v37 = vmul.f32 %v1844_v62, %v4106_v43  ;;  %v1848_v33 = vmul.f32 %v1844_v62, %v1824_v11  ;;  %v1819_v13 = vadd.f32 %v1811_v19, %v1755_v16 }
 0x14b   : >> { %v1837_v27 = vadd.f32 %v1833_v56, %v1776_v24  ;;  %v1838_v10 = vadd.f32 %v1834_v18, %v1777_v48  ;;  %v1839_v23 = vadd.f32 %v1835_v30, %v1778_v14  ;;  %v1849_v12 = vmul.f32 %v1844_v62, %v4110_v63  ;;  %v4129_v30 = vld [vmem:[%s4076_s26 + $0x40] sm:$0xff] }
 0x14c   : >> { %v1850_v42 = vmul.f32 %v1844_v62, %v1826_v31  ;;  %v1851_v40 = vmul.f32 %v1844_v62, %v4113_v29  ;;  %v1852_v60 = vmul.f32 %v1844_v62, %v1828_v32  ;;  %v1840_v21 = vadd.f32 %v1836_v39, %v1779_v53 }
 0x14d   : >> { %v1853_v1 = vadd.f32 %v1845_v36, %v1792_v3  ;;  %v1854_v44 = vadd.f32 %v1846_v50, %v1793_v4  ;;  %v1855_v35 = vadd.f32 %v1847_v37, %v1794_v58  ;;  %v1856_v7 = vadd.f32 %v1848_v33, %v1795_v41 }
 0x14e   : >> { %v1857_v9 = vadd.f32 %v1849_v12, %v1796_v38  ;;  %v1858_v26 = vadd.f32 %v1850_v42, %v1797_v25  ;;  %v1859_v34 = vadd.f32 %v1851_v40, %v1798_v0  ;;  %v1865_v16 = vmul.f32 %v1864_v6, %v1821_v54  ;;  %v2749_v25 = vld [vmem:[%s4076_s26 + $0x18] sm:$0x3]  ;;  %v2751_v0 = vld [vmem:[%s4076_s26 + $0x28] sm:$0x3] }
 0x14f   : >> { %v1866_v24 = vmul.f32 %v1864_v6, %v1822_v17  ;;  %v1867_v48 = vmul.f32 %v1864_v6, %v4106_v43  ;;  %v1868_v14 = vmul.f32 %v1864_v6, %v1824_v11  ;;  %v1860_v19 = vadd.f32 %v1852_v60, %v1799_v51  ;;  %v2753_v11 = vld [vmem:[%s4076_s26 + $0x38] sm:$0x3] }
 0x150   : >> { %v1869_v62 = vmul.f32 %v1864_v6, %v4110_v63  ;;  %v1870_v53 = vmul.f32 %v1864_v6, %v1826_v31  ;;  %v1871_v3 = vmul.f32 %v1864_v6, %v4113_v29  ;;  %v1872_v4 = vmul.f32 %v1864_v6, %v1828_v32 }
 0x151   : >> { %v1873_v58 = vadd.f32 %v1865_v16, %v1812_v46  ;;  %v1874_v41 = vadd.f32 %v1866_v24, %v1813_v45  ;;  %v1875_v38 = vadd.f32 %v1867_v48, %v1814_v52  ;;  %v1876_v54 = vadd.f32 %v1868_v14, %v1815_v22  ;;  %v2755_v45 = vld [vmem:[%s4076_s26 + $0x48] sm:$0x3] }
 0x152   : >> { %v1877_v17 = vadd.f32 %v1869_v62, %v1816_v61  ;;  %v1878_v56 = vadd.f32 %v1870_v53, %v1817_v20  ;;  %v1879_v18 = vadd.f32 %v1871_v3, %v1818_v47  ;;  %v1894_v51 = vmul.f32 %v4086_v57, %v4106_v43 }
 0x153   : >> { %v1895_v31 = vmul.f32 %v4086_v57, %v4110_v63  ;;  %v1896_v6 = vmul.f32 %v4086_v57, %v4113_v29  ;;  %v1897_v46 = vmul.f32 %v4129_v30, %v4086_v57  ;;  %v1906_v52 = vmul.f32 %v4090_v15, %v4106_v43 }
 0x154   : >> { %v1907_v22 = vmul.f32 %v2749_v25, %v4090_v15  ;;  %v1908_v61 = vmul.f32 %v4090_v15, %v4110_v63  ;;  %v1909_v20 = vmul.f32 %v2751_v0, %v4090_v15  ;;  %v1880_v47 = vadd.f32 %v1872_v4, %v1819_v13  ;;  %v2759_v4 = vld [vmem:[%s4076_s26 + $0x28] sm:$0x3] }
 0x155   : >> { %v1898_v32 = vadd.f32 %v1894_v51, %v1837_v27  ;;  %v1899_v39 = vadd.f32 %v1895_v31, %v1838_v10  ;;  %v1900_v36 = vadd.f32 %v1896_v6, %v1839_v23  ;;  %v1901_v50 = vadd.f32 %v1897_v46, %v1840_v21 }
 0x156   : >> { %v1910_v37 = vmul.f32 %v4090_v15, %v4113_v29  ;;  %v1911_v57 = vmul.f32 %v2753_v11, %v4090_v15  ;;  %v1912_v33 = vmul.f32 %v4129_v30, %v4090_v15  ;;  %v1913_v12 = vmul.f32 %v2755_v45, %v4090_v15 }
 0x157   : >> { %v1914_v42 = vadd.f32 %v1906_v52, %v1853_v1  ;;  %v1915_v40 = vadd.f32 %v1907_v22, %v1854_v44  ;;  %v1916_v60 = vadd.f32 %v1908_v61, %v1855_v35  ;;  %v1917_v16 = vadd.f32 %v1909_v20, %v1856_v7 }
 0x158   : >> { %v1918_v24 = vadd.f32 %v1910_v37, %v1857_v9  ;;  %v1919_v13 = vadd.f32 %v1911_v57, %v1858_v26  ;;  %v1920_v27 = vadd.f32 %v1912_v33, %v1859_v34  ;;  %v1926_v10 = vmul.f32 %v4094_v8, %v4106_v43 }
 0x159   : >> { %v1927_v23 = vmul.f32 %v2749_v25, %v4094_v8  ;;  %v1928_v21 = vmul.f32 %v4094_v8, %v4110_v63  ;;  %v1929_v48 = vmul.f32 %v2751_v0, %v4094_v8  ;;  %v1930_v15 = vmul.f32 %v4094_v8, %v4113_v29  ;;  %v2761_v25 = vld [vmem:[%s4076_s26 + $0x38] sm:$0x3]  ;;  %v2764_v0 = vld [vmem:[%s4076_s26 + $0x50] sm:$0xff] }
 0x15a   : >> { %v1931_v1 = vmul.f32 %v2753_v11, %v4094_v8  ;;  %v1932_v44 = vmul.f32 %v4129_v30, %v4094_v8  ;;  %v1933_v43 = vmul.f32 %v2755_v45, %v4094_v8  ;;  %v1921_v35 = vadd.f32 %v1913_v12, %v1860_v19 }
 0x15b   : >> { %v1934_v7 = vadd.f32 %v1926_v10, %v1873_v58  ;;  %v1935_v9 = vadd.f32 %v1927_v23, %v1874_v41  ;;  %v1936_v26 = vadd.f32 %v1928_v21, %v1875_v38  ;;  %v1937_v34 = vadd.f32 %v1929_v48, %v1876_v54  ;;  %v2763_v58 = vld [vmem:[%s4076_s26 + $0x48] sm:$0x3]  ;;  %v2765_v41 = vld [vmem:[%s4076_s26 + $0x58] sm:$0x3] }
 0x15c   : >> { %v1938_v14 = vadd.f32 %v1930_v15, %v1877_v17  ;;  %v1939_v62 = vadd.f32 %v1931_v1, %v1878_v56  ;;  %v1940_v53 = vadd.f32 %v1932_v44, %v1879_v18  ;;  %v4165_v3 = vadd.f32 %v1933_v43, %v1880_v47  ;;  %v4435_v56 = vld [vmem:[#allocation11_spill] sm:$0xff]  ;;  %v2768_v43 = vld [vmem:[%s4076_s26 + $0xa8] sm:$0x3] }
 0x15d   : >> { %v1955_v11 = vmul.f32 %v4102_v28, %v4110_v63  ;;  %v1956_v8 = vmul.f32 %v4102_v28, %v4113_v29  ;;  %v1957_v19 = vmul.f32 %v4129_v30, %v4102_v28  ;;  %v1958_v38 = vmul.f32 %v2764_v0, %v4102_v28 }
 0x15e   : >> { %v1966_v54 = vrot.slane %v3209_v5, %v3968_v59  ;;  %v1986_v17 = vrot.slane %v3209_v5, %v3977_v49  ;;  %v2016_v18 = vrot.slane %v4435_v56, %v3966_v55  ;;  %v2028_v46 = vrot.slane %v4435_v56, %v3968_v59 }
 0x15f   : >> { %v1959_v51 = vadd.f32 %v1955_v11, %v1898_v32  ;;  %v1960_v31 = vadd.f32 %v1956_v8, %v1899_v39  ;;  %v1961_v6 = vadd.f32 %v1957_v19, %v1900_v36  ;;  %v1962_v57 = vadd.f32 %v1958_v38, %v1901_v50  ;;  %v4200_v8 = vld [vmem:[%s4076_s26 + $0xc0] sm:$0xff]  ;;  %v2772_v19 = vld [vmem:[%s4076_s26 + $0xc8] sm:$0x3] }
 0x160   : >> { %v1967_v45 = vmul.f32 %v1966_v54, %v4110_v63  ;;  %v1968_v52 = vmul.f32 %v2759_v4, %v1966_v54  ;;  %v1969_v28 = vmul.f32 %v1966_v54, %v4113_v29  ;;  %v1970_v22 = vmul.f32 %v2761_v25, %v1966_v54 }
 0x161   : >> { %v1971_v61 = vmul.f32 %v4129_v30, %v1966_v54  ;;  %v1972_v20 = vmul.f32 %v2763_v58, %v1966_v54  ;;  %v1973_v47 = vmul.f32 %v2764_v0, %v1966_v54  ;;  %v1974_v37 = vmul.f32 %v2765_v41, %v1966_v54 }
 0x162   : >> { %v1975_v33 = vadd.f32 %v1967_v45, %v1914_v42  ;;  %v1976_v32 = vadd.f32 %v1968_v52, %v1915_v40  ;;  %v1977_v39 = vadd.f32 %v1969_v28, %v1916_v60  ;;  %v1978_v36 = vadd.f32 %v1970_v22, %v1917_v16  ;;  %v2767_v60 = vld [vmem:[%s4076_s26 + $0xa0] sm:$0xff] }
 0x163   : >> { %v1979_v12 = vadd.f32 %v1971_v61, %v1918_v24  ;;  %v1980_v10 = vadd.f32 %v1972_v20, %v1919_v13  ;;  %v1981_v23 = vadd.f32 %v1973_v47, %v1920_v27  ;;  %v1987_v21 = vmul.f32 %v1986_v17, %v4110_v63  ;;  %v4196_v63 = vld [vmem:[%s4076_s26 + $0xb0] sm:$0xff] }
 0x164   : >> { %v1988_v48 = vmul.f32 %v2759_v4, %v1986_v17  ;;  %v1989_v15 = vmul.f32 %v1986_v17, %v4113_v29  ;;  %v1990_v1 = vmul.f32 %v2761_v25, %v1986_v17  ;;  %v1982_v44 = vadd.f32 %v1974_v37, %v1921_v35  ;;  %v2770_v4 = vld [vmem:[%s4076_s26 + $0xb8] sm:$0x3] }
 0x165   : >> { %v1991_v50 = vmul.f32 %v4129_v30, %v1986_v17  ;;  %v1992_v42 = vmul.f32 %v2763_v58, %v1986_v17  ;;  %v1993_v40 = vmul.f32 %v2764_v0, %v1986_v17  ;;  %v1994_v16 = vmul.f32 %v2765_v41, %v1986_v17  ;;  %v4203_v30 = vld [vmem:[%s4076_s26 + $0xd0] sm:$0xff]  ;;  %v2774_v0 = vld [vmem:[%s4076_s26 + $0xd8] sm:$0x3] }
 0x166   : >> { %v1995_v24 = vadd.f32 %v1987_v21, %v1934_v7  ;;  %v1996_v13 = vadd.f32 %v1988_v48, %v1935_v9  ;;  %v1997_v27 = vadd.f32 %v1989_v15, %v1936_v26  ;;  %v1998_v29 = vadd.f32 %v1990_v1, %v1937_v34 }
 0x167   : >> { %v1999_v25 = vadd.f32 %v1991_v50, %v1938_v14  ;;  %v2000_v35 = vadd.f32 %v1992_v42, %v1939_v62  ;;  %v2001_v11 = vadd.f32 %v1993_v40, %v1940_v53  ;;  %v2017_v58 = vmul.f32 %v2767_v60, %v2016_v18 }
 0x168   : >> { %v2018_v41 = vmul.f32 %v4196_v63, %v2016_v18  ;;  %v2019_v7 = vmul.f32 %v4200_v8, %v2016_v18  ;;  %v2020_v9 = vmul.f32 %v4203_v30, %v2016_v18  ;;  %v2029_v26 = vmul.f32 %v2767_v60, %v2028_v46 }
 0x169   : >> { %v2030_v38 = vmul.f32 %v2768_v43, %v2028_v46  ;;  %v2031_v34 = vmul.f32 %v4196_v63, %v2028_v46  ;;  %v2032_v14 = vmul.f32 %v2770_v4, %v2028_v46  ;;  %v2002_v62 = vadd.f32 %v1994_v16, %v4165_v3 }
 0x16a   : >> { %v2021_v53 = vadd.f32 %v2017_v58, %v1959_v51  ;;  %v2022_v54 = vadd.f32 %v2018_v41, %v1960_v31  ;;  %v2023_v17 = vadd.f32 %v2019_v7, %v1961_v6  ;;  %v2033_v45 = vmul.f32 %v4200_v8, %v2028_v46  ;;  %v4436_v51 = vld [vmem:[#allocation12_spill] sm:$0xff] }
 0x16b   : >> { %v2034_v52 = vmul.f32 %v2772_v19, %v2028_v46  ;;  %v2035_v28 = vmul.f32 %v4203_v30, %v2028_v46  ;;  %v2036_v22 = vmul.f32 %v2774_v0, %v2028_v46  ;;  %v2024_v61 = vadd.f32 %v2020_v9, %v1962_v57  ;;  %v4437_v57 = vld [vmem:[#allocation13_spill] sm:$0xff]  ;;  %v2780_v58 = vld [vmem:[%s4076_s26 + $0xc8] sm:$0x3]  ;;  %v4240_v9 = vld [vmem:[%s4076_s26 + $0xe0] sm:$0xff] }
 0x16c   : >> { %v2037_v20 = vadd.f32 %v2029_v26, %v1975_v33  ;;  %v2038_v47 = vadd.f32 %v2030_v38, %v1976_v32  ;;  %v2039_v18 = vadd.f32 %v2031_v34, %v1977_v39  ;;  %v2040_v37 = vadd.f32 %v2032_v14, %v1978_v36  ;;  %v2784_v26 = vld [vmem:[%s4076_s26 + $0xe8] sm:$0x3] }
 0x16d   : >> { %v2041_v21 = vadd.f32 %v2033_v45, %v1979_v12  ;;  %v2042_v48 = vadd.f32 %v2034_v52, %v1980_v10  ;;  %v2043_v15 = vadd.f32 %v2035_v28, %v1981_v23  ;;  %v2044_v1 = vadd.f32 %v2036_v22, %v1982_v44 }
 0x16e   : >> { %v2048_v3 = vrot.slane %v4435_v56, %v3977_v49  ;;  %v2078_v31 = vrot.slane %v4436_v51, %v3966_v55  ;;  %v2090_v6 = vrot.slane %v4436_v51, %v3968_v59  ;;  %v2110_v46 = vrot.slane %v4436_v51, %v3977_v49 }
 0x16f   : >> { %v4224_v33 = vrot.slane %v4437_v57, %v3966_v55  ;;  %v4228_v32 = vrot.slane %v4437_v57, %v3968_v59  ;;  %v4232_v56 = vrot.slane %v4437_v57, %v3977_v49  ;;  %v2778_v49 = vld [vmem:[%s4076_s26 + $0xb8] sm:$0x3] }
 0x170   : >> { %v2049_v39 = vmul.f32 %v2767_v60, %v2048_v3  ;;  %v2050_v36 = vmul.f32 %v2768_v43, %v2048_v3  ;;  %v2051_v12 = vmul.f32 %v4196_v63, %v2048_v3  ;;  %v2052_v10 = vmul.f32 %v2770_v4, %v2048_v3  ;;  %v2782_v4 = vld [vmem:[%s4076_s26 + $0xd8] sm:$0x3] }
 0x171   : >> { %v2053_v23 = vmul.f32 %v4200_v8, %v2048_v3  ;;  %v2054_v55 = vmul.f32 %v2772_v19, %v2048_v3  ;;  %v2055_v44 = vmul.f32 %v4203_v30, %v2048_v3  ;;  %v2056_v50 = vmul.f32 %v2774_v0, %v2048_v3 }
 0x172   : >> { %v2057_v59 = vadd.f32 %v2049_v39, %v1995_v24  ;;  %v2058_v42 = vadd.f32 %v2050_v36, %v1996_v13  ;;  %v2059_v40 = vadd.f32 %v2051_v12, %v1997_v27  ;;  %v2060_v16 = vadd.f32 %v2052_v10, %v1998_v29  ;;  %v2790_v10 = vld [vmem:[%s4076_s26 + $0xd8] sm:$0x3] }
 0x173   : >> { %v2061_v60 = vadd.f32 %v2053_v23, %v1999_v25  ;;  %v2062_v43 = vadd.f32 %v2054_v55, %v2000_v35  ;;  %v2063_v41 = vadd.f32 %v2055_v44, %v2001_v11  ;;  %v2064_v7 = vadd.f32 %v2056_v50, %v2002_v62  ;;  %v2793_v50 = vld [vmem:[%s4076_s26 + $0xf0] sm:$0xff] }
 0x174   : >> { %v2079_v38 = vmul.f32 %v4196_v63, %v2078_v31  ;;  %v2080_v19 = vmul.f32 %v4200_v8, %v2078_v31  ;;  %v2081_v0 = vmul.f32 %v4203_v30, %v2078_v31  ;;  %v2082_v24 = vmul.f32 %v4240_v9, %v2078_v31 }
 0x175   : >> { %v2091_v13 = vmul.f32 %v4196_v63, %v2090_v6  ;;  %v2092_v27 = vmul.f32 %v2778_v49, %v2090_v6  ;;  %v2093_v29 = vmul.f32 %v4200_v8, %v2090_v6  ;;  %v2094_v25 = vmul.f32 %v2780_v58, %v2090_v6 }
 0x176   : >> { %v2083_v35 = vadd.f32 %v2079_v38, %v2021_v53  ;;  %v2084_v11 = vadd.f32 %v2080_v19, %v2022_v54  ;;  %v2085_v34 = vadd.f32 %v2081_v0, %v2023_v17  ;;  %v2086_v14 = vadd.f32 %v2082_v24, %v2024_v61 }
 0x177   : >> { %v2095_v62 = vmul.f32 %v4203_v30, %v2090_v6  ;;  %v2096_v45 = vmul.f32 %v2782_v4, %v2090_v6  ;;  %v2097_v52 = vmul.f32 %v4240_v9, %v2090_v6  ;;  %v2098_v28 = vmul.f32 %v2784_v26, %v2090_v6 }
 0x178   : >> { %v2099_v22 = vadd.f32 %v2091_v13, %v2037_v20  ;;  %v2100_v3 = vadd.f32 %v2092_v27, %v2038_v47  ;;  %v2101_v51 = vadd.f32 %v2093_v29, %v2039_v18  ;;  %v2102_v31 = vadd.f32 %v2094_v25, %v2040_v37 }
 0x179   : >> { %v2103_v57 = vadd.f32 %v2095_v62, %v2041_v21  ;;  %v2104_v39 = vadd.f32 %v2096_v45, %v2042_v48  ;;  %v2105_v36 = vadd.f32 %v2097_v52, %v2043_v15  ;;  %v2106_v12 = vadd.f32 %v2098_v28, %v2044_v1  ;;  %v2788_v1 = vld [vmem:[%s4076_s26 + $0xc8] sm:$0x3] }
 0x17a   : >> { %v2111_v53 = vmul.f32 %v4196_v63, %v2110_v46  ;;  %v2112_v54 = vmul.f32 %v2778_v49, %v2110_v46  ;;  %v2113_v17 = vmul.f32 %v4200_v8, %v2110_v46  ;;  %v2114_v61 = vmul.f32 %v2780_v58, %v2110_v46  ;;  %v2792_v49 = vld [vmem:[%s4076_s26 + $0xe8] sm:$0x3]  ;;  %v2794_v58 = vld [vmem:[%s4076_s26 + $0xf8] sm:$0x3] }
 0x17b   : >> { %v2115_v6 = vmul.f32 %v4203_v30, %v2110_v46  ;;  %v2116_v20 = vmul.f32 %v2782_v4, %v2110_v46  ;;  %v2117_v47 = vmul.f32 %v4240_v9, %v2110_v46  ;;  %v2118_v18 = vmul.f32 %v2784_v26, %v2110_v46 }
 0x17c   : >> { %v2119_v37 = vadd.f32 %v2111_v53, %v2057_v59  ;;  %v2120_v21 = vadd.f32 %v2112_v54, %v2058_v42  ;;  %v2121_v48 = vadd.f32 %v2113_v17, %v2059_v40  ;;  %v2122_v15 = vadd.f32 %v2114_v61, %v2060_v16 }
 0x17d   : >> { %v2123_v63 = vadd.f32 %v2115_v6, %v2061_v60  ;;  %v2124_v23 = vadd.f32 %v2116_v20, %v2062_v43  ;;  %v2125_v55 = vadd.f32 %v2117_v47, %v2063_v41  ;;  %v2126_v44 = vadd.f32 %v2118_v18, %v2064_v7 }
 0x17e   : >> { %v2141_v38 = vmul.f32 %v4200_v8, %v4224_v33  ;;  %v2142_v4 = vmul.f32 %v4203_v30, %v4224_v33  ;;  %v2143_v46 = vmul.f32 %v4240_v9, %v4224_v33  ;;  %v2144_v59 = vmul.f32 %v2793_v50, %v4224_v33 }
 0x17f   : >> { %v2153_v42 = vmul.f32 %v4200_v8, %v4228_v32  ;;  %v2154_v40 = vmul.f32 %v2788_v1, %v4228_v32  ;;  %v2155_v16 = vmul.f32 %v4203_v30, %v4228_v32  ;;  %v2156_v60 = vmul.f32 %v2790_v10, %v4228_v32 }
 0x180   : >> { %v2145_v43 = vadd.f32 %v2141_v38, %v2083_v35  ;;  %v2146_v41 = vadd.f32 %v2142_v4, %v2084_v11  ;;  %v2147_v7 = vadd.f32 %v2143_v46, %v2085_v34  ;;  %v2148_v26 = vadd.f32 %v2144_v59, %v2086_v14 }
 0x181   : >> { %v2157_v19 = vmul.f32 %v4240_v9, %v4228_v32  ;;  %v2158_v33 = vmul.f32 %v2792_v49, %v4228_v32  ;;  %v2159_v0 = vmul.f32 %v2793_v50, %v4228_v32  ;;  %v2160_v24 = vmul.f32 %v2794_v58, %v4228_v32 }
 0x182   : >> { %v2161_v13 = vadd.f32 %v2153_v42, %v2099_v22  ;;  %v2162_v27 = vadd.f32 %v2154_v40, %v2100_v3  ;;  %v2163_v29 = vadd.f32 %v2155_v16, %v2101_v51  ;;  %v2164_v25 = vadd.f32 %v2156_v60, %v2102_v31 }
 0x183   : >> { %v2165_v62 = vadd.f32 %v2157_v19, %v2103_v57  ;;  %v2166_v45 = vadd.f32 %v2158_v33, %v2104_v39  ;;  %v2167_v35 = vadd.f32 %v2159_v0, %v2105_v36  ;;  %v2168_v11 = vadd.f32 %v2160_v24, %v2106_v12 }
 0x184   : >> { %v2173_v34 = vmul.f32 %v4200_v8, %v4232_v56  ;;  %v2174_v14 = vmul.f32 %v2788_v1, %v4232_v56  ;;  %v2175_v52 = vmul.f32 %v4203_v30, %v4232_v56  ;;  %v2176_v28 = vmul.f32 %v2790_v10, %v4232_v56 }
 0x185   : >> { %v2177_v32 = vmul.f32 %v4240_v9, %v4232_v56  ;;  %v2178_v22 = vmul.f32 %v2792_v49, %v4232_v56  ;;  %v2179_v3 = vmul.f32 %v2793_v50, %v4232_v56  ;;  %v2180_v51 = vmul.f32 %v2794_v58, %v4232_v56 }
 0x186   : >> { %v2181_v31 = vadd.f32 %v2173_v34, %v2119_v37  ;;  %v2182_v57 = vadd.f32 %v2174_v14, %v2120_v21  ;;  %v2183_v39 = vadd.f32 %v2175_v52, %v2121_v48  ;;  %v2184_v8 = vadd.f32 %v2176_v28, %v2122_v15 }
 0x187   : >> { %v2185_v36 = vadd.f32 %v2177_v32, %v2123_v63  ;;  %v2186_v12 = vadd.f32 %v2178_v22, %v2124_v23  ;;  %v2187_v53 = vadd.f32 %v2179_v3, %v2125_v55  ;;  %v2188_v30 = vadd.f32 %v2180_v51, %v2126_v44 }
 0x188   : >> { %v2198_v54 = vrot.slane %v2161_v13, 1  ;;  %v2199_v17 = vrot.slane %v2162_v27, 1  ;;  %v2201_v61 = vrot.slane %v2163_v29, 1  ;;  %v2202_v6 = vrot.slane %v2164_v25, 1 }
 0x189   : >> { %v2204_v9 = vrot.slane %v2165_v62, 1  ;;  %v2205_v20 = vrot.slane %v2166_v45, 1  ;;  %v2207_v47 = vrot.slane %v2167_v35, 1  ;;  %v2208_v18 = vrot.slane %v2168_v11, 1 }
 0x18a   : >> { %v2200_v1 = vsel %vm2197_vm4, %v2198_v54, %v2199_v17  ;;  %v2203_v56 = vsel %vm2197_vm4, %v2201_v61, %v2202_v6  ;;  %v2227_v37 = vrot.slane %v2181_v31, 2  ;;  %v2228_v21 = vrot.slane %v2182_v57, 2 }
 0x18b   : >> { %v2206_v48 = vsel %vm2197_vm4, %v2204_v9, %v2205_v20  ;;  %v2209_v15 = vsel %vm2197_vm4, %v2207_v47, %v2208_v18  ;;  %v2214_v10 = vadd.f32 %v2200_v1, %v2145_v43  ;;  %v2215_v63 = vadd.f32 %v2203_v56, %v2146_v41 }
 0x18c   : >> { %v2216_v23 = vadd.f32 %v2206_v48, %v2147_v7  ;;  %v2217_v55 = vadd.f32 %v2209_v15, %v2148_v26  ;;  %v2229_v44 = vsel %vm2226_vm5, %v2227_v37, %v2228_v21  ;;  %v2230_v50 = vrot.slane %v2183_v39, 2 }
 0x18d   : >> { %v2231_v49 = vrot.slane %v2184_v8, 2  ;;  %v2233_v58 = vrot.slane %v2185_v36, 2  ;;  %v2234_v38 = vrot.slane %v2186_v12, 2  ;;  %v2236_v4 = vrot.slane %v2187_v53, 2 }
 0x18e   : >> { %v2237_v46 = vrot.slane %v2188_v30, 2  ;;  %v2243_v59 = vadd.f32 %v2229_v44, %v2214_v10 }
 0x18f   : >> { %v2232_v42 = vsel %vm2226_vm5, %v2230_v50, %v2231_v49  ;;  %v2235_v40 = vsel %vm2226_vm5, %v2233_v58, %v2234_v38  ;;  %1626 = sbr.rel (!%p1624_p11) target bundleno = 293 (0x125), region = 173 }
 0x190   : >> { %v2238_v16 = vsel %vm2226_vm5, %v2236_v4, %v2237_v46  ;;  %v2244_v60 = vadd.f32 %v2232_v42, %v2215_v63  ;;  %v2245_v43 = vadd.f32 %v2235_v40, %v2216_v23  ;;  %2796 = vst [vmem:[%s2450_s6 + $0xc0] sm:$0xff] %v2243_v59 }
 0x191   : >> { %v2246_v41 = vadd.f32 %v2238_v16, %v2217_v55 }
 0x192   : >> { %2797 = vst [vmem:[%s2450_s6 + $0xc8] sm:$0xff] %v2244_v60  ;;  %2798 = vst [vmem:[%s2450_s6 + $0xd0] sm:$0xff] %v2245_v43 }
 0x193   : >> { %2799 = vst [vmem:[%s2450_s6 + $0xd8] sm:$0xff] %v2246_v41 }
 0x194 PF: > { %s2838_s10 = sshll.u32 %s3041_s18, 5  ;;  %s2803_s30 = sshll.u32 %s3045_s19, 6 }
 0x195   : > { %s2271_s9 = sshll.u32 %s3250_s23, 4  ;;  %s2268_s11 = sadd.s32 %s2838_s10, %s2803_s30  ;;  %s4306_s9 = int_to_ptr.vmem [resolvable:$true] %s2271_s9 }
 0x196   : > { %s2804_s24 = sshll.u32 %s2268_s11, 7  ;;  %s4438_s2 = sand.u32 1, %s3033_s16  }
 0x197   : > { %s4311_s3 = scalar_lea.hbm %s4370_s4, %s2804_s24  ;;  %s4315_s25 = scalar_lea.sflag [#allocation3], %s4438_s2 }
 0x198   : > { %s2949_s8 = scalar_lea.vmem %s4306_s9, 4096  ;;  %s3075_s18 = smov [#allocation2]  }
 0x199   : > { %p2950_p12 = scmp.ne.s32.totalorder %s4306_s9, %s2949_s8  ;;  %s2953_s19 = sshll.u32 %s3075_s18, 4  ;;  %s2954_s19 = int_to_ptr.vmem [resolvable:$false] %s2953_s19 }
 0x19a   : > { %s2955_s23 = scalar_lea.vmem %s2954_s19, 8192  ;;  %p2956_p1 = scmp.lt.s32.totalorder %s4306_s9, %s2954_s19 }
 0x19b   : > { %p2951_p13 = pnand %p2950_p12, %p3154_p3  ;;  %p2957_p2 = scmp.lt.s32.totalorder %s2955_s23, %s2949_s8 }
 0x19d   : > { %p2952_p0 = pneg %p2951_p13  ;;  %p2958_p4 = por %p2957_p2, %p2956_p1 }
 0x19f   : > { %p2959_p5 = pnand %p2958_p4, %p2952_p0 }
 0x1a1   : > { %2962 = shalt.err (!%p2959_p5)
}
 0x1a2   : > { %s2963_s14 = scalar_lea.hbm %s4311_s3, 4096  ;;  %s2967_s5 = scalar_lea.hbm %s4370_s4, 16384 }
 0x1a3   : > { %p2964_p6 = scmp.ne.s32.totalorder %s4311_s3, %s2963_s14  ;;  %p2968_p10 = scmp.lt.s32.totalorder %s4311_s3, %s4370_s4 }
 0x1a4   : > { %p2969_p11 = scmp.lt.s32.totalorder %s2967_s5, %s2963_s14 }
 0x1a5   : > { %p2965_p7 = pnand %p2964_p6, %p3154_p3 }
 0x1a6   : > { %p2970_p12 = por %p2969_p11, %p2968_p10 }
 0x1a7   : > { %p2966_p9 = pneg %p2965_p7 }
 0x1a9   : > { %p2971_p13 = pnand %p2970_p12, %p2966_p9 }
 0x1ab   : > { %2974 = shalt.err (!%p2971_p13)
}
 0x1ac   : > { %s3076_s30 = smov 128   ;;  %s3077_s11 = smov 8  }
 0x1ad   : > { %2844 = dma.vmem_to_hbm [thread:$0]  (%p3154_p3), %s4306_s9, 4096, %s4311_s3, %s4315_s25, %s3076_s30, %s3076_s30, %s3077_s11  }
 0x1ae PF: > { %p2850_p0 = scmp.ge.s32.totalorder %s3057_s22, 2  ;;  %s2286_s24 = sand.u32 1, %s3029_s15  }
 0x1af   : > { %s2287_s12 = scalar_lea.sflag [#allocation3], %s2286_s24 }
 0x1b0   : > { %p2847_p1 = pnand %p2850_p0, %p3163_p8 }
 0x1b2   : > { %p2848_p2 = pneg %p2847_p1 }
 0x1b4   : > { %3024 = dma.done.wait (%p2848_p2), %s2287_s12, 4096  }
 0x1b5   : > { %3026 = vsyncadd (%p2848_p2), %s2287_s12, 4294963200  ;;  %s17_s22 = sadd.s32 1, %s3057_s22   ;;  %s4439_s28 = sld [smem:[#allocation5_spill]] }
 0x1b6   : > { %p14_p4 = scmp.ge.s32.totalorder %s17_s22, 6   ;;  %s4440_s9 = sld [smem:[#allocation6_spill]] }
 0x1b7   : > { %s4441_s15 = smov %s3033_s16  ;;  %s4442_s16 = smov %s3037_s17 }
 0x1b8   : > { %s4443_s17 = smov %s3172_s7  ;;  %s4444_s18 = smov %s3049_s20 }
 0x1b9   : > { %s4445_s19 = smov %s3053_s21  ;;  %16 = sbr.rel (!%p14_p4) target bundleno = 8 (0x8), region = 184 }
 0x1bb   : > { %s4446_s20 = smov %s4439_s28 }
 0x1bc   : > { %s4447_s21 = smov %s4440_s9 }
 0x1be   :  { %2292 = vsyncpa [#allocation3], 1 }
 0x1bf   :  { %2294 = vsyncpa [#allocation3 + $0x1], 1 }

</bundles_post_ra>
